<compile_context>
chip_gen: v7x
topology: tpu7x:2x2x1
jax: 0.10.0
libtpu: 0.0.40
codegen_flags: <defaults>
</compile_context>

<pallas_src>
import functools

import jax
import jax.numpy as jnp
from jax import lax
from jax.experimental import pallas as pl
from jax.experimental.pallas import tpu as pltpu

_INV_SQRT2 = 0.7071067811865476
_LN_EPS = 1e-5


def _gelu(x):
    # exact GELU (torch.nn.GELU default)
    return 0.5 * x * (1.0 + lax.erf(x * _INV_SQRT2))


def _layernorm(x, w, b):
    mu = jnp.mean(x, axis=-1, keepdims=True)
    var = jnp.mean((x - mu) ** 2, axis=-1, keepdims=True)
    return (x - mu) * lax.rsqrt(var + _LN_EPS) * w + b


def _mxu(x_f32, w_ref):
    # bf16 operands, f32 accumulation on the MXU.
    return jnp.dot(x_f32.astype(jnp.bfloat16), w_ref[...],
                   preferred_element_type=jnp.float32)


def _vec_layout(focal_level, kernel_sizes):
    """Row offsets inside the packed small-parameter array of shape (rows, dim)."""
    off = {}
    r = 0
    conv_w = []
    for k in kernel_sizes:
        conv_w.append(r)
        r += k
    off["conv_w"] = tuple(conv_w)
    off["conv_b"] = r
    r += focal_level
    for name in ("mn_w", "mn_b", "bq", "bc", "bcp", "bop", "fn_w", "fn_b", "b2"):
        off[name] = r
        r += 1
    off["wg"] = r                     # gate weights, transposed to (L+1, dim)
    r += focal_level + 1
    off["bg"] = r                     # gate biases in lanes 0..L of one row
    r += 1
    rows_padded = ((r + 7) // 8) * 8  # sublane-aligned
    return off, rows_padded


def focal_block_kernel(
    x_ref, vecs_ref, w_in_ref, wcp_ref, wop_ref, w1_ref, b1_ref, w2_ref,
    out_ref, *, batch_tile, seq_len, dim, focal_level, kernel_sizes, off,
):
    m_rows = batch_tile * seq_len
    x = x_ref[...].reshape(m_rows, dim)                        # (M, D) f32
    vecs = vecs_ref[...]                                       # packed small params

    def vrow(r):
        return vecs[r:r + 1, :]                                # (1, D)

    # ---- modulation_norm (pre-norm) ----
    h = _layernorm(x, vrow(off["mn_w"]), vrow(off["mn_b"]))

    # ---- fused FocalModulation.in_proj: [query | context] on the MXU ----
    y = _mxu(h, w_in_ref)                                      # (M, 2D) f32
    query = y[:, :dim] + vrow(off["bq"])
    ctx = y[:, dim:2 * dim] + vrow(off["bc"])

    # ---- gates as (M,1) columns on the VPU/XLU (no padded MXU lanes) ----
    gate_cols = []
    for l in range(focal_level + 1):
        g = jnp.sum(h * vrow(off["wg"] + l), axis=-1, keepdims=True)   # (M, 1)
        g = g + vecs[off["bg"]:off["bg"] + 1, l:l + 1]                  # + bias
        gate_cols.append(g)

    # ---- hoisted per-shift boundary masks (shared across focal levels) ----
    pos = lax.broadcasted_iota(
        jnp.int32, (batch_tile, seq_len, 1), 1).reshape(m_rows, 1)
    distinct_shifts = sorted(
        {(k // 2) - t for k in kernel_sizes for t in range(k)} - {0})
    masks = {}
    for sh in distinct_shifts:
        lo = max(0, sh)                       # zero-pad boundary +
        hi = seq_len + min(0, sh)             # batch-segment boundary
        masks[sh] = ((pos >= lo) & (pos < hi)).astype(jnp.float32)      # (M, 1)

    # ---- hierarchical focal levels: depthwise conv along seq + GELU ----
    ctx_all = jnp.zeros((m_rows, dim), jnp.float32)
    for level in range(focal_level):
        k = kernel_sizes[level]
        pad = k // 2
        w_off = off["conv_w"][level]
        acc = jnp.zeros((m_rows, dim), jnp.float32)
        for t in range(k):                                     # static unrolled taps
            shift = pad - t                                    # python int
            w_row = vrow(w_off + t)                            # (1, D)
            if shift == 0:
                acc = acc + ctx * w_row
            else:
                rolled = pltpu.roll(ctx, shift=shift % m_rows, axis=0)
                acc = acc + (rolled * w_row) * masks[shift]
        ctx = _gelu(acc + vrow(off["conv_b"] + level))
        ctx_all = ctx_all + ctx * gate_cols[level]

    # ---- global context (per-segment mean), accumulated in 3D (no broadcast_to) ----
    ctx_glob = _gelu(jnp.mean(ctx.reshape(batch_tile, seq_len, dim),
                              axis=1, keepdims=True))          # (BT, 1, D)
    gate3 = gate_cols[focal_level].reshape(batch_tile, seq_len, 1)
    ctx_all = (ctx_all.reshape(batch_tile, seq_len, dim)
               + ctx_glob * gate3).reshape(m_rows, dim)

    # ---- context_proj (1x1 conv == matmul) + modulate + out_proj ----
    modulator = _mxu(ctx_all, wcp_ref) + vrow(off["bcp"])
    mod = _mxu(query * modulator, wop_ref) + vrow(off["bop"])
    out1 = mod + x                                             # first residual

    # ---- feed_forward_norm (pre-norm) + FeedForward ----
    h2 = _layernorm(out1, vrow(off["fn_w"]), vrow(off["fn_b"]))
    ff = _gelu(_mxu(h2, w1_ref) + b1_ref[...])
    ff = _mxu(ff, w2_ref) + vrow(off["b2"])

    # ---- second residual ----
    out_ref[...] = (ff + out1).reshape(
        batch_tile, seq_len, dim).astype(out_ref.dtype)


def _device_hints():
    """Generation-aware knobs: (two TensorCores?, vmem_limit_bytes)."""
    try:
        kind = jax.devices()[0].device_kind.lower()
    except Exception:
        kind = ""
    is_v7 = ("v7" in kind) or ("tpu7" in kind)
    vmem_limit = (40 if is_v7 else 64) * 1024 * 1024   # v7x has 64 MiB physical
    return is_v7, vmem_limit


def _default_batch_tile(batch, seq_len, dim, ffn_dim, *, two_cores,
                        vmem_limit_bytes, target_rows=2048):
    """Largest divisor of batch whose flattened slab fits the row budget.
    On 2-TC chips (v7x) prefer an even grid so both cores get work; on
    single-TC chips the grid may collapse to 1 step (no per-step overhead)."""
    bytes_per_row = 4 * (20 * dim + 2 * ffn_dim)       # rough f32 live footprint
    budget_rows = max(seq_len, int(0.6 * vmem_limit_bytes) // bytes_per_row)
    row_budget = min(target_rows, budget_rows)
    cands = [bt for bt in range(1, batch + 1)
             if batch % bt == 0 and bt * seq_len <= row_budget]
    if not cands:
        cands = [1]
    if two_cores:
        even = [bt for bt in cands if (batch // bt) % 2 == 0]
        if even:
            return max(even)
    return max(cands)


def _prepare_weights(p, dim, focal_level, kernel_sizes):
    """Pack small f32 params into one (rows, dim) array; fuse+cast matmul weights."""
    off, rows = _vec_layout(focal_level, kernel_sizes)
    vecs = jnp.zeros((rows, dim), jnp.float32)
    for lvl, k in enumerate(kernel_sizes):
        vecs = vecs.at[off["conv_w"][lvl]:off["conv_w"][lvl] + k, :].set(p[f"cw{lvl}"])
        vecs = vecs.at[off["conv_b"] + lvl, :].set(p[f"cb{lvl}"][0])
    for name in ("mn_w", "mn_b", "bq", "bc", "bcp", "bop", "fn_w", "fn_b", "b2"):
        vecs = vecs.at[off[name], :].set(p[name][0])
    vecs = vecs.at[off["wg"]:off["wg"] + focal_level + 1, :].set(p["wg"].T)
    vecs = vecs.at[off["bg"], :focal_level + 1].set(p["bg"][0])

    w_in = jnp.concatenate([p["wq"], p["wc"]], axis=1).astype(jnp.bfloat16)
    big = (w_in,
           p["wcp"].astype(jnp.bfloat16),
           p["wop"].astype(jnp.bfloat16),
           p["w1"].astype(jnp.bfloat16),
           p["b1"],
           p["w2"].astype(jnp.bfloat16))
    return vecs, big, off


def focal_block(x, params, *, focal_level=2, kernel_sizes=(7, 9), batch_tile=None):
    """x: (B, S, D) float32. Returns (B, S, D)."""
    batch, seq_len, dim = x.shape
    ffn_dim = params["w1"].shape[1]
    assert len(kernel_sizes) == focal_level
    # layout-free flatten / per-segment mean need a sublane-aligned seq_len
    assert seq_len % 8 == 0, "pad seq_len to a multiple of 8 (f32 sublane tile)"
    # roll+mask conv assumes the conv padding never spans a whole segment
    assert max(k // 2 for k in kernel_sizes) < seq_len

    two_cores, vmem_limit = _device_hints()
    if batch_tile is None:
        batch_tile = _default_batch_tile(batch, seq_len, dim, ffn_dim,
                                         two_cores=two_cores,
                                         vmem_limit_bytes=vmem_limit)
    assert batch % batch_tile == 0
    assert batch_tile * seq_len > max(k // 2 for k in kernel_sizes)

    vecs, big, off = _prepare_weights(params, dim, focal_level, kernel_sizes)

    def full_spec(a):
        n = a.ndim
        return pl.BlockSpec(a.shape, lambda b, _n=n: (0,) * _n)

    in_specs = [pl.BlockSpec((batch_tile, seq_len, dim), lambda b: (b, 0, 0)),
                full_spec(vecs)] + [full_spec(w) for w in big]

    kern = functools.partial(
        focal_block_kernel,
        batch_tile=batch_tile, seq_len=seq_len, dim=dim,
        focal_level=focal_level, kernel_sizes=tuple(kernel_sizes), off=off)

    return pl.pallas_call(
        kern,
        out_shape=jax.ShapeDtypeStruct((batch, seq_len, dim), x.dtype),
        grid=(batch // batch_tile,),
        in_specs=in_specs,
        out_specs=pl.BlockSpec((batch_tile, seq_len, dim), lambda b: (b, 0, 0)),
        compiler_params=pltpu.CompilerParams(
            dimension_semantics=("parallel",),
            vmem_limit_bytes=vmem_limit),
    )(x, vecs, *big)


def make_params(key, dim, ffn_dim, focal_level, kernel_sizes):
    """Deterministic synthetic parameters (PyTorch layout, transposed to x@W form).

      wq/wc/wg  = in_proj.weight.T split along the output axis
      cw{k}     = layers[k][0].weight[:, 0, :].T   (depthwise Conv1d, (K, D))
      wcp       = context_proj.weight[:, :, 0].T   (1x1 Conv1d)
      wop, w1, w2 = out_proj / ffn in_proj / ffn out_proj weight.T
    """
    keys = jax.random.split(key, 16)
    s = 0.05
    p = {}
    p["mn_w"] = 1.0 + s * jax.random.normal(keys[0], (1, dim), jnp.float32)
    p["mn_b"] = s * jax.random.normal(keys[1], (1, dim), jnp.float32)
    p["wq"] = s * jax.random.normal(keys[2], (dim, dim), jnp.float32)
    p["bq"] = s * jax.random.normal(keys[3], (1, dim), jnp.float32)
    p["wc"] = s * jax.random.normal(keys[4], (dim, dim), jnp.float32)
    p["bc"] = s * jax.random.normal(keys[5], (1, dim), jnp.float32)
    p["wg"] = s * jax.random.normal(keys[6], (dim, focal_level + 1), jnp.float32)
    p["bg"] = s * jax.random.normal(keys[7], (1, focal_level + 1), jnp.float32)
    kk = jax.random.split(keys[8], 2 * focal_level)
    for lvl, k in enumerate(kernel_sizes):
        p[f"cw{lvl}"] = s * jax.random.normal(kk[2 * lvl], (k, dim), jnp.float32)
        p[f"cb{lvl}"] = s * jax.random.normal(kk[2 * lvl + 1], (1, dim), jnp.float32)
    p["wcp"] = s * jax.random.normal(keys[9], (dim, dim), jnp.float32)
    p["bcp"] = s * jax.random.normal(keys[10], (1, dim), jnp.float32)
    p["wop"] = s * jax.random.normal(keys[11], (dim, dim), jnp.float32)
    p["bop"] = s * jax.random.normal(keys[12], (1, dim), jnp.float32)
    p["fn_w"] = 1.0 + s * jax.random.normal(keys[13], (1, dim), jnp.float32)
    p["fn_b"] = s * jax.random.normal(keys[14], (1, dim), jnp.float32)
    k1, k2, k3, k4 = jax.random.split(keys[15], 4)
    p["w1"] = s * jax.random.normal(k1, (dim, ffn_dim), jnp.float32)
    p["b1"] = s * jax.random.normal(k2, (1, ffn_dim), jnp.float32)
    p["w2"] = s * jax.random.normal(k3, (ffn_dim, dim), jnp.float32)
    p["b2"] = s * jax.random.normal(k4, (1, dim), jnp.float32)
    return p


def focal_block_reference(x, p, kernel_sizes, focal_level):
    """Pure-JAX f32 reference (same math, batched), for correctness checking."""
    seq_len = x.shape[1]

    def ln(v, w, b):
        mu = v.mean(-1, keepdims=True)
        var = ((v - mu) ** 2).mean(-1, keepdims=True)
        return (v - mu) / jnp.sqrt(var + _LN_EPS) * w + b

    h = ln(x, p["mn_w"], p["mn_b"])
    q = h @ p["wq"] + p["bq"]
    c = h @ p["wc"] + p["bc"]
    g = h @ p["wg"] + p["bg"]
    ctx_all = jnp.zeros_like(c)
    for lvl, k in enumerate(kernel_sizes):
        pad = k // 2
        cp = jnp.pad(c, ((0, 0), (pad, pad), (0, 0)))
        acc = jnp.zeros_like(c)
        for t in range(k):
            acc = acc + cp[:, t:t + seq_len, :] * p[f"cw{lvl}"][t]
        c = _gelu(acc + p[f"cb{lvl}"])
        ctx_all = ctx_all + c * g[..., lvl:lvl + 1]
    cg = _gelu(c.mean(axis=1, keepdims=True)) * g[..., focal_level:focal_level + 1]
    ctx_all = ctx_all + cg
    modulator = ctx_all @ p["wcp"] + p["bcp"]
    out = (q * modulator) @ p["wop"] + p["bop"]
    out1 = out + x
    h2 = ln(out1, p["fn_w"], p["fn_b"])
    ff = _gelu(h2 @ p["w1"] + p["b1"]) @ p["w2"] + p["b2"]
    return ff + out1


if __name__ == "__main__":
    # Small, lane-dense shapes consistent with FocalBlock(dim, ffn_dim,
    # focal_window=7, focal_level=2, focal_factor=2): input is (B, S, D).
    batch, seq_len, dim, ffn_dim = 4, 16, 128, 256
    focal_window, focal_level, focal_factor = 7, 2, 2
    kernel_sizes = tuple(focal_factor * k + focal_window
                         for k in range(focal_level))  # (7, 9)

    key = jax.random.PRNGKey(0)
    kx, kp = jax.random.split(key)
    x = jax.random.normal(kx, (batch, seq_len, dim), jnp.float32)
    params = make_params(kp, dim, ffn_dim, focal_level, kernel_sizes)

    out = focal_block(x, params, focal_level=focal_level,
                      kernel_sizes=kernel_sizes)
    out = jax.block_until_ready(out)

    ref = jax.block_until_ready(
        focal_block_reference(x, params, kernel_sizes, focal_level))
    assert out.shape == (batch, seq_len, dim)
    err = float(jnp.max(jnp.abs(out - ref)))
    # bf16 matmul operands (f32 accumulation) vs. f32 reference.
    assert jnp.allclose(out, ref, rtol=2e-2, atol=2e-2), err

    print("KERNEL_OK")
</pallas_src>

<mosaic_0001>
module attributes {stable_mosaic.version = 11 : i64} {
  func.func @focal_block_kernel(%arg0: i32, %arg1: memref<4x16x128xf32, #tpu.memory_space<vmem>>, %arg2: memref<32x128xf32, #tpu.memory_space<vmem>>, %arg3: memref<128x256xbf16, #tpu.memory_space<vmem>>, %arg4: memref<128x128xbf16, #tpu.memory_space<vmem>>, %arg5: memref<128x128xbf16, #tpu.memory_space<vmem>>, %arg6: memref<128x256xbf16, #tpu.memory_space<vmem>>, %arg7: memref<1x256xf32, #tpu.memory_space<vmem>>, %arg8: memref<256x128xbf16, #tpu.memory_space<vmem>>, %arg9: memref<4x16x128xf32, #tpu.memory_space<vmem>>) attributes {dimension_semantics = [#tpu.dimension_semantics<parallel>], iteration_bounds = array<i64: 1>, scalar_prefetch = 0 : i64, scratch_operands = 0 : i64, tpu.core_type = #tpu.core_type<tc>, window_params = [{transform_indices = @transform_0, window_bounds = array<i64: 4, 16, 128>}, {pipeline_mode = #tpu.pipeline_mode<synchronous>, transform_indices = @transform_1, window_bounds = array<i64: 32, 128>}, {pipeline_mode = #tpu.pipeline_mode<synchronous>, transform_indices = @transform_2, window_bounds = array<i64: 128, 256>}, {pipeline_mode = #tpu.pipeline_mode<synchronous>, transform_indices = @transform_3, window_bounds = array<i64: 128, 128>}, {pipeline_mode = #tpu.pipeline_mode<synchronous>, transform_indices = @transform_4, window_bounds = array<i64: 128, 128>}, {pipeline_mode = #tpu.pipeline_mode<synchronous>, transform_indices = @transform_5, window_bounds = array<i64: 128, 256>}, {pipeline_mode = #tpu.pipeline_mode<synchronous>, transform_indices = @transform_6, window_bounds = array<i64: 1, 256>}, {pipeline_mode = #tpu.pipeline_mode<synchronous>, transform_indices = @transform_7, window_bounds = array<i64: 256, 128>}, {transform_indices = @transform_8, window_bounds = array<i64: 4, 16, 128>}]} {
    %c0 = arith.constant 0 : index
    %c0_0 = arith.constant 0 : index
    %c0_1 = arith.constant 0 : index
    %0 = vector.load %arg1[%c0, %c0_0, %c0_1] : memref<4x16x128xf32, #tpu.memory_space<vmem>>, vector<4x16x128xf32>
    %1 = vector.shape_cast %0 : vector<4x16x128xf32> to vector<64x128xf32>
    %c0_2 = arith.constant 0 : index
    %c0_3 = arith.constant 0 : index
    %2 = vector.load %arg2[%c0_2, %c0_3] : memref<32x128xf32, #tpu.memory_space<vmem>>, vector<32x128xf32>
    %3 = vector.extract_strided_slice %2 {offsets = [18, 0], sizes = [1, 128], strides = [1, 1]} : vector<32x128xf32> to vector<1x128xf32>
    %4 = vector.extract_strided_slice %2 {offsets = [19, 0], sizes = [1, 128], strides = [1, 1]} : vector<32x128xf32> to vector<1x128xf32>
    %cst = arith.constant dense<0.000000e+00> : vector<64xf32>
    %5 = vector.multi_reduction <add>, %1, %cst [1] : vector<64x128xf32> to vector<64xf32>
    %6 = vector.shape_cast %5 : vector<64xf32> to vector<64x1xf32>
    %cst_4 = arith.constant 1.280000e+02 : f32
    %7 = vector.broadcast %cst_4 : f32 to vector<64x1xf32>
    %8 = arith.divf %6, %7 : vector<64x1xf32>
    %9 = vector.broadcast %8 : vector<64x1xf32> to vector<64x128xf32>
    %10 = arith.subf %1, %9 : vector<64x128xf32>
    %11 = arith.mulf %10, %10 : vector<64x128xf32>
    %cst_5 = arith.constant dense<0.000000e+00> : vector<64xf32>
    %12 = vector.multi_reduction <add>, %11, %cst_5 [1] : vector<64x128xf32> to vector<64xf32>
    %13 = vector.shape_cast %12 : vector<64xf32> to vector<64x1xf32>
    %cst_6 = arith.constant 1.280000e+02 : f32
    %14 = vector.broadcast %cst_6 : f32 to vector<64x1xf32>
    %15 = arith.divf %13, %14 : vector<64x1xf32>
    %16 = vector.broadcast %8 : vector<64x1xf32> to vector<64x128xf32>
    %17 = arith.subf %1, %16 : vector<64x128xf32>
    %cst_7 = arith.constant 9.99999974E-6 : f32
    %18 = vector.broadcast %cst_7 : f32 to vector<64x1xf32>
    %19 = arith.addf %15, %18 : vector<64x1xf32>
    %20 = math.rsqrt %19 : vector<64x1xf32>
    %21 = vector.broadcast %20 : vector<64x1xf32> to vector<64x128xf32>
    %22 = arith.mulf %17, %21 : vector<64x128xf32>
    %23 = vector.broadcast %3 : vector<1x128xf32> to vector<64x128xf32>
    %24 = arith.mulf %22, %23 : vector<64x128xf32>
    %25 = vector.broadcast %4 : vector<1x128xf32> to vector<64x128xf32>
    %26 = arith.addf %24, %25 : vector<64x128xf32>
    %27 = arith.truncf %26 : vector<64x128xf32> to vector<64x128xbf16>
    %c0_8 = arith.constant 0 : index
    %c0_9 = arith.constant 0 : index
    %28 = vector.load %arg3[%c0_8, %c0_9] : memref<128x256xbf16, #tpu.memory_space<vmem>>, vector<128x256xbf16>
    %cst_10 = arith.constant dense<0.000000e+00> : vector<64x256xf32>
    %29 = tpu.matmul %27, %28, %cst_10 {dimension_numbers = #tpu.dot_dimension_numbers<[1], [0], [0], [1], [0, 0, 1, 1], [], []>} : vector<64x128xbf16>, vector<128x256xbf16>, vector<64x256xf32> -> vector<64x256xf32>
    %30 = vector.extract_strided_slice %29 {offsets = [0, 0], sizes = [64, 128], strides = [1, 1]} : vector<64x256xf32> to vector<64x128xf32>
    %31 = vector.extract_strided_slice %2 {offsets = [20, 0], sizes = [1, 128], strides = [1, 1]} : vector<32x128xf32> to vector<1x128xf32>
    %32 = vector.broadcast %31 : vector<1x128xf32> to vector<64x128xf32>
    %33 = arith.addf %30, %32 : vector<64x128xf32>
    %34 = vector.extract_strided_slice %29 {offsets = [0, 128], sizes = [64, 128], strides = [1, 1]} : vector<64x256xf32> to vector<64x128xf32>
    %35 = vector.extract_strided_slice %2 {offsets = [21, 0], sizes = [1, 128], strides = [1, 1]} : vector<32x128xf32> to vector<1x128xf32>
    %36 = vector.broadcast %35 : vector<1x128xf32> to vector<64x128xf32>
    %37 = arith.addf %34, %36 : vector<64x128xf32>
    %38 = vector.extract_strided_slice %2 {offsets = [27, 0], sizes = [1, 128], strides = [1, 1]} : vector<32x128xf32> to vector<1x128xf32>
    %39 = vector.broadcast %38 : vector<1x128xf32> to vector<64x128xf32>
    %40 = arith.mulf %26, %39 : vector<64x128xf32>
    %cst_11 = arith.constant dense<0.000000e+00> : vector<64xf32>
    %41 = vector.multi_reduction <add>, %40, %cst_11 [1] : vector<64x128xf32> to vector<64xf32>
    %42 = vector.shape_cast %41 : vector<64xf32> to vector<64x1xf32>
    %43 = vector.extract_strided_slice %2 {offsets = [30, 0], sizes = [1, 1], strides = [1, 1]} : vector<32x128xf32> to vector<1x1xf32>
    %44 = vector.broadcast %43 : vector<1x1xf32> to vector<64x1xf32>
    %45 = arith.addf %42, %44 : vector<64x1xf32>
    %46 = vector.extract_strided_slice %2 {offsets = [28, 0], sizes = [1, 128], strides = [1, 1]} : vector<32x128xf32> to vector<1x128xf32>
    %47 = vector.broadcast %46 : vector<1x128xf32> to vector<64x128xf32>
    %48 = arith.mulf %26, %47 : vector<64x128xf32>
    %cst_12 = arith.constant dense<0.000000e+00> : vector<64xf32>
    %49 = vector.multi_reduction <add>, %48, %cst_12 [1] : vector<64x128xf32> to vector<64xf32>
    %50 = vector.shape_cast %49 : vector<64xf32> to vector<64x1xf32>
    %51 = vector.extract_strided_slice %2 {offsets = [30, 1], sizes = [1, 1], strides = [1, 1]} : vector<32x128xf32> to vector<1x1xf32>
    %52 = vector.broadcast %51 : vector<1x1xf32> to vector<64x1xf32>
    %53 = arith.addf %50, %52 : vector<64x1xf32>
    %54 = vector.extract_strided_slice %2 {offsets = [29, 0], sizes = [1, 128], strides = [1, 1]} : vector<32x128xf32> to vector<1x128xf32>
    %55 = vector.broadcast %54 : vector<1x128xf32> to vector<64x128xf32>
    %56 = arith.mulf %26, %55 : vector<64x128xf32>
    %cst_13 = arith.constant dense<0.000000e+00> : vector<64xf32>
    %57 = vector.multi_reduction <add>, %56, %cst_13 [1] : vector<64x128xf32> to vector<64xf32>
    %58 = vector.shape_cast %57 : vector<64xf32> to vector<64x1xf32>
    %59 = vector.extract_strided_slice %2 {offsets = [30, 2], sizes = [1, 1], strides = [1, 1]} : vector<32x128xf32> to vector<1x1xf32>
    %60 = vector.broadcast %59 : vector<1x1xf32> to vector<64x1xf32>
    %61 = arith.addf %58, %60 : vector<64x1xf32>
    %62 = tpu.iota {dimensions = array<i32: 1>} : vector<4x16x1xi32>
    %63 = vector.shape_cast %62 : vector<4x16x1xi32> to vector<64x1xi32>
    %c0_i32 = arith.constant 0 : i32
    %64 = vector.broadcast %c0_i32 : i32 to vector<64x1xi32>
    %65 = arith.cmpi sge, %63, %64 : vector<64x1xi32>
    %c12_i32 = arith.constant 12 : i32
    %66 = vector.broadcast %c12_i32 : i32 to vector<64x1xi32>
    %67 = arith.cmpi slt, %63, %66 : vector<64x1xi32>
    %68 = arith.andi %65, %67 : vector<64x1xi1>
    %69 = arith.extui %68 : vector<64x1xi1> to vector<64x1xi32>
    %70 = arith.sitofp %69 : vector<64x1xi32> to vector<64x1xf32>
    %c0_i32_14 = arith.constant 0 : i32
    %71 = vector.broadcast %c0_i32_14 : i32 to vector<64x1xi32>
    %72 = arith.cmpi sge, %63, %71 : vector<64x1xi32>
    %c13_i32 = arith.constant 13 : i32
    %73 = vector.broadcast %c13_i32 : i32 to vector<64x1xi32>
    %74 = arith.cmpi slt, %63, %73 : vector<64x1xi32>
    %75 = arith.andi %72, %74 : vector<64x1xi1>
    %76 = arith.extui %75 : vector<64x1xi1> to vector<64x1xi32>
    %77 = arith.sitofp %76 : vector<64x1xi32> to vector<64x1xf32>
    %c0_i32_15 = arith.constant 0 : i32
    %78 = vector.broadcast %c0_i32_15 : i32 to vector<64x1xi32>
    %79 = arith.cmpi sge, %63, %78 : vector<64x1xi32>
    %c14_i32 = arith.constant 14 : i32
    %80 = vector.broadcast %c14_i32 : i32 to vector<64x1xi32>
    %81 = arith.cmpi slt, %63, %80 : vector<64x1xi32>
    %82 = arith.andi %79, %81 : vector<64x1xi1>
    %83 = arith.extui %82 : vector<64x1xi1> to vector<64x1xi32>
    %84 = arith.sitofp %83 : vector<64x1xi32> to vector<64x1xf32>
    %c0_i32_16 = arith.constant 0 : i32
    %85 = vector.broadcast %c0_i32_16 : i32 to vector<64x1xi32>
    %86 = arith.cmpi sge, %63, %85 : vector<64x1xi32>
    %c15_i32 = arith.constant 15 : i32
    %87 = vector.broadcast %c15_i32 : i32 to vector<64x1xi32>
    %88 = arith.cmpi slt, %63, %87 : vector<64x1xi32>
    %89 = arith.andi %86, %88 : vector<64x1xi1>
    %90 = arith.extui %89 : vector<64x1xi1> to vector<64x1xi32>
    %91 = arith.sitofp %90 : vector<64x1xi32> to vector<64x1xf32>
    %c1_i32 = arith.constant 1 : i32
    %92 = vector.broadcast %c1_i32 : i32 to vector<64x1xi32>
    %93 = arith.cmpi sge, %63, %92 : vector<64x1xi32>
    %c16_i32 = arith.constant 16 : i32
    %94 = vector.broadcast %c16_i32 : i32 to vector<64x1xi32>
    %95 = arith.cmpi slt, %63, %94 : vector<64x1xi32>
    %96 = arith.andi %93, %95 : vector<64x1xi1>
    %97 = arith.extui %96 : vector<64x1xi1> to vector<64x1xi32>
    %98 = arith.sitofp %97 : vector<64x1xi32> to vector<64x1xf32>
    %c2_i32 = arith.constant 2 : i32
    %99 = vector.broadcast %c2_i32 : i32 to vector<64x1xi32>
    %100 = arith.cmpi sge, %63, %99 : vector<64x1xi32>
    %c16_i32_17 = arith.constant 16 : i32
    %101 = vector.broadcast %c16_i32_17 : i32 to vector<64x1xi32>
    %102 = arith.cmpi slt, %63, %101 : vector<64x1xi32>
    %103 = arith.andi %100, %102 : vector<64x1xi1>
    %104 = arith.extui %103 : vector<64x1xi1> to vector<64x1xi32>
    %105 = arith.sitofp %104 : vector<64x1xi32> to vector<64x1xf32>
    %c3_i32 = arith.constant 3 : i32
    %106 = vector.broadcast %c3_i32 : i32 to vector<64x1xi32>
    %107 = arith.cmpi sge, %63, %106 : vector<64x1xi32>
    %c16_i32_18 = arith.constant 16 : i32
    %108 = vector.broadcast %c16_i32_18 : i32 to vector<64x1xi32>
    %109 = arith.cmpi slt, %63, %108 : vector<64x1xi32>
    %110 = arith.andi %107, %109 : vector<64x1xi1>
    %111 = arith.extui %110 : vector<64x1xi1> to vector<64x1xi32>
    %112 = arith.sitofp %111 : vector<64x1xi32> to vector<64x1xf32>
    %c4_i32 = arith.constant 4 : i32
    %113 = vector.broadcast %c4_i32 : i32 to vector<64x1xi32>
    %114 = arith.cmpi sge, %63, %113 : vector<64x1xi32>
    %c16_i32_19 = arith.constant 16 : i32
    %115 = vector.broadcast %c16_i32_19 : i32 to vector<64x1xi32>
    %116 = arith.cmpi slt, %63, %115 : vector<64x1xi32>
    %117 = arith.andi %114, %116 : vector<64x1xi1>
    %118 = arith.extui %117 : vector<64x1xi1> to vector<64x1xi32>
    %119 = arith.sitofp %118 : vector<64x1xi32> to vector<64x1xf32>
    %cst_20 = arith.constant 0.000000e+00 : f32
    %120 = vector.broadcast %cst_20 : f32 to vector<64x128xf32>
    %cst_21 = arith.constant 0.000000e+00 : f32
    %121 = vector.broadcast %cst_21 : f32 to vector<64x128xf32>
    %122 = vector.extract_strided_slice %2 {offsets = [0, 0], sizes = [1, 128], strides = [1, 1]} : vector<32x128xf32> to vector<1x128xf32>
    %c3_i32_22 = arith.constant 3 : i32
    %123 = tpu.dynamic_rotate %37 by %c3_i32_22 dim 0 : vector<64x128xf32>, i32 -> vector<64x128xf32>
    %124 = vector.broadcast %122 : vector<1x128xf32> to vector<64x128xf32>
    %125 = arith.mulf %123, %124 : vector<64x128xf32>
    %126 = vector.broadcast %112 : vector<64x1xf32> to vector<64x128xf32>
    %127 = arith.mulf %125, %126 : vector<64x128xf32>
    %128 = arith.addf %121, %127 : vector<64x128xf32>
    %129 = vector.extract_strided_slice %2 {offsets = [1, 0], sizes = [1, 128], strides = [1, 1]} : vector<32x128xf32> to vector<1x128xf32>
    %c2_i32_23 = arith.constant 2 : i32
    %130 = tpu.dynamic_rotate %37 by %c2_i32_23 dim 0 : vector<64x128xf32>, i32 -> vector<64x128xf32>
    %131 = vector.broadcast %129 : vector<1x128xf32> to vector<64x128xf32>
    %132 = arith.mulf %130, %131 : vector<64x128xf32>
    %133 = vector.broadcast %105 : vector<64x1xf32> to vector<64x128xf32>
    %134 = arith.mulf %132, %133 : vector<64x128xf32>
    %135 = arith.addf %128, %134 : vector<64x128xf32>
    %136 = vector.extract_strided_slice %2 {offsets = [2, 0], sizes = [1, 128], strides = [1, 1]} : vector<32x128xf32> to vector<1x128xf32>
    %c1_i32_24 = arith.constant 1 : i32
    %137 = tpu.dynamic_rotate %37 by %c1_i32_24 dim 0 : vector<64x128xf32>, i32 -> vector<64x128xf32>
    %138 = vector.broadcast %136 : vector<1x128xf32> to vector<64x128xf32>
    %139 = arith.mulf %137, %138 : vector<64x128xf32>
    %140 = vector.broadcast %98 : vector<64x1xf32> to vector<64x128xf32>
    %141 = arith.mulf %139, %140 : vector<64x128xf32>
    %142 = arith.addf %135, %141 : vector<64x128xf32>
    %143 = vector.extract_strided_slice %2 {offsets = [3, 0], sizes = [1, 128], strides = [1, 1]} : vector<32x128xf32> to vector<1x128xf32>
    %144 = vector.broadcast %143 : vector<1x128xf32> to vector<64x128xf32>
    %145 = arith.mulf %37, %144 : vector<64x128xf32>
    %146 = arith.addf %142, %145 : vector<64x128xf32>
    %147 = vector.extract_strided_slice %2 {offsets = [4, 0], sizes = [1, 128], strides = [1, 1]} : vector<32x128xf32> to vector<1x128xf32>
    %c63_i32 = arith.constant 63 : i32
    %148 = tpu.dynamic_rotate %37 by %c63_i32 dim 0 : vector<64x128xf32>, i32 -> vector<64x128xf32>
    %149 = vector.broadcast %147 : vector<1x128xf32> to vector<64x128xf32>
    %150 = arith.mulf %148, %149 : vector<64x128xf32>
    %151 = vector.broadcast %91 : vector<64x1xf32> to vector<64x128xf32>
    %152 = arith.mulf %150, %151 : vector<64x128xf32>
    %153 = arith.addf %146, %152 : vector<64x128xf32>
    %154 = vector.extract_strided_slice %2 {offsets = [5, 0], sizes = [1, 128], strides = [1, 1]} : vector<32x128xf32> to vector<1x128xf32>
    %c62_i32 = arith.constant 62 : i32
    %155 = tpu.dynamic_rotate %37 by %c62_i32 dim 0 : vector<64x128xf32>, i32 -> vector<64x128xf32>
    %156 = vector.broadcast %154 : vector<1x128xf32> to vector<64x128xf32>
    %157 = arith.mulf %155, %156 : vector<64x128xf32>
    %158 = vector.broadcast %84 : vector<64x1xf32> to vector<64x128xf32>
    %159 = arith.mulf %157, %158 : vector<64x128xf32>
    %160 = arith.addf %153, %159 : vector<64x128xf32>
    %161 = vector.extract_strided_slice %2 {offsets = [6, 0], sizes = [1, 128], strides = [1, 1]} : vector<32x128xf32> to vector<1x128xf32>
    %c61_i32 = arith.constant 61 : i32
    %162 = tpu.dynamic_rotate %37 by %c61_i32 dim 0 : vector<64x128xf32>, i32 -> vector<64x128xf32>
    %163 = vector.broadcast %161 : vector<1x128xf32> to vector<64x128xf32>
    %164 = arith.mulf %162, %163 : vector<64x128xf32>
    %165 = vector.broadcast %77 : vector<64x1xf32> to vector<64x128xf32>
    %166 = arith.mulf %164, %165 : vector<64x128xf32>
    %167 = arith.addf %160, %166 : vector<64x128xf32>
    %168 = vector.extract_strided_slice %2 {offsets = [16, 0], sizes = [1, 128], strides = [1, 1]} : vector<32x128xf32> to vector<1x128xf32>
    %169 = vector.broadcast %168 : vector<1x128xf32> to vector<64x128xf32>
    %170 = arith.addf %167, %169 : vector<64x128xf32>
    %cst_25 = arith.constant 5.000000e-01 : f32
    %171 = vector.broadcast %cst_25 : f32 to vector<64x128xf32>
    %172 = arith.mulf %171, %170 : vector<64x128xf32>
    %cst_26 = arith.constant 0.707106769 : f32
    %173 = vector.broadcast %cst_26 : f32 to vector<64x128xf32>
    %174 = arith.mulf %170, %173 : vector<64x128xf32>
    %175 = math.erf %174 : vector<64x128xf32>
    %cst_27 = arith.constant 1.000000e+00 : f32
    %176 = vector.broadcast %cst_27 : f32 to vector<64x128xf32>
    %177 = arith.addf %176, %175 : vector<64x128xf32>
    %178 = arith.mulf %172, %177 : vector<64x128xf32>
    %179 = vector.broadcast %45 : vector<64x1xf32> to vector<64x128xf32>
    %180 = arith.mulf %178, %179 : vector<64x128xf32>
    %181 = arith.addf %120, %180 : vector<64x128xf32>
    %cst_28 = arith.constant 0.000000e+00 : f32
    %182 = vector.broadcast %cst_28 : f32 to vector<64x128xf32>
    %183 = vector.extract_strided_slice %2 {offsets = [7, 0], sizes = [1, 128], strides = [1, 1]} : vector<32x128xf32> to vector<1x128xf32>
    %c4_i32_29 = arith.constant 4 : i32
    %184 = tpu.dynamic_rotate %178 by %c4_i32_29 dim 0 : vector<64x128xf32>, i32 -> vector<64x128xf32>
    %185 = vector.broadcast %183 : vector<1x128xf32> to vector<64x128xf32>
    %186 = arith.mulf %184, %185 : vector<64x128xf32>
    %187 = vector.broadcast %119 : vector<64x1xf32> to vector<64x128xf32>
    %188 = arith.mulf %186, %187 : vector<64x128xf32>
    %189 = arith.addf %182, %188 : vector<64x128xf32>
    %190 = vector.extract_strided_slice %2 {offsets = [8, 0], sizes = [1, 128], strides = [1, 1]} : vector<32x128xf32> to vector<1x128xf32>
    %c3_i32_30 = arith.constant 3 : i32
    %191 = tpu.dynamic_rotate %178 by %c3_i32_30 dim 0 : vector<64x128xf32>, i32 -> vector<64x128xf32>
    %192 = vector.broadcast %190 : vector<1x128xf32> to vector<64x128xf32>
    %193 = arith.mulf %191, %192 : vector<64x128xf32>
    %194 = vector.broadcast %112 : vector<64x1xf32> to vector<64x128xf32>
    %195 = arith.mulf %193, %194 : vector<64x128xf32>
    %196 = arith.addf %189, %195 : vector<64x128xf32>
    %197 = vector.extract_strided_slice %2 {offsets = [9, 0], sizes = [1, 128], strides = [1, 1]} : vector<32x128xf32> to vector<1x128xf32>
    %c2_i32_31 = arith.constant 2 : i32
    %198 = tpu.dynamic_rotate %178 by %c2_i32_31 dim 0 : vector<64x128xf32>, i32 -> vector<64x128xf32>
    %199 = vector.broadcast %197 : vector<1x128xf32> to vector<64x128xf32>
    %200 = arith.mulf %198, %199 : vector<64x128xf32>
    %201 = vector.broadcast %105 : vector<64x1xf32> to vector<64x128xf32>
    %202 = arith.mulf %200, %201 : vector<64x128xf32>
    %203 = arith.addf %196, %202 : vector<64x128xf32>
    %204 = vector.extract_strided_slice %2 {offsets = [10, 0], sizes = [1, 128], strides = [1, 1]} : vector<32x128xf32> to vector<1x128xf32>
    %c1_i32_32 = arith.constant 1 : i32
    %205 = tpu.dynamic_rotate %178 by %c1_i32_32 dim 0 : vector<64x128xf32>, i32 -> vector<64x128xf32>
    %206 = vector.broadcast %204 : vector<1x128xf32> to vector<64x128xf32>
    %207 = arith.mulf %205, %206 : vector<64x128xf32>
    %208 = vector.broadcast %98 : vector<64x1xf32> to vector<64x128xf32>
    %209 = arith.mulf %207, %208 : vector<64x128xf32>
    %210 = arith.addf %203, %209 : vector<64x128xf32>
    %211 = vector.extract_strided_slice %2 {offsets = [11, 0], sizes = [1, 128], strides = [1, 1]} : vector<32x128xf32> to vector<1x128xf32>
    %212 = vector.broadcast %211 : vector<1x128xf32> to vector<64x128xf32>
    %213 = arith.mulf %178, %212 : vector<64x128xf32>
    %214 = arith.addf %210, %213 : vector<64x128xf32>
    %215 = vector.extract_strided_slice %2 {offsets = [12, 0], sizes = [1, 128], strides = [1, 1]} : vector<32x128xf32> to vector<1x128xf32>
    %c63_i32_33 = arith.constant 63 : i32
    %216 = tpu.dynamic_rotate %178 by %c63_i32_33 dim 0 : vector<64x128xf32>, i32 -> vector<64x128xf32>
    %217 = vector.broadcast %215 : vector<1x128xf32> to vector<64x128xf32>
    %218 = arith.mulf %216, %217 : vector<64x128xf32>
    %219 = vector.broadcast %91 : vector<64x1xf32> to vector<64x128xf32>
    %220 = arith.mulf %218, %219 : vector<64x128xf32>
    %221 = arith.addf %214, %220 : vector<64x128xf32>
    %222 = vector.extract_strided_slice %2 {offsets = [13, 0], sizes = [1, 128], strides = [1, 1]} : vector<32x128xf32> to vector<1x128xf32>
    %c62_i32_34 = arith.constant 62 : i32
    %223 = tpu.dynamic_rotate %178 by %c62_i32_34 dim 0 : vector<64x128xf32>, i32 -> vector<64x128xf32>
    %224 = vector.broadcast %222 : vector<1x128xf32> to vector<64x128xf32>
    %225 = arith.mulf %223, %224 : vector<64x128xf32>
    %226 = vector.broadcast %84 : vector<64x1xf32> to vector<64x128xf32>
    %227 = arith.mulf %225, %226 : vector<64x128xf32>
    %228 = arith.addf %221, %227 : vector<64x128xf32>
    %229 = vector.extract_strided_slice %2 {offsets = [14, 0], sizes = [1, 128], strides = [1, 1]} : vector<32x128xf32> to vector<1x128xf32>
    %c61_i32_35 = arith.constant 61 : i32
    %230 = tpu.dynamic_rotate %178 by %c61_i32_35 dim 0 : vector<64x128xf32>, i32 -> vector<64x128xf32>
    %231 = vector.broadcast %229 : vector<1x128xf32> to vector<64x128xf32>
    %232 = arith.mulf %230, %231 : vector<64x128xf32>
    %233 = vector.broadcast %77 : vector<64x1xf32> to vector<64x128xf32>
    %234 = arith.mulf %232, %233 : vector<64x128xf32>
    %235 = arith.addf %228, %234 : vector<64x128xf32>
    %236 = vector.extract_strided_slice %2 {offsets = [15, 0], sizes = [1, 128], strides = [1, 1]} : vector<32x128xf32> to vector<1x128xf32>
    %c60_i32 = arith.constant 60 : i32
    %237 = tpu.dynamic_rotate %178 by %c60_i32 dim 0 : vector<64x128xf32>, i32 -> vector<64x128xf32>
    %238 = vector.broadcast %236 : vector<1x128xf32> to vector<64x128xf32>
    %239 = arith.mulf %237, %238 : vector<64x128xf32>
    %240 = vector.broadcast %70 : vector<64x1xf32> to vector<64x128xf32>
    %241 = arith.mulf %239, %240 : vector<64x128xf32>
    %242 = arith.addf %235, %241 : vector<64x128xf32>
    %243 = vector.extract_strided_slice %2 {offsets = [17, 0], sizes = [1, 128], strides = [1, 1]} : vector<32x128xf32> to vector<1x128xf32>
    %244 = vector.broadcast %243 : vector<1x128xf32> to vector<64x128xf32>
    %245 = arith.addf %242, %244 : vector<64x128xf32>
    %cst_36 = arith.constant 5.000000e-01 : f32
    %246 = vector.broadcast %cst_36 : f32 to vector<64x128xf32>
    %247 = arith.mulf %246, %245 : vector<64x128xf32>
    %cst_37 = arith.constant 0.707106769 : f32
    %248 = vector.broadcast %cst_37 : f32 to vector<64x128xf32>
    %249 = arith.mulf %245, %248 : vector<64x128xf32>
    %250 = math.erf %249 : vector<64x128xf32>
    %cst_38 = arith.constant 1.000000e+00 : f32
    %251 = vector.broadcast %cst_38 : f32 to vector<64x128xf32>
    %252 = arith.addf %251, %250 : vector<64x128xf32>
    %253 = arith.mulf %247, %252 : vector<64x128xf32>
    %254 = vector.broadcast %53 : vector<64x1xf32> to vector<64x128xf32>
    %255 = arith.mulf %253, %254 : vector<64x128xf32>
    %256 = arith.addf %181, %255 : vector<64x128xf32>
    %257 = vector.shape_cast %253 : vector<64x128xf32> to vector<4x16x128xf32>
    %cst_39 = arith.constant dense<0.000000e+00> : vector<4x128xf32>
    %258 = vector.multi_reduction <add>, %257, %cst_39 [1] : vector<4x16x128xf32> to vector<4x128xf32>
    %259 = vector.shape_cast %258 : vector<4x128xf32> to vector<4x1x128xf32>
    %cst_40 = arith.constant 1.600000e+01 : f32
    %260 = vector.broadcast %cst_40 : f32 to vector<4x1x128xf32>
    %261 = arith.divf %259, %260 : vector<4x1x128xf32>
    %cst_41 = arith.constant 5.000000e-01 : f32
    %262 = vector.broadcast %cst_41 : f32 to vector<4x1x128xf32>
    %263 = arith.mulf %262, %261 : vector<4x1x128xf32>
    %cst_42 = arith.constant 0.707106769 : f32
    %264 = vector.broadcast %cst_42 : f32 to vector<4x1x128xf32>
    %265 = arith.mulf %261, %264 : vector<4x1x128xf32>
    %266 = math.erf %265 : vector<4x1x128xf32>
    %cst_43 = arith.constant 1.000000e+00 : f32
    %267 = vector.broadcast %cst_43 : f32 to vector<4x1x128xf32>
    %268 = arith.addf %267, %266 : vector<4x1x128xf32>
    %269 = arith.mulf %263, %268 : vector<4x1x128xf32>
    %270 = vector.shape_cast %61 : vector<64x1xf32> to vector<4x16x1xf32>
    %271 = vector.shape_cast %256 : vector<64x128xf32> to vector<4x16x128xf32>
    %272 = vector.broadcast %269 : vector<4x1x128xf32> to vector<4x16x128xf32>
    %273 = vector.broadcast %270 : vector<4x16x1xf32> to vector<4x16x128xf32>
    %274 = arith.mulf %272, %273 : vector<4x16x128xf32>
    %275 = arith.addf %271, %274 : vector<4x16x128xf32>
    %276 = vector.shape_cast %275 : vector<4x16x128xf32> to vector<64x128xf32>
    %277 = arith.truncf %276 : vector<64x128xf32> to vector<64x128xbf16>
    %c0_44 = arith.constant 0 : index
    %c0_45 = arith.constant 0 : index
    %278 = vector.load %arg4[%c0_44, %c0_45] : memref<128x128xbf16, #tpu.memory_space<vmem>>, vector<128x128xbf16>
    %cst_46 = arith.constant dense<0.000000e+00> : vector<64x128xf32>
    %279 = tpu.matmul %277, %278, %cst_46 {dimension_numbers = #tpu.dot_dimension_numbers<[1], [0], [0], [1], [0, 0, 1, 1], [], []>} : vector<64x128xbf16>, vector<128x128xbf16>, vector<64x128xf32> -> vector<64x128xf32>
    %280 = vector.extract_strided_slice %2 {offsets = [22, 0], sizes = [1, 128], strides = [1, 1]} : vector<32x128xf32> to vector<1x128xf32>
    %281 = vector.broadcast %280 : vector<1x128xf32> to vector<64x128xf32>
    %282 = arith.addf %279, %281 : vector<64x128xf32>
    %283 = arith.mulf %33, %282 : vector<64x128xf32>
    %284 = arith.truncf %283 : vector<64x128xf32> to vector<64x128xbf16>
    %c0_47 = arith.constant 0 : index
    %c0_48 = arith.constant 0 : index
    %285 = vector.load %arg5[%c0_47, %c0_48] : memref<128x128xbf16, #tpu.memory_space<vmem>>, vector<128x128xbf16>
    %cst_49 = arith.constant dense<0.000000e+00> : vector<64x128xf32>
    %286 = tpu.matmul %284, %285, %cst_49 {dimension_numbers = #tpu.dot_dimension_numbers<[1], [0], [0], [1], [0, 0, 1, 1], [], []>} : vector<64x128xbf16>, vector<128x128xbf16>, vector<64x128xf32> -> vector<64x128xf32>
    %287 = vector.extract_strided_slice %2 {offsets = [23, 0], sizes = [1, 128], strides = [1, 1]} : vector<32x128xf32> to vector<1x128xf32>
    %288 = vector.broadcast %287 : vector<1x128xf32> to vector<64x128xf32>
    %289 = arith.addf %286, %288 : vector<64x128xf32>
    %290 = arith.addf %289, %1 : vector<64x128xf32>
    %291 = vector.extract_strided_slice %2 {offsets = [24, 0], sizes = [1, 128], strides = [1, 1]} : vector<32x128xf32> to vector<1x128xf32>
    %292 = vector.extract_strided_slice %2 {offsets = [25, 0], sizes = [1, 128], strides = [1, 1]} : vector<32x128xf32> to vector<1x128xf32>
    %cst_50 = arith.constant dense<0.000000e+00> : vector<64xf32>
    %293 = vector.multi_reduction <add>, %290, %cst_50 [1] : vector<64x128xf32> to vector<64xf32>
    %294 = vector.shape_cast %293 : vector<64xf32> to vector<64x1xf32>
    %cst_51 = arith.constant 1.280000e+02 : f32
    %295 = vector.broadcast %cst_51 : f32 to vector<64x1xf32>
    %296 = arith.divf %294, %295 : vector<64x1xf32>
    %297 = vector.broadcast %296 : vector<64x1xf32> to vector<64x128xf32>
    %298 = arith.subf %290, %297 : vector<64x128xf32>
    %299 = arith.mulf %298, %298 : vector<64x128xf32>
    %cst_52 = arith.constant dense<0.000000e+00> : vector<64xf32>
    %300 = vector.multi_reduction <add>, %299, %cst_52 [1] : vector<64x128xf32> to vector<64xf32>
    %301 = vector.shape_cast %300 : vector<64xf32> to vector<64x1xf32>
    %cst_53 = arith.constant 1.280000e+02 : f32
    %302 = vector.broadcast %cst_53 : f32 to vector<64x1xf32>
    %303 = arith.divf %301, %302 : vector<64x1xf32>
    %304 = vector.broadcast %296 : vector<64x1xf32> to vector<64x128xf32>
    %305 = arith.subf %290, %304 : vector<64x128xf32>
    %cst_54 = arith.constant 9.99999974E-6 : f32
    %306 = vector.broadcast %cst_54 : f32 to vector<64x1xf32>
    %307 = arith.addf %303, %306 : vector<64x1xf32>
    %308 = math.rsqrt %307 : vector<64x1xf32>
    %309 = vector.broadcast %308 : vector<64x1xf32> to vector<64x128xf32>
    %310 = arith.mulf %305, %309 : vector<64x128xf32>
    %311 = vector.broadcast %291 : vector<1x128xf32> to vector<64x128xf32>
    %312 = arith.mulf %310, %311 : vector<64x128xf32>
    %313 = vector.broadcast %292 : vector<1x128xf32> to vector<64x128xf32>
    %314 = arith.addf %312, %313 : vector<64x128xf32>
    %315 = arith.truncf %314 : vector<64x128xf32> to vector<64x128xbf16>
    %c0_55 = arith.constant 0 : index
    %c0_56 = arith.constant 0 : index
    %316 = vector.load %arg6[%c0_55, %c0_56] : memref<128x256xbf16, #tpu.memory_space<vmem>>, vector<128x256xbf16>
    %cst_57 = arith.constant dense<0.000000e+00> : vector<64x256xf32>
    %317 = tpu.matmul %315, %316, %cst_57 {dimension_numbers = #tpu.dot_dimension_numbers<[1], [0], [0], [1], [0, 0, 1, 1], [], []>} : vector<64x128xbf16>, vector<128x256xbf16>, vector<64x256xf32> -> vector<64x256xf32>
    %c0_58 = arith.constant 0 : index
    %c0_59 = arith.constant 0 : index
    %318 = vector.load %arg7[%c0_58, %c0_59] : memref<1x256xf32, #tpu.memory_space<vmem>>, vector<1x256xf32>
    %319 = vector.broadcast %318 : vector<1x256xf32> to vector<64x256xf32>
    %320 = arith.addf %317, %319 : vector<64x256xf32>
    %cst_60 = arith.constant 5.000000e-01 : f32
    %321 = vector.broadcast %cst_60 : f32 to vector<64x256xf32>
    %322 = arith.mulf %321, %320 : vector<64x256xf32>
    %cst_61 = arith.constant 0.707106769 : f32
    %323 = vector.broadcast %cst_61 : f32 to vector<64x256xf32>
    %324 = arith.mulf %320, %323 : vector<64x256xf32>
    %325 = math.erf %324 : vector<64x256xf32>
    %cst_62 = arith.constant 1.000000e+00 : f32
    %326 = vector.broadcast %cst_62 : f32 to vector<64x256xf32>
    %327 = arith.addf %326, %325 : vector<64x256xf32>
    %328 = arith.mulf %322, %327 : vector<64x256xf32>
    %329 = arith.truncf %328 : vector<64x256xf32> to vector<64x256xbf16>
    %c0_63 = arith.constant 0 : index
    %c0_64 = arith.constant 0 : index
    %330 = vector.load %arg8[%c0_63, %c0_64] : memref<256x128xbf16, #tpu.memory_space<vmem>>, vector<256x128xbf16>
    %cst_65 = arith.constant dense<0.000000e+00> : vector<64x128xf32>
    %331 = tpu.matmul %329, %330, %cst_65 {dimension_numbers = #tpu.dot_dimension_numbers<[1], [0], [0], [1], [0, 0, 1, 1], [], []>} : vector<64x256xbf16>, vector<256x128xbf16>, vector<64x128xf32> -> vector<64x128xf32>
    %332 = vector.extract_strided_slice %2 {offsets = [26, 0], sizes = [1, 128], strides = [1, 1]} : vector<32x128xf32> to vector<1x128xf32>
    %333 = vector.broadcast %332 : vector<1x128xf32> to vector<64x128xf32>
    %334 = arith.addf %331, %333 : vector<64x128xf32>
    %335 = arith.addf %334, %290 : vector<64x128xf32>
    %336 = vector.shape_cast %335 : vector<64x128xf32> to vector<4x16x128xf32>
    %c0_66 = arith.constant 0 : index
    %c0_67 = arith.constant 0 : index
    %c0_68 = arith.constant 0 : index
    %337 = vector.load %arg9[%c0_66, %c0_67, %c0_68] : memref<4x16x128xf32, #tpu.memory_space<vmem>>, vector<4x16x128xf32>
    tpu.vector_store %arg9[%c0_66, %c0_67, %c0_68], %336 {strides = array<i32>} : memref<4x16x128xf32, #tpu.memory_space<vmem>>, vector<4x16x128xf32>,
    return
  }
  func.func @transform_0(%arg0: i32) -> (i32, i32, i32) {
    %c0_i32 = arith.constant 0 : i32
    %c0_i32_0 = arith.constant 0 : i32
    %c0_i32_1 = arith.constant 0 : i32
    return %arg0, %c0_i32, %c0_i32_0 : i32, i32, i32
  }
  func.func @transform_1(%arg0: i32) -> (i32, i32) {
    %c0_i32 = arith.constant 0 : i32
    %c0_i32_0 = arith.constant 0 : i32
    %c0_i32_1 = arith.constant 0 : i32
    return %c0_i32, %c0_i32_0 : i32, i32
  }
  func.func @transform_2(%arg0: i32) -> (i32, i32) {
    %c0_i32 = arith.constant 0 : i32
    %c0_i32_0 = arith.constant 0 : i32
    %c0_i32_1 = arith.constant 0 : i32
    return %c0_i32, %c0_i32_0 : i32, i32
  }
  func.func @transform_3(%arg0: i32) -> (i32, i32) {
    %c0_i32 = arith.constant 0 : i32
    %c0_i32_0 = arith.constant 0 : i32
    %c0_i32_1 = arith.constant 0 : i32
    return %c0_i32, %c0_i32_0 : i32, i32
  }
  func.func @transform_4(%arg0: i32) -> (i32, i32) {
    %c0_i32 = arith.constant 0 : i32
    %c0_i32_0 = arith.constant 0 : i32
    %c0_i32_1 = arith.constant 0 : i32
    return %c0_i32, %c0_i32_0 : i32, i32
  }
  func.func @transform_5(%arg0: i32) -> (i32, i32) {
    %c0_i32 = arith.constant 0 : i32
    %c0_i32_0 = arith.constant 0 : i32
    %c0_i32_1 = arith.constant 0 : i32
    return %c0_i32, %c0_i32_0 : i32, i32
  }
  func.func @transform_6(%arg0: i32) -> (i32, i32) {
    %c0_i32 = arith.constant 0 : i32
    %c0_i32_0 = arith.constant 0 : i32
    %c0_i32_1 = arith.constant 0 : i32
    return %c0_i32, %c0_i32_0 : i32, i32
  }
  func.func @transform_7(%arg0: i32) -> (i32, i32) {
    %c0_i32 = arith.constant 0 : i32
    %c0_i32_0 = arith.constant 0 : i32
    %c0_i32_1 = arith.constant 0 : i32
    return %c0_i32, %c0_i32_0 : i32, i32
  }
  func.func @transform_8(%arg0: i32) -> (i32, i32, i32) {
    %c0_i32 = arith.constant 0 : i32
    %c0_i32_0 = arith.constant 0 : i32
    %c0_i32_1 = arith.constant 0 : i32
    return %arg0, %c0_i32, %c0_i32_0 : i32, i32, i32
  }
}

</mosaic_0001>

<bundles_post_ra>
// kernel: tpu_custom_call.1
= control target key start
LH: loop header
LB: loop body
LE: loop exit
PB: predicated region body
PF: predicated region fallthrough
CT: control target
= control target key end

     0   :  { %13 = vsyncpa [#allocation3], 0  ;;  %s4720_s0 = inlined_call_operand.hbm [shape: f32[4,16,128], index: 0, kind: input, shape index: {}]   ;;  %s4721_s1 = inlined_call_operand.hbm [shape: f32[32,128], index: 1, kind: input, shape index: {}]   ;;  %s4722_s2 = inlined_call_operand.hbm [shape: bf16[128,256], index: 2, kind: input, shape index: {}]   ;;  %s4723_s3 = inlined_call_operand.hbm [shape: bf16[128,128], index: 3, kind: input, shape index: {}]   ;;  %s4724_s4 = inlined_call_operand.hbm [shape: bf16[128,128], index: 4, kind: input, shape index: {}]   ;;  %s4725_s5 = inlined_call_operand.hbm [shape: bf16[128,256], index: 5, kind: input, shape index: {}]   ;;  %s4726_s6 = inlined_call_operand.hbm [shape: f32[1,256], index: 6, kind: input, shape index: {}]   ;;  %s4727_s7 = inlined_call_operand.hbm [shape: bf16[256,128], index: 7, kind: input, shape index: {}]   ;;  %s4728_s8 = inlined_call_operand.hbm [shape: f32[4,16,128], index: 8, kind: output, shape index: {}]  }
   0x1   :  { %14 = vsyncpa [#allocation6], 0 }
   0x2   :  { %15 = vsyncpa [#allocation9], 0 }
   0x3   :  { %16 = vsyncpa [#allocation12], 0 }
   0x4   :  { %17 = vsyncpa [#allocation15], 0 }
   0x5   :  { %18 = vsyncpa [#allocation4], 0  ;;  %s3160_s27 = smov [#allocation5]   ;;  %s3161_s29 = smov [#allocation8]  }
   0x6   :  { %s36_s28 = sshll.u32 %s3160_s27, 4  ;;  %s60_s30 = sshll.u32 %s3161_s29, 4  ;;  %s37_s28 = int_to_ptr.vmem [resolvable:$true] %s36_s28  ;;  %s3222_s30 = int_to_ptr.vmem [resolvable:$true] %s60_s30 }
   0x7   :  { %s2950_s11 = scalar_lea.hbm %s4721_s1, 512 }
   0x8   :  { %p2951_p0 = scmp.ne.s32.totalorder %s4721_s1, %s2950_s11  ;;  %p2954_p1 = scmp.lt.u32.totalorder %s2950_s11, %s4721_s1 }
   0xa   :  { %p2956_p2 = pnand %p2954_p1, %p2951_p0 }
   0xc   :  { %2959 = shalt.err (!%p2956_p2)
}
   0xd   :  { %s2960_s16 = scalar_lea.vmem %s37_s28, 512  ;;  %p2965_p4 = scmp.lt.s32.totalorder %s37_s28, %s37_s28 }
   0xe   :  { %p2961_p3 = scmp.ne.s32.totalorder %s37_s28, %s2960_s16  ;;  %p2966_p5 = scmp.lt.s32.totalorder %s2960_s16, %s2960_s16 }
  0x10   :  { %p2967_p6 = por %p2966_p5, %p2965_p4 }
  0x12   :  { %p2968_p7 = pnand %p2967_p6, %p2961_p3 }
  0x14   :  { %2971 = shalt.err (!%p2968_p7)
}
  0x15   :  { %s3162_s17 = smov 128   ;;  %s3163_s18 = smov 8  }
  0x16   :  { %42 = dma.hbm_to_vmem [thread:$0]  %s4721_s1, 512, %s37_s28, [#allocation6], %s3162_s17, %s3162_s17, %s3163_s18  }
  0x17   :  { %s2972_s23 = scalar_lea.hbm %s4723_s3, 1024 }
  0x18   :  { %p2973_p8 = scmp.ne.s32.totalorder %s4723_s3, %s2972_s23  ;;  %p2976_p9 = scmp.lt.u32.totalorder %s2972_s23, %s4723_s3 }
  0x1a   :  { %p2978_p10 = pnand %p2976_p9, %p2973_p8 }
  0x1c   :  { %2981 = shalt.err (!%p2978_p10)
}
  0x1d   :  { %s2982_s29 = scalar_lea.vmem %s3222_s30, 1024  ;;  %p2987_p12 = scmp.lt.s32.totalorder %s3222_s30, %s3222_s30 }
  0x1e   :  { %p2983_p11 = scmp.ne.s32.totalorder %s3222_s30, %s2982_s29  ;;  %p2988_p13 = scmp.lt.s32.totalorder %s2982_s29, %s2982_s29 }
  0x20   :  { %p2989_p0 = por %p2988_p13, %p2987_p12 }
  0x22   :  { %p2990_p1 = pnand %p2989_p0, %p2983_p11 }
  0x24   :  { %2993 = shalt.err (!%p2990_p1)
}
  0x25   :  { %s3164_s1 = smov 64   ;;  %s3165_s28 = smov 4  }
  0x26   :  { %66 = dma.hbm_to_vmem [thread:$0]  %s4723_s3, 1024, %s3222_s30, [#allocation9], %s3164_s1, %s3164_s1, %s3165_s28  }
  0x27   :  { %s3166_s11 = smov [#allocation11]   ;;  %s3167_s13 = smov [#allocation2]  }
  0x28   :  { %s84_s12 = sshll.u32 %s3166_s11, 4  ;;  %s24_s14 = sshll.u32 %s3167_s13, 4  ;;  %s85_s12 = int_to_ptr.vmem [resolvable:$true] %s84_s12  ;;  %s3259_s14 = int_to_ptr.vmem [resolvable:$true] %s24_s14 }
  0x29   :  { %s2994_s19 = scalar_lea.hbm %s4725_s5, 2048 }
  0x2a   :  { %p2995_p2 = scmp.ne.s32.totalorder %s4725_s5, %s2994_s19  ;;  %p2998_p3 = scmp.lt.u32.totalorder %s2994_s19, %s4725_s5 }
  0x2c   :  { %p3000_p4 = pnand %p2998_p3, %p2995_p2 }
  0x2e   :  { %3003 = shalt.err (!%p3000_p4)
}
  0x2f   :  { %s3004_s3 = scalar_lea.vmem %s85_s12, 2048  ;;  %p3009_p6 = scmp.lt.s32.totalorder %s85_s12, %s85_s12 }
  0x30   :  { %p3005_p5 = scmp.ne.s32.totalorder %s85_s12, %s3004_s3  ;;  %p3010_p7 = scmp.lt.s32.totalorder %s3004_s3, %s3004_s3 }
  0x32   :  { %p3011_p8 = por %p3010_p7, %p3009_p6 }
  0x34   :  { %p3012_p9 = pnand %p3011_p8, %p3005_p5 }
  0x36   :  { %3015 = shalt.err (!%p3012_p9)
}
  0x37   :  { %90 = dma.hbm_to_vmem [thread:$0]  %s4725_s5, 2048, %s85_s12, [#allocation12], %s3162_s17, %s3162_s17, %s3163_s18  }
  0x38   :  { %s3016_s27 = scalar_lea.hbm %s4720_s0, 1024 }
  0x39   :  { %p3017_p10 = scmp.ne.s32.totalorder %s4720_s0, %s3016_s27  ;;  %p3020_p11 = scmp.lt.u32.totalorder %s3016_s27, %s4720_s0 }
  0x3b   :  { %p3022_p12 = pnand %p3020_p11, %p3017_p10 }
  0x3d   :  { %3025 = shalt.err (!%p3022_p12)
}
  0x3e   :  { %s3026_s13 = scalar_lea.vmem %s3259_s14, 1024  ;;  %p3031_p0 = scmp.lt.s32.totalorder %s3259_s14, %s3259_s14 }
  0x3f   :  { %p3027_p13 = scmp.ne.s32.totalorder %s3259_s14, %s3026_s13  ;;  %p3032_p1 = scmp.lt.s32.totalorder %s3026_s13, %s3026_s13 }
  0x41   :  { %p3033_p2 = por %p3032_p1, %p3031_p0 }
  0x43   :  { %p3034_p3 = pnand %p3033_p2, %p3027_p13 }
  0x45   :  { %3037 = shalt.err (!%p3034_p3)
}
  0x46   :  { %30 = dma.hbm_to_vmem [thread:$0]  %s4720_s0, 1024, %s3259_s14, [#allocation3], %s3162_s17, %s3162_s17, %s3163_s18  }
  0x47   :  { %s3168_s15 = smov [#allocation7]   ;;  %s3169_s19 = smov [#allocation10]  }
  0x48   :  { %s48_s16 = sshll.u32 %s3168_s15, 4  ;;  %s72_s20 = sshll.u32 %s3169_s19, 4  ;;  %s49_s16 = int_to_ptr.vmem [resolvable:$true] %s48_s16  ;;  %s3296_s20 = int_to_ptr.vmem [resolvable:$true] %s72_s20 }
  0x49   :  { %s3038_s23 = scalar_lea.hbm %s4722_s2, 2048 }
  0x4a   :  { %p3039_p4 = scmp.ne.s32.totalorder %s4722_s2, %s3038_s23  ;;  %p3042_p5 = scmp.lt.u32.totalorder %s3038_s23, %s4722_s2 }
  0x4c   :  { %p3044_p6 = pnand %p3042_p5, %p3039_p4 }
  0x4e   :  { %3047 = shalt.err (!%p3044_p6)
}
  0x4f   :  { %s3048_s0 = scalar_lea.vmem %s49_s16, 2048  ;;  %p3053_p8 = scmp.lt.s32.totalorder %s49_s16, %s49_s16 }
  0x50   :  { %p3049_p7 = scmp.ne.s32.totalorder %s49_s16, %s3048_s0  ;;  %p3054_p9 = scmp.lt.s32.totalorder %s3048_s0, %s3048_s0 }
  0x52   :  { %p3055_p10 = por %p3054_p9, %p3053_p8 }
  0x54   :  { %p3056_p11 = pnand %p3055_p10, %p3049_p7 }
  0x56   :  { %3059 = shalt.err (!%p3056_p11)
}
  0x57   :  { %54 = dma.hbm_to_vmem [thread:$0]  %s4722_s2, 2048, %s49_s16, [#allocation6], %s3162_s17, %s3162_s17, %s3163_s18  }
  0x58   :  { %s3060_s9 = scalar_lea.hbm %s4724_s4, 1024 }
  0x59   :  { %p3061_p12 = scmp.ne.s32.totalorder %s4724_s4, %s3060_s9  ;;  %p3064_p13 = scmp.lt.u32.totalorder %s3060_s9, %s4724_s4 }
  0x5b   :  { %p3066_p0 = pnand %p3064_p13, %p3061_p12 }
  0x5d   :  { %3069 = shalt.err (!%p3066_p0)
}
  0x5e   :  { %s3070_s12 = scalar_lea.vmem %s3296_s20, 1024  ;;  %p3075_p2 = scmp.lt.s32.totalorder %s3296_s20, %s3296_s20 }
  0x5f   :  { %p3071_p1 = scmp.ne.s32.totalorder %s3296_s20, %s3070_s12  ;;  %p3076_p3 = scmp.lt.s32.totalorder %s3070_s12, %s3070_s12 }
  0x61   :  { %p3077_p4 = por %p3076_p3, %p3075_p2 }
  0x63   :  { %p3078_p5 = pnand %p3077_p4, %p3071_p1 }
  0x65   :  { %3081 = shalt.err (!%p3078_p5)
}
  0x66   :  { %78 = dma.hbm_to_vmem [thread:$0]  %s4724_s4, 1024, %s3296_s20, [#allocation9], %s3164_s1, %s3164_s1, %s3165_s28  }
  0x67   :  { %s3170_s16 = smov [#allocation13]   ;;  %s3171_s21 = smov [#allocation14]  }
  0x68   :  { %s97_s19 = sshll.u32 %s3170_s16, 4  ;;  %s106_s22 = sshll.u32 %s3171_s21, 4  ;;  %s98_s19 = int_to_ptr.vmem [resolvable:$true] %s97_s19  ;;  %s3333_s22 = int_to_ptr.vmem [resolvable:$true] %s106_s22 }
  0x69   :  { %s3082_s30 = scalar_lea.hbm %s4726_s6, 32 }
  0x6a   :  { %p3083_p6 = scmp.ne.s32.totalorder %s4726_s6, %s3082_s30  ;;  %p3086_p7 = scmp.lt.u32.totalorder %s3082_s30, %s4726_s6 }
  0x6c   :  { %p3088_p8 = pnand %p3086_p7, %p3083_p6 }
  0x6e   :  { %3091 = shalt.err (!%p3088_p8)
}
  0x6f   :  { %s3092_s4 = scalar_lea.vmem %s98_s19, 32  ;;  %p3097_p10 = scmp.lt.s32.totalorder %s98_s19, %s98_s19 }
  0x70   :  { %p3093_p9 = scmp.ne.s32.totalorder %s98_s19, %s3092_s4  ;;  %p3098_p11 = scmp.lt.s32.totalorder %s3092_s4, %s3092_s4 }
  0x72   :  { %p3099_p12 = por %p3098_p11, %p3097_p10 }
  0x74   :  { %p3100_p13 = pnand %p3099_p12, %p3093_p9 }
  0x76   :  { %3103 = shalt.err (!%p3100_p13)
}
  0x77   :  { %100 = dma.hbm_to_vmem [thread:$0]  %s4726_s6, 32, %s98_s19, [#allocation12]  }
  0x78   :  { %s3104_s9 = scalar_lea.hbm %s4727_s7, 2048 }
  0x79   :  { %p3105_p0 = scmp.ne.s32.totalorder %s4727_s7, %s3104_s9  ;;  %p3108_p1 = scmp.lt.u32.totalorder %s3104_s9, %s4727_s7 }
  0x7b   :  { %p3110_p2 = pnand %p3108_p1, %p3105_p0 }
  0x7d   :  { %3113 = shalt.err (!%p3110_p2)
}
  0x7e   :  { %s3114_s12 = scalar_lea.vmem %s3333_s22, 2048  ;;  %p3119_p4 = scmp.lt.s32.totalorder %s3333_s22, %s3333_s22 }
  0x7f   :  { %p3115_p3 = scmp.ne.s32.totalorder %s3333_s22, %s3114_s12  ;;  %p3120_p5 = scmp.lt.s32.totalorder %s3114_s12, %s3114_s12 }
  0x81   :  { %p3121_p6 = por %p3120_p5, %p3119_p4 }
  0x83   :  { %p3122_p7 = pnand %p3121_p6, %p3115_p3 }
  0x85   :  { %3125 = shalt.err (!%p3122_p7)
}
  0x86   :  { %112 = dma.hbm_to_vmem [thread:$0]  %s4727_s7, 2048, %s3333_s22, [#allocation15], %s3164_s1, %s3164_s1, %s3165_s28  }
  0x87   :  { %3148 = dma.done.wait [#allocation3], 1024  }
  0x88   :  { %3149 = vsyncadd [#allocation3], 4294966272 }
  0x89   :  { %3150 = dma.done.wait [#allocation6], 2560  }
  0x8a   :  { %3151 = vsyncadd [#allocation6], 4294964736 }
  0x8b   :  { %3152 = dma.done.wait [#allocation9], 2048  }
  0x8c   :  { %3153 = vsyncadd [#allocation9], 4294965248 }
  0x8d   :  { %3154 = dma.done.wait [#allocation12], 2080  }
  0x8e   :  { %3155 = vsyncadd [#allocation12], 4294965216 }
  0x8f   :  { %3156 = dma.done.wait [#allocation15], 2048  }
  0x90   :  { %3157 = vsyncadd [#allocation15], 4294965248  ;;  %v138_v0 = vld [vmem:[#allocation2] sm:$0xff]  ;;  %v140_v1 = vld [vmem:[#allocation2 + $0x10] sm:$0xff]  ;;  %v4729_v56 = vmov 0   ;;  %v239_v59 = vlaneseq  ;;  %s3176_s7 = smov [#allocation16]  }
  0x91   :  { %150 = vadd.xlane.f32.xlu0 %v138_v0  ;;  %154 = vadd.xlane.f32.xlu1 %v140_v1  ;;  %v139_v2 = vld [vmem:[#allocation2 + $0x8] sm:$0xff]  ;;  %v141_v3 = vld [vmem:[#allocation2 + $0x18] sm:$0xff]  ;;  %v142_v4 = vld [vmem:[#allocation2 + $0x20] sm:$0xff]  ;;  %s2508_s1 = sshll.u32 %s3176_s7, 4  ;;  %s2509_s1 = int_to_ptr.vmem [resolvable:$true] %s2508_s1 }
  0x92   :  { %v143_v5 = vld [vmem:[#allocation2 + $0x28] sm:$0xff]  ;;  %v144_v6 = vld [vmem:[#allocation2 + $0x30] sm:$0xff]  ;;  %v145_v7 = vld [vmem:[#allocation2 + $0x38] sm:$0xff]  ;;  %395 = vmatprep.mubr.bf16.mxu0 %v4729_v56  ;;  %2741 = vset.pattern.permute.xlu0 %v4729_v56  ;;  %s3126_s28 = scalar_lea.vmem %s2509_s1, 1024  ;;  %p3131_p9 = scmp.lt.s32.totalorder %s2509_s1, %s2509_s1 }
  0x93   :  { %v2756_v8 = vld [vmem:[#allocation7 + $0x4] ss:$8 sps:$4 sm:$0xff]   ;;  %v2758_v9 = vld [vmem:[#allocation7] ss:$8 sps:$4 sm:$0xff]   ;;  %v2759_v10 = vld [vmem:[#allocation7 + $0x14] ss:$8 sps:$4 sm:$0xff]   ;;  %2742 = vset.pattern.permute.xlu1 %v4729_v56  ;;  %p3127_p8 = scmp.ne.s32.totalorder %s2509_s1, %s3126_s28  ;;  %p3132_p10 = scmp.lt.s32.totalorder %s3126_s28, %s3126_s28 }
  0x94   :  { %363 = vmatprep.subr.bf16.mxu0 %v2756_v8  ;;  %v2761_v43 = vld [vmem:[#allocation7 + $0x10] ss:$8 sps:$4 sm:$0xff]   ;;  %v2762_v44 = vld [vmem:[#allocation7 + $0x24] ss:$8 sps:$4 sm:$0xff]   ;;  %v2764_v45 = vld [vmem:[#allocation7 + $0x20] ss:$8 sps:$4 sm:$0xff]  }
  0x95   :  { %152 = vadd.xlane.f32.xlu0 %v139_v2  ;;  %156 = vadd.xlane.f32.xlu1 %v141_v3  ;;  %v2765_v46 = vld [vmem:[#allocation7 + $0x34] ss:$8 sps:$4 sm:$0xff]   ;;  %v2767_v47 = vld [vmem:[#allocation7 + $0x30] ss:$8 sps:$4 sm:$0xff]   ;;  %v2768_v48 = vld [vmem:[#allocation7 + $0x44] ss:$8 sps:$4 sm:$0xff]   ;;  %p3133_p11 = por %p3132_p10, %p3131_p9 }
  0x96   :  { %364 = vmatpush1.bf16.msra.mxu0 %v2758_v9  ;;  %v2770_v49 = vld [vmem:[#allocation7 + $0x40] ss:$8 sps:$4 sm:$0xff]   ;;  %v2771_v50 = vld [vmem:[#allocation7 + $0x54] ss:$8 sps:$4 sm:$0xff]   ;;  %v2773_v51 = vld [vmem:[#allocation7 + $0x50] ss:$8 sps:$4 sm:$0xff]  }
  0x97   :  { %365 = vmatprep.subr.bf16.mxu0 %v2759_v10  ;;  %v2774_v52 = vld [vmem:[#allocation7 + $0x64] ss:$8 sps:$4 sm:$0xff]   ;;  %v2776_v53 = vld [vmem:[#allocation7 + $0x60] ss:$8 sps:$4 sm:$0xff]   ;;  %v2777_v54 = vld [vmem:[#allocation7 + $0x74] ss:$8 sps:$4 sm:$0xff]   ;;  %p3134_p12 = pnand %p3133_p11, %p3127_p8 }
  0x98   :  { %v2779_v55 = vld [vmem:[#allocation7 + $0x70] ss:$8 sps:$4 sm:$0xff]  }
  0x99   :  { %158 = vadd.xlane.f32.xlu0 %v142_v4  ;;  %160 = vadd.xlane.f32.xlu1 %v143_v5  ;;  %v3407_v9 = vld [vmem:[#allocation5 + $0x10] sm:$0xff] }
  0x9a   :  { %366 = vmatpush1.bf16.msra.mxu0 %v2761_v43 }
  0x9b   :  { %367 = vmatprep.subr.bf16.mxu0 %v2762_v44 }
  0x9d   :  { %162 = vadd.xlane.f32.xlu0 %v144_v6  ;;  %164 = vadd.xlane.f32.xlu1 %v145_v7 }
  0x9e   :  { %368 = vmatpush1.bf16.msra.mxu0 %v2764_v45 }
  0x9f   :  { %369 = vmatprep.subr.bf16.mxu0 %v2765_v46 }
  0xa2   :  { %370 = vmatpush1.bf16.msra.mxu0 %v2767_v47 }
  0xa3   :  { %371 = vmatprep.subr.bf16.mxu0 %v2768_v48 }
  0xa6   :  { %372 = vmatpush1.bf16.msra.mxu0 %v2770_v49 }
  0xa7   :  { %373 = vmatprep.subr.bf16.mxu0 %v2771_v50 }
  0xaa   :  { %374 = vmatpush1.bf16.msra.mxu0 %v2773_v51 }
  0xab   :  { %375 = vmatprep.subr.bf16.mxu0 %v2774_v52 }
  0xae   :  { %376 = vmatpush1.bf16.msra.mxu0 %v2776_v53 }
  0xaf   :  { %377 = vmatprep.subr.bf16.mxu0 %v2777_v54 }
  0xb2   :  { %378 = vmatpush1.bf16.msra.mxu0 %v2779_v55 }
 0x11e   :  { %v151_v11 = vpop.xlane.xlu0 %150  ;;  %v155_v12 = vpop.xlane.xlu1 %154 }
 0x11f   :  { %v167_v13 = vmul.f32 0.0078125, %v151_v11  ;;  %v169_v14 = vmul.f32 0.0078125, %v155_v12 }
 0x121   :  { %v3367_v15 = vsub.f32 %v138_v0, %v167_v13  ;;  %v3369_v16 = vsub.f32 %v140_v1, %v169_v14  ;;  %v3402_v1 = vshrl.u32 %v239_v59, 7 }
 0x122   :  { %v153_v17 = vpop.xlane.xlu0 %152  ;;  %v157_v18 = vpop.xlane.xlu1 %156 }
 0x123   :  { %v168_v19 = vmul.f32 0.0078125, %v153_v17  ;;  %v183_v20 = vmul.f32 %v3367_v15, %v3367_v15  ;;  %v170_v21 = vmul.f32 0.0078125, %v157_v18  ;;  %v185_v24 = vmul.f32 %v3369_v16, %v3369_v16 }
 0x124   :  { %v3410_v12 = vsub.s32 3, %v3402_v1  ;;  %vm651_vm0 = vcmp.lt.s32.totalorder %v3402_v1, 3  ;;  %vm696_vm1 = vcmp.lt.s32.totalorder %v3402_v1, 2  ;;  %vm609_vm2 = vcmp.ge.s32.totalorder %v3402_v1, 1 }
 0x125   :  { %v3373_v22 = vsub.f32 %v139_v2, %v168_v19  ;;  %191 = vadd.xlane.f32.xlu0 %v183_v20  ;;  %v3375_v23 = vsub.f32 %v141_v3, %v170_v21  ;;  %v3416_v19 = vld [vmem:[#allocation5 + $0x18] sm:$0xff]  ;;  %vm619_vm3 = vcmp.ge.s32.totalorder %v3402_v1, 2  ;;  %vm627_vm4 = vcmp.ge.s32.totalorder %v3402_v1, 3 }
 0x126   :  { %v159_v25 = vpop.xlane.xlu0 %158  ;;  %v161_v26 = vpop.xlane.xlu1 %160  ;;  %vm741_vm7 = vcmp.lt.s32.totalorder %v3402_v1, 1  ;;  %vm806_vm8 = vcmp.lt.s32.totalorder %v3402_v1, 7  ;;  %vm851_vm9 = vcmp.lt.s32.totalorder %v3402_v1, 6  ;;  %vm896_vm11 = vcmp.lt.s32.totalorder %v3402_v1, 5 }
 0x127   :  { %v171_v27 = vmul.f32 0.0078125, %v159_v25  ;;  %v184_v28 = vmul.f32 %v3373_v22, %v3373_v22  ;;  %v172_v29 = vmul.f32 0.0078125, %v161_v26  ;;  %v186_v32 = vmul.f32 %v3375_v23, %v3375_v23 }
 0x128   :  { %v3421_v25 = vrot.slane %v3407_v9, %v3410_v12  ;;  %vm635_vm12 = vcmp.ge.s32.totalorder %v3402_v1, 4  ;;  %vm1049_vm14 = vcmp.lt.s32.totalorder %v3402_v1, 4 }
 0x129   :  { %v3381_v30 = vsub.f32 %v142_v4, %v171_v27  ;;  %195 = vadd.xlane.f32.xlu0 %v185_v24  ;;  %193 = vadd.xlane.f32.xlu1 %v184_v28  ;;  %v3383_v31 = vsub.f32 %v143_v5, %v172_v29  ;;  %v3424_v28 = vsub.s32 4, %v3402_v1 }
 0x12a   :  { %v163_v33 = vpop.xlane.xlu0 %162  ;;  %v165_v34 = vpop.xlane.xlu1 %164 }
 0x12b   :  { %v173_v35 = vmul.f32 0.0078125, %v163_v33  ;;  %v187_v36 = vmul.f32 %v3381_v30, %v3381_v30  ;;  %v174_v37 = vmul.f32 0.0078125, %v165_v34  ;;  %v188_v40 = vmul.f32 %v3383_v31, %v3383_v31  ;;  %4773 = vst [vmem:[#allocation24_spill] sm:$0xff] %v3424_v28 }
 0x12d   :  { %v3389_v38 = vsub.f32 %v144_v6, %v173_v35  ;;  %197 = vadd.xlane.f32.xlu1 %v186_v32  ;;  %199 = vadd.xlane.f32.xlu0 %v187_v36  ;;  %v3391_v39 = vsub.f32 %v145_v7, %v174_v37  ;;  %v3405_v7 = vsub.s32 2, %v3402_v1  ;;  %v3429_v32 = vrot.slane %v3416_v19, %v3410_v12 }
 0x12f   :  { %v189_v41 = vmul.f32 %v3389_v38, %v3389_v38  ;;  %v190_v42 = vmul.f32 %v3391_v39, %v3391_v39  ;;  %4772 = vst [vmem:[#allocation23_spill] sm:$0xff] %v3405_v7  ;;  %v3414_v14 = vrot.slane %v3407_v9, %v3405_v7 }
 0x131   :  { %201 = vadd.xlane.f32.xlu1 %v188_v40  ;;  %203 = vadd.xlane.f32.xlu0 %v189_v41  ;;  %v3436_v41 = vrot.slane %v3416_v19, %v3424_v28 }
 0x135   :  { %205 = vadd.xlane.f32.xlu1 %v190_v42 }
 0x1b2   :  { %v192_v57 = vpop.xlane.xlu0 %191 }
 0x1b3   :  { %v207_v58 = vmul.f32 0.0078125, %v192_v57  ;;  %v3452_v57 = vsub.s32 5, %v3402_v1 }
 0x1b5   :  { %v215_v60 = vadd.f32 1e-05, %v207_v58 }
 0x1b6   :  { %v194_v61 = vpop.xlane.xlu1 %193  ;;  %v196_v62 = vpop.xlane.xlu0 %195 }
 0x1b7   :  { %2836 = vrsqrt.f32 %v215_v60  ;;  %v208_v63 = vmul.f32 0.0078125, %v194_v61  ;;  %v209_v0 = vmul.f32 0.0078125, %v196_v62  ;;  %v539_v62 = vrot.slane %v3416_v19, %v3452_v57 }
 0x1b9   :  { %v216_v2 = vadd.f32 1e-05, %v208_v63  ;;  %v217_v3 = vadd.f32 1e-05, %v209_v0 }
 0x1ba   :  { %v198_v4 = vpop.xlane.xlu1 %197  ;;  %v200_v6 = vpop.xlane.xlu0 %199 }
 0x1bb   :  { %2838 = vrsqrt.f32 %v216_v2  ;;  %v210_v5 = vmul.f32 0.0078125, %v198_v4  ;;  %v211_v10 = vmul.f32 0.0078125, %v200_v6 }
 0x1bc   :  { %2840 = vrsqrt.f32 %v217_v3 }
 0x1bd   :  { %v218_v8 = vadd.f32 1e-05, %v210_v5  ;;  %v219_v21 = vadd.f32 1e-05, %v211_v10 }
 0x1be   :  { %v202_v11 = vpop.xlane.xlu1 %201  ;;  %v204_v26 = vpop.xlane.xlu0 %203 }
 0x1bf   :  { %2842 = vrsqrt.f32 %v218_v8  ;;  %v212_v13 = vmul.f32 0.0078125, %v202_v11  ;;  %v213_v35 = vmul.f32 0.0078125, %v204_v26 }
 0x1c1   :  { %v2837_v17 = vpop.eup %2836  ;;  %v220_v18 = vadd.f32 1e-05, %v212_v13  ;;  %v221_v46 = vadd.f32 1e-05, %v213_v35 }
 0x1c2   :  { %v231_v20 = vmul.f32 %v2837_v17, %v3367_v15  ;;  %v206_v24 = vpop.xlane.xlu1 %205 }
 0x1c3   :  { %v214_v27 = vmul.f32 0.0078125, %v206_v24  ;;  %2844 = vrsqrt.f32 %v220_v18 }
 0x1c4   :  { %v243_v29 = vmul.f32 %v3414_v14, %v231_v20  ;;  %2846 = vrsqrt.f32 %v219_v21 }
 0x1c5   :  { %v2839_v33 = vpop.eup %2838  ;;  %v222_v40 = vadd.f32 1e-05, %v214_v27 }
 0x1c6   :  { %v2841_v15 = vpop.eup %2840  ;;  %v232_v34 = vmul.f32 %v2839_v33, %v3373_v22  ;;  %v255_v36 = vadd.f32 %v3421_v25, %v243_v29 }
 0x1c7   :  { %v233_v37 = vmul.f32 %v2841_v15, %v3369_v16  ;;  %2848 = vrsqrt.f32 %v222_v40 }
 0x1c8   :  { %v464_v42 = vmul.f32 %v3429_v32, %v255_v36  ;;  %v244_v43 = vmul.f32 %v3414_v14, %v232_v34  ;;  %v504_v16 = vmul.f32 %v3436_v41, %v255_v36  ;;  %2850 = vrsqrt.f32 %v221_v46 }
 0x1c9   :  { %v2843_v44 = vpop.eup %2842  ;;  %v245_v45 = vmul.f32 %v3414_v14, %v233_v37  ;;  %v3173_v46 = vmov 2  }
 0x1ca   :  { %v234_v22 = vmul.f32 %v2843_v44, %v3375_v23  ;;  %472 = vadd.xlane.f32.xlu0 %v464_v42  ;;  %v256_v47 = vadd.f32 %v3421_v25, %v244_v43  ;;  %v3482_v42 = vsub.s32 6, %v3402_v1 }
 0x1cb   :  { %v257_v50 = vadd.f32 %v3421_v25, %v245_v45 }
 0x1cc   :  { %v465_v48 = vmul.f32 %v3429_v32, %v256_v47  ;;  %v263_v49 = vpack.c.bf16 %v256_v47, %v255_v36  ;;  %v246_v51 = vmul.f32 %v3414_v14, %v234_v22  ;;  %v505_v53 = vmul.f32 %v3436_v41, %v256_v47  ;;  %4774 = vst [vmem:[#allocation25_spill] sm:$0xff] %v3482_v42 }
 0x1cd   :  { %v2845_v52 = vpop.eup %2844  ;;  %v466_v54 = vmul.f32 %v3429_v32, %v257_v50  ;;  %v506_v61 = vmul.f32 %v3436_v41, %v257_v50  ;;  %v541_v11 = vmul.f32 %v539_v62, %v256_v47  ;;  %v542_v13 = vmul.f32 %v539_v62, %v257_v50 }
 0x1ce   :  { %474 = vadd.xlane.f32.xlu1 %v465_v48  ;;  %512 = vadd.xlane.f32.xlu0 %v504_v16  ;;  %v2847_v23 = vpop.eup %2846  ;;  %v258_v55 = vadd.f32 %v3421_v25, %v246_v51  ;;  %v236_v58 = vmul.f32 %v2845_v52, %v3383_v31 }
 0x1cf   :  { %396 = vmatmul.mubr.bf16.vlgmr.msra.gmra.mrb[0].mxu0 %v263_v49  ;;  %v235_v59 = vmul.f32 %v2847_v23, %v3381_v30  ;;  %v540_v30 = vmul.f32 %v539_v62, %v255_v36  ;;  %v3174_v49 = vmov 1  }
 0x1d0   :  { %405 = vmatprep.mubr.bf16.mxu0 %v4729_v56  ;;  %v467_v60 = vmul.f32 %v3429_v32, %v258_v55  ;;  %v264_v0 = vpack.c.bf16 %v258_v55, %v257_v50  ;;  %v248_v2 = vmul.f32 %v3414_v14, %v236_v58  ;;  %v507_v4 = vmul.f32 %v3436_v41, %v258_v55 }
 0x1d1   :  { %v2849_v63 = vpop.eup %2848  ;;  %v247_v31 = vmul.f32 %v3414_v14, %v235_v59  ;;  %v543_v21 = vmul.f32 %v539_v62, %v258_v55 }
 0x1d2   :  { %514 = vadd.xlane.f32.xlu1 %v505_v53  ;;  %476 = vadd.xlane.f32.xlu0 %v466_v54  ;;  %v2851_v3 = vpop.eup %2850  ;;  %v238_v5 = vmul.f32 %v2849_v63, %v3391_v39  ;;  %v260_v6 = vadd.f32 %v3421_v25, %v248_v2 }
 0x1d3   :  { %v237_v8 = vmul.f32 %v2851_v3, %v3389_v38  ;;  %v259_v10 = vadd.f32 %v3421_v25, %v247_v31 }
 0x1d4   :  { %v250_v18 = vmul.f32 %v3414_v14, %v238_v5  ;;  %v469_v26 = vmul.f32 %v3429_v32, %v260_v6  ;;  %v545_v36 = vmul.f32 %v539_v62, %v260_v6 }
 0x1d5   :  { %v265_v17 = vpack.c.bf16 %v260_v6, %v259_v10  ;;  %v249_v20 = vmul.f32 %v3414_v14, %v237_v8  ;;  %v468_v39 = vmul.f32 %v3429_v32, %v259_v10  ;;  %v508_v27 = vmul.f32 %v3436_v41, %v259_v10 }
 0x1d6   :  { %478 = vadd.xlane.f32.xlu1 %v467_v60  ;;  %516 = vadd.xlane.f32.xlu0 %v506_v61  ;;  %v262_v24 = vadd.f32 %v3421_v25, %v250_v18  ;;  %v509_v14 = vmul.f32 %v3436_v41, %v260_v6  ;;  %v544_v35 = vmul.f32 %v539_v62, %v259_v10 }
 0x1d7   :  { %406 = vmatmul.mubr.bf16.gmra.mrb[4].mxu0 %v264_v0  ;;  %v261_v38 = vadd.f32 %v3421_v25, %v249_v20 }
 0x1d8   :  { %415 = vmatprep.mubr.bf16.mxu0 %v4729_v56  ;;  %v471_v15 = vmul.f32 %v3429_v32, %v262_v24  ;;  %v511_v25 = vmul.f32 %v3436_v41, %v262_v24  ;;  %v547_v40 = vmul.f32 %v539_v62, %v262_v24 }
 0x1d9   :  { %v266_v29 = vpack.c.bf16 %v262_v24, %v261_v38  ;;  %v470_v33 = vmul.f32 %v3429_v32, %v261_v38  ;;  %v510_v34 = vmul.f32 %v3436_v41, %v261_v38  ;;  %v546_v37 = vmul.f32 %v539_v62, %v261_v38 }
 0x1da   :  { %518 = vadd.xlane.f32.xlu1 %v507_v4  ;;  %548 = vadd.xlane.f32.xlu0 %v540_v30  ;;  %v3486_v32 = vrot.slane %v3416_v19, %v3482_v42 }
 0x1de   :  { %550 = vadd.xlane.f32.xlu1 %v541_v11  ;;  %552 = vadd.xlane.f32.xlu0 %v542_v13 }
 0x1df   :  { %416 = vmatmul.mubr.bf16.gmra.mrb[8].mxu0 %v265_v17 }
 0x1e0   :  { %425 = vmatprep.mubr.bf16.mxu0 %v4729_v56 }
 0x1e2   :  { %554 = vadd.xlane.f32.xlu1 %v543_v21  ;;  %480 = vadd.xlane.f32.xlu0 %v468_v39 }
 0x1e6   :  { %482 = vadd.xlane.f32.xlu1 %v469_v26  ;;  %520 = vadd.xlane.f32.xlu0 %v508_v27 }
 0x1e7   :  { %426 = vmatmul.mubr.bf16.gmra.mrb[12].mxu0 %v266_v29 }
 0x1ea   :  { %522 = vadd.xlane.f32.xlu1 %v509_v14  ;;  %484 = vadd.xlane.f32.xlu0 %v470_v33  ;;  %v146_v14 = vld [vmem:[#allocation5] sm:$0xff]  ;;  %v3520_v33 = vld [vmem:[#allocation5 + $0x8] sm:$0xff] }
 0x1ee   :  { %486 = vadd.xlane.f32.xlu1 %v471_v15  ;;  %524 = vadd.xlane.f32.xlu0 %v510_v34  ;;  %v3523_v15 = vsub.s32 0, %v3402_v1  ;;  %v3526_v34 = vsub.s32 1, %v3402_v1 }
 0x1f0   :  { %4775 = vst [vmem:[#allocation26_spill] sm:$0xff] %v3523_v15  ;;  %4776 = vst [vmem:[#allocation27_spill] sm:$0xff] %v3526_v34 }
 0x1f2   :  { %526 = vadd.xlane.f32.xlu1 %v511_v25  ;;  %556 = vadd.xlane.f32.xlu0 %v544_v35  ;;  %v3531_v35 = vadd.s32 8, %v3402_v1 }
 0x1f4   :  { %vm586_vm5 = vcmp.lt.s32.totalorder %v3531_v35, 13  ;;  %vm594_vm6 = vcmp.lt.s32.totalorder %v3531_v35, 14  ;;  %vm602_vm10 = vcmp.lt.s32.totalorder %v3531_v35, 15  ;;  %vm578_vm13 = vcmp.lt.s32.totalorder %v3531_v35, 12 }
 0x1f6   :  { %558 = vadd.xlane.f32.xlu1 %v545_v36  ;;  %560 = vadd.xlane.f32.xlu0 %v546_v37  ;;  %v3534_v36 = vrot.slane %v146_v14, %v3405_v7  ;;  %v3537_v37 = vrot.slane %v146_v14, %v3410_v12 }
 0x1fa   :  { %562 = vadd.xlane.f32.xlu1 %v547_v40  ;;  %v3541_v40 = vrot.slane %v3520_v33, %v3410_v12 }
 0x257   :  { %v473_v43 = vpop.xlane.xlu0 %472 }
 0x258   :  { %v492_v44 = vadd.f32 %v3486_v32, %v473_v43  ;;  %v3544_v43 = vrot.slane %v146_v14, %v3424_v28 }
 0x25a   :  { %987 = vperm.xlu0 %2741, %v492_v44   ;;  %v3548_v44 = vrot.slane %v3407_v9, %v3452_v57 }
 0x25b   :  { %v475_v41 = vpop.xlane.xlu1 %474  ;;  %v513_v45 = vpop.xlane.xlu0 %512 }
 0x25c   :  { %v493_v22 = vadd.f32 %v3486_v32, %v475_v41  ;;  %v528_v48 = vadd.f32 %v513_v45, %v3486_v32  ;;  %v3551_v41 = vrot.slane %v146_v14, %v3452_v57  ;;  %v3554_v45 = vrot.slane %v146_v14, %v3523_v15 }
 0x25e   :  { %992 = vperm.xlu1 %2742, %v493_v22   ;;  %2747 = vset.pattern.permute.xlu0 %v3173_v46  ;;  %v3557_v22 = vrot.slane %v146_v14, %v3526_v34 }
 0x25f   :  { %v515_v47 = vpop.xlane.xlu1 %514  ;;  %v477_v16 = vpop.xlane.xlu0 %476 }
 0x260   :  { %v529_v51 = vadd.f32 %v515_v47, %v3486_v32  ;;  %v494_v53 = vadd.f32 %v3486_v32, %v477_v16  ;;  %v3568_v47 = vsub.s32 7, %v3402_v1 }
 0x262   :  { %2743 = vset.pattern.permute.xlu1 %v3174_v49  ;;  %4777 = vst [vmem:[#allocation28_spill] sm:$0xff] %v3568_v47 }
 0x263   :  { %v479_v19 = vpop.xlane.xlu1 %478  ;;  %1452 = vperm.xlu1 %2743, %v528_v48   ;;  %v517_v50 = vpop.xlane.xlu0 %516 }
 0x264   :  { %v495_v59 = vadd.f32 %v3486_v32, %v479_v19  ;;  %v530_v63 = vadd.f32 %v517_v50, %v3486_v32  ;;  %v3579_v19 = vrot.slane %v146_v14, %v3482_v42  ;;  %v4737_v50 = vmov 0.0  }
 0x267   :  { %v519_v52 = vpop.xlane.xlu1 %518  ;;  %1457 = vperm.xlu1 %2743, %v529_v51   ;;  %v549_v23 = vpop.xlane.xlu0 %548  ;;  %v3589_v51 = vsel %vm619_vm3, 1.0, %v4737_v50 }
 0x268   :  { %v531_v31 = vadd.f32 %v519_v52, %v3486_v32  ;;  %v564_v8 = vadd.f32 %v549_v23, %v3486_v32 }
 0x26b   :  { %v551_v54 = vpop.xlane.xlu1 %550  ;;  %2744 = vset.pattern.permute.xlu1 %v4729_v56  ;;  %v553_v55 = vpop.xlane.xlu0 %552 }
 0x26c   :  { %v565_v58 = vadd.f32 %v551_v54, %v3486_v32  ;;  %997 = vperm.xlu1 %2744, %v494_v53   ;;  %v566_v17 = vadd.f32 %v553_v55, %v3486_v32  ;;  %v3599_v53 = vsel %vm586_vm5, 1.0, %v4737_v50  ;;  %v3604_v54 = vsel %vm594_vm6, 1.0, %v4737_v50 }
 0x26d   :  { %v3609_v55 = vsel %vm627_vm4, 1.0, %v4737_v50 }
 0x26e   :  { %1566 = vperm.xlu0 %2747, %v565_v58  }
 0x26f   :  { %v555_v60 = vpop.xlane.xlu1 %554  ;;  %v481_v61 = vpop.xlane.xlu0 %480 }
 0x270   :  { %v496_v62 = vadd.f32 %v3486_v32, %v481_v61  ;;  %1002 = vperm.xlu1 %2744, %v495_v59   ;;  %v567_v21 = vadd.f32 %v555_v60, %v3486_v32  ;;  %v3613_v60 = vsel %vm602_vm10, 1.0, %v4737_v50  ;;  %v3617_v61 = vrot.slane %v3407_v9, %v3523_v15 }
 0x272   :  { %2748 = vset.pattern.permute.xlu0 %v4729_v56 }
 0x273   :  { %v483_v0 = vpop.xlane.xlu1 %482  ;;  %1007 = vperm.xlu0 %2748, %v496_v62   ;;  %v521_v2 = vpop.xlane.xlu0 %520  ;;  %v3620_v62 = vrot.slane %v146_v14, %v3568_v47 }
 0x274   :  { %2745 = vset.pattern.permute.xlu1 %v3174_v49  ;;  %v497_v38 = vadd.f32 %v3486_v32, %v483_v0  ;;  %v532_v26 = vadd.f32 %v521_v2, %v3486_v32  ;;  %v3628_v0 = vrot.slane %v3520_v33, %v3523_v15  ;;  %v3636_v2 = vrot.slane %v3520_v33, %v3405_v7 }
 0x275   :  { %1462 = vperm.xlu1 %2745, %v530_v63  }
 0x276   :  { %4781 = vst [vmem:[#allocation32_spill] sm:$0xff] %v3636_v2 }
 0x277   :  { %v523_v3 = vpop.xlane.xlu1 %522  ;;  %v485_v4 = vpop.xlane.xlu0 %484  ;;  %2751 = vset.pattern.permute.xlu0 %v3174_v49 }
 0x278   :  { %v533_v30 = vadd.f32 %v523_v3, %v3486_v32  ;;  %v498_v27 = vadd.f32 %v3486_v32, %v485_v4  ;;  %v3642_v3 = vrot.slane %v3520_v33, %v3424_v28  ;;  %v3646_v4 = vrot.slane %v3520_v33, %v3452_v57 }
 0x279   :  { %1467 = vperm.xlu1 %2745, %v531_v31  }
 0x27a   :  { %1477 = vperm.xlu0 %2751, %v533_v30  }
 0x27b   :  { %v487_v5 = vpop.xlane.xlu1 %486  ;;  %v525_v6 = vpop.xlane.xlu0 %524 }
 0x27c   :  { %v534_v10 = vadd.f32 %v525_v6, %v3486_v32  ;;  %v499_v29 = vadd.f32 %v3486_v32, %v487_v5 }
 0x27d   :  { %2746 = vset.pattern.permute.xlu1 %v3173_v46 }
 0x27e   :  { %1561 = vperm.xlu1 %2746, %v564_v8   ;;  %1482 = vperm.xlu0 %2751, %v534_v10  }
 0x27f   :  { %v527_v11 = vpop.xlane.xlu1 %526  ;;  %v557_v13 = vpop.xlane.xlu0 %556 }
 0x280   :  { %v568_v18 = vadd.f32 %v557_v13, %v3486_v32  ;;  %v535_v25 = vadd.f32 %v527_v11, %v3486_v32 }
 0x282   :  { %1571 = vperm.xlu1 %2746, %v566_v17   ;;  %2754 = vset.pattern.permute.xlu0 %v3173_v46 }
 0x283   :  { %v559_v20 = vpop.xlane.xlu1 %558  ;;  %1581 = vperm.xlu0 %2754, %v568_v18   ;;  %v561_v16 = vpop.xlane.xlu0 %560 }
 0x284   :  { %v569_v12 = vadd.f32 %v559_v20, %v3486_v32  ;;  %v570_v58 = vadd.f32 %v561_v16, %v3486_v32 }
 0x286   :  { %1576 = vperm.xlu1 %2746, %v567_v21  }
 0x287   :  { %v563_v39 = vpop.xlane.xlu1 %562 }
 0x288   :  { %v571_v24 = vadd.f32 %v563_v39, %v3486_v32  ;;  %v3632_v32 = vrot.slane %v3520_v33, %v3526_v34 }
 0x28a   :  { %2749 = vset.pattern.permute.xlu1 %v4729_v56  ;;  %1596 = vperm.xlu0 %2754, %v571_v24   ;;  %4780 = vst [vmem:[#allocation31_spill] sm:$0xff] %v3632_v32 }
 0x28b   :  { %1012 = vperm.xlu1 %2749, %v497_v38  }
 0x28f   :  { %2750 = vset.pattern.permute.xlu1 %v3174_v49 }
 0x290   :  { %1472 = vperm.xlu1 %2750, %v532_v26  }
 0x294   :  { %2752 = vset.pattern.permute.xlu1 %v4729_v56 }
 0x295   :  { %1017 = vperm.xlu1 %2752, %v498_v27  }
 0x299   :  { %1022 = vperm.xlu1 %2752, %v499_v29  }
 0x29d   :  { %2753 = vset.pattern.permute.xlu1 %v3174_v49 }
 0x29e   :  { %1487 = vperm.xlu1 %2753, %v535_v25  }
 0x2a2   :  { %v3570_v48 = vpop.f32.mrb[0].mxu0  ;;  %2755 = vset.pattern.permute.xlu1 %v3173_v46  ;;  %v3584_v46 = vsel %vm609_vm2, 1.0, %v4737_v50 }
 0x2a3   :  { %4778 = vst [vmem:[#allocation29_spill] sm:$0xff] %v3570_v48  ;;  %v399_v49 = vpop.f32.mrb[1].mxu0  ;;  %1586 = vperm.xlu1 %2755, %v569_v12  }
 0x2a4   :  { %v3592_v52 = vadd.f32 %v3548_v44, %v399_v49  ;;  %v3594_v23 = vpop.f32.mrb[2].mxu0  ;;  %v3681_v49 = vrot.slane %v3520_v33, %v3482_v42 }
 0x2a5   :  { %4779 = vst [vmem:[#allocation30_spill] sm:$0xff] %v3594_v23  ;;  %v403_v59 = vpop.f32.mrb[3].mxu0 }
 0x2a6   :  { %v3624_v63 = vmul.f32 %v3537_v37, %v3592_v52  ;;  %v453_v31 = vadd.f32 %v3548_v44, %v403_v59  ;;  %v4736_v30 = vrot.slane %v3592_v52, 5  ;;  %v4735_v5 = vrot.slane %v3592_v52, 6 }
 0x2a7   :  { %1591 = vperm.xlu1 %2755, %v570_v58   ;;  %v4734_v6 = vrot.slane %v3592_v52, 7  ;;  %v4731_v8 = vrot.slane %v3592_v52, 1  ;;  %v4732_v18 = vrot.slane %v3592_v52, 2  ;;  %v4733_v24 = vrot.slane %v3592_v52, 3 }
 0x2a8   :  { %v644_v10 = vrot.slane %v453_v31, 5  ;;  %v689_v11 = vrot.slane %v453_v31, 6  ;;  %v734_v13 = vrot.slane %v453_v31, 7  ;;  %v783_v17 = vmul.f32 %v3537_v37, %v453_v31 }
 0x2a9   :  { %v799_v20 = vrot.slane %v453_v31, 1  ;;  %v844_v21 = vrot.slane %v453_v31, 2  ;;  %v889_v39 = vrot.slane %v453_v31, 3 }
 0x2aa   :  { %v3654_v57 = vpop.f32.mrb[4].mxu0  ;;  %v658_v38 = vsel %vm651_vm0, %v4736_v30, %v644_v10  ;;  %v703_v26 = vsel %vm696_vm1, %v4735_v5, %v689_v11  ;;  %v748_v27 = vsel %vm741_vm7, %v4734_v6, %v734_v13 }
 0x2ab   :  { %4782 = vst [vmem:[#allocation33_spill] sm:$0xff] %v3654_v57  ;;  %v409_v29 = vpop.f32.mrb[5].mxu0  ;;  %v665_v14 = vmul.f32 %v3554_v45, %v658_v38  ;;  %v710_v25 = vmul.f32 %v3557_v22, %v703_v26  ;;  %v3675_v12 = vsel %vm806_vm8, %v4731_v8, %v799_v20  ;;  %v3687_v58 = vsel %vm851_vm9, %v4732_v18, %v844_v21 }
 0x2ac   :  { %v3677_v16 = vpop.f32.mrb[6].mxu0  ;;  %v3693_v59 = vsel %vm896_vm11, %v4733_v24, %v889_v39  ;;  %v3696_v31 = vadd.f32 %v3548_v44, %v409_v29  ;;  %v3700_v26 = vrot.slane %v3520_v33, %v3568_v47  ;;  %v755_v8 = vmul.f32 %v3534_v36, %v748_v27 }
 0x2ad   :  { %4783 = vst [vmem:[#allocation34_spill] sm:$0xff] %v3677_v16  ;;  %v413_v38 = vpop.f32.mrb[7].mxu0  ;;  %v726_v56 = vadd.f32 %v710_v25, %v665_v14  ;;  %v3706_v18 = vsel %vm635_vm12, 1.0, %v4737_v50 }
 0x2ae   :  { %v645_v24 = vrot.slane %v3696_v31, 5  ;;  %v690_v29 = vrot.slane %v3696_v31, 6  ;;  %v735_v6 = vrot.slane %v3696_v31, 7  ;;  %v784_v33 = vmul.f32 %v3537_v37, %v3696_v31 }
 0x2af   :  { %v771_v5 = vadd.f32 %v755_v8, %v726_v56  ;;  %v800_v14 = vrot.slane %v3696_v31, 1  ;;  %v845_v27 = vrot.slane %v3696_v31, 2  ;;  %v890_v25 = vrot.slane %v3696_v31, 3 }
 0x2b0   :  { %v657_v30 = vsel %vm651_vm0, %v644_v10, %v645_v24  ;;  %v702_v50 = vsel %vm696_vm1, %v689_v11, %v690_v29  ;;  %v747_v7 = vsel %vm741_vm7, %v734_v13, %v735_v6  ;;  %v3724_v15 = vadd.f32 %v3548_v44, %v413_v38 }
 0x2b1   :  { %v791_v47 = vadd.f32 %v783_v17, %v771_v5  ;;  %v666_v56 = vmul.f32 %v3554_v45, %v657_v30  ;;  %v711_v8 = vmul.f32 %v3557_v22, %v702_v50  ;;  %v756_v23 = vmul.f32 %v3534_v36, %v747_v7 }
 0x2b2   :  { %v3729_v31 = vpop.f32.mrb[8].mxu0  ;;  %v812_v10 = vsel %vm806_vm8, %v799_v20, %v800_v14  ;;  %v857_v11 = vsel %vm851_vm9, %v844_v21, %v845_v27  ;;  %v902_v13 = vsel %vm896_vm11, %v889_v39, %v890_v25  ;;  %v646_v38 = vrot.slane %v3724_v15, 5 }
 0x2b3   :  { %4784 = vst [vmem:[#allocation35_spill] sm:$0xff] %v3729_v31  ;;  %v419_v5 = vpop.f32.mrb[9].mxu0  ;;  %v674_v30 = vmul.f32 %v3609_v55, %v666_v56  ;;  %v719_v50 = vmul.f32 %v3589_v51, %v711_v8  ;;  %v764_v7 = vmul.f32 %v3584_v46, %v756_v23  ;;  %v820_v17 = vmul.f32 %v3544_v43, %v812_v10 }
 0x2b4   :  { %v3742_v31 = vpop.f32.mrb[10].mxu0  ;;  %v865_v20 = vmul.f32 %v3551_v41, %v857_v11  ;;  %v910_v21 = vmul.f32 %v3579_v19, %v902_v13  ;;  %v656_v39 = vsel %vm651_vm0, %v645_v24, %v646_v38  ;;  %v691_v16 = vrot.slane %v3724_v15, 6 }
 0x2b5   :  { %4785 = vst [vmem:[#allocation36_spill] sm:$0xff] %v3742_v31  ;;  %v3749_v48 = vpop.f32.mrb[11].mxu0  ;;  %v727_v56 = vadd.f32 %v719_v50, %v674_v30  ;;  %v828_v8 = vmul.f32 %v3613_v60, %v820_v17  ;;  %v667_v23 = vmul.f32 %v3554_v45, %v656_v39  ;;  %v736_v10 = vrot.slane %v3724_v15, 7 }
 0x2b6   :  { %v873_v31 = vmul.f32 %v3604_v54, %v865_v20  ;;  %v701_v11 = vsel %vm696_vm1, %v690_v29, %v691_v16  ;;  %v785_v13 = vmul.f32 %v3537_v37, %v3724_v15  ;;  %v4786_v24 = vmov 0.0  }
 0x2b7   :  { %v3762_v57 = vsel %vm578_vm13, 1.0, %v4786_v24  ;;  %v772_v30 = vadd.f32 %v764_v7, %v727_v56  ;;  %v836_v50 = vadd.f32 %v828_v8, %v791_v47  ;;  %v712_v17 = vmul.f32 %v3557_v22, %v701_v11 }
 0x2b8   :  { %v746_v39 = vsel %vm741_vm7, %v735_v6, %v736_v10  ;;  %v918_v20 = vmul.f32 %v3599_v53, %v910_v21  ;;  %v801_v28 = vrot.slane %v3724_v15, 1  ;;  %v846_v29 = vrot.slane %v3724_v15, 2 }
 0x2b9   :  { %v891_v42 = vrot.slane %v3724_v15, 3  ;;  %v792_v2 = vadd.f32 %v784_v33, %v772_v30  ;;  %v881_v32 = vadd.f32 %v873_v31, %v836_v50  ;;  %v728_v35 = vadd.f32 %v712_v17, %v667_v23 }
 0x2ba   :  { %v757_v24 = vmul.f32 %v3534_v36, %v746_v39  ;;  %v3772_v7 = vpop.f32.mrb[12].mxu0  ;;  %v811_v47 = vsel %vm806_vm8, %v800_v14, %v801_v28  ;;  %v856_v6 = vsel %vm851_vm9, %v845_v27, %v846_v29  ;;  %v3781_v56 = vadd.f32 %v3548_v44, %v419_v5 }
 0x2bb   :  { %4787 = vst [vmem:[#allocation37_spill] sm:$0xff] %v3772_v7  ;;  %v901_v21 = vsel %vm896_vm11, %v890_v25, %v891_v42  ;;  %v3783_v15 = vpop.f32.mrb[13].mxu0  ;;  %v926_v33 = vadd.f32 %v918_v20, %v881_v32  ;;  %v821_v8 = vmul.f32 %v3544_v43, %v811_v47  ;;  %v3790_v14 = vrot.slane %v3407_v9, %v3526_v34  ;;  %v2788_v7 = vld [vmem:[#allocation10] sm:$0xff]  }
 0x2bc   :  { %v773_v31 = vadd.f32 %v757_v24, %v728_v35  ;;  %v3786_v23 = vpop.f32.mrb[14].mxu0  ;;  %v866_v27 = vmul.f32 %v3551_v41, %v856_v6  ;;  %v647_v11 = vrot.slane %v3781_v56, 5  ;;  %v692_v25 = vrot.slane %v3781_v56, 6  ;;  %2684 = vmatprep.subr.bf16.mxu0 %v2788_v7 }
 0x2bd   :  { %4788 = vst [vmem:[#allocation38_spill] sm:$0xff] %v3786_v23  ;;  %v737_v5 = vrot.slane %v3781_v56, 7  ;;  %v3796_v30 = vpop.f32.mrb[15].mxu0  ;;  %v938_v32 = vadd.f32 %v3617_v61, %v926_v33  ;;  %v837_v17 = vadd.f32 %v821_v8, %v792_v2  ;;  %v786_v39 = vmul.f32 %v3537_v37, %v3781_v56  ;;  %2685 = vmatpush3.bf16.msra.mxu0 %v2788_v7 }
 0x2be   :  { %v793_v50 = vadd.f32 %v785_v13, %v773_v31  ;;  %v655_v9 = vsel %vm651_vm0, %v646_v38, %v647_v11  ;;  %v700_v20 = vsel %vm696_vm1, %v691_v16, %v692_v25  ;;  %v802_v24 = vrot.slane %v3781_v56, 1 }
 0x2bf   :  { %v745_v35 = vsel %vm741_vm7, %v736_v10, %v737_v5  ;;  %v954_v47 = vmul.f32 0.70710677, %v938_v32  ;;  %v882_v6 = vadd.f32 %v866_v27, %v837_v17  ;;  %v911_v33 = vmul.f32 %v3579_v19, %v901_v21 }
 0x2c0   :  { %v668_v2 = vmul.f32 %v3554_v45, %v655_v9  ;;  %v713_v13 = vmul.f32 %v3557_v22, %v700_v20  ;;  %v758_v31 = vmul.f32 %v3534_v36, %v745_v35  ;;  %v810_v38 = vsel %vm806_vm8, %v801_v28, %v802_v24 }
 0x2c1   :  { %v847_v16 = vrot.slane %v3781_v56, 2  ;;  %2852 = verf.f32 %v954_v47  ;;  %v927_v8 = vadd.f32 %v911_v33, %v882_v6  ;;  %v822_v34 = vmul.f32 %v3544_v43, %v810_v38 }
 0x2c2   :  { %v676_v10 = vmul.f32 %v3609_v55, %v668_v2  ;;  %v3819_v21 = vmul.f32 %v3544_v43, %v3675_v12  ;;  %v721_v27 = vmul.f32 %v3589_v51, %v713_v13  ;;  %v892_v9 = vrot.slane %v3781_v56, 3 }
 0x2c3   :  { %v855_v17 = vsel %vm851_vm9, %v846_v29, %v847_v16  ;;  %v3827_v28 = vmul.f32 %v3551_v41, %v3687_v58  ;;  %v939_v20 = vadd.f32 %v3617_v61, %v927_v8  ;;  %v830_v35 = vmul.f32 %v3613_v60, %v822_v34 }
 0x2c4   :  { %v867_v47 = vmul.f32 %v3551_v41, %v855_v17  ;;  %v729_v6 = vadd.f32 %v721_v27, %v676_v10  ;;  %v766_v12 = vmul.f32 %v3584_v46, %v758_v31  ;;  %v900_v33 = vsel %vm896_vm11, %v891_v42, %v892_v9 }
 0x2c5   :  { %v3837_v29 = vadd.f32 %v3548_v44, %v3749_v48  ;;  %v3841_v58 = vmul.f32 %v3579_v19, %v3693_v59  ;;  %v955_v56 = vmul.f32 0.70710677, %v939_v20  ;;  %v838_v2 = vadd.f32 %v830_v35, %v793_v50 }
 0x2c6   :  { %v875_v34 = vmul.f32 %v3604_v54, %v867_v47  ;;  %v774_v13 = vadd.f32 %v766_v12, %v729_v6  ;;  %v912_v38 = vmul.f32 %v3579_v19, %v900_v33  ;;  %v946_v33 = vmul.f32 0.5, %v938_v32 }
 0x2c7   :  { %v648_v31 = vrot.slane %v3837_v29, 5  ;;  %v693_v8 = vrot.slane %v3837_v29, 6  ;;  %2854 = verf.f32 %v955_v56  ;;  %v738_v48 = vrot.slane %v3837_v29, 7 }
 0x2c8   :  { %v883_v42 = vadd.f32 %v875_v34, %v838_v2  ;;  %v787_v10 = vmul.f32 %v3537_v37, %v3837_v29  ;;  %v794_v59 = vadd.f32 %v786_v39, %v774_v13  ;;  %v920_v27 = vmul.f32 %v3599_v53, %v912_v38 }
 0x2c9   :  { %v654_v50 = vsel %vm651_vm0, %v647_v11, %v648_v31  ;;  %v699_v17 = vsel %vm696_vm1, %v692_v25, %v693_v8  ;;  %v744_v6 = vsel %vm741_vm7, %v737_v5, %v738_v48  ;;  %v803_v12 = vrot.slane %v3837_v29, 1 }
 0x2ca   :  { %v669_v35 = vmul.f32 %v3554_v45, %v654_v50  ;;  %v714_v47 = vmul.f32 %v3557_v22, %v699_v17  ;;  %v928_v56 = vadd.f32 %v920_v27, %v883_v42  ;;  %v848_v39 = vrot.slane %v3837_v29, 2 }
 0x2cb   :  { %v893_v2 = vrot.slane %v3837_v29, 3  ;;  %v2853_v34 = vpop.eup %2852  ;;  %v759_v13 = vmul.f32 %v3534_v36, %v744_v6  ;;  %v809_v25 = vsel %vm806_vm8, %v802_v24, %v803_v12  ;;  %v3867_v38 = vadd.f32 %v3548_v44, %v3783_v15 }
 0x2cc   :  { %v730_v11 = vadd.f32 %v714_v47, %v669_v35  ;;  %v970_v5 = vadd.f32 1.0, %v2853_v34  ;;  %v940_v50 = vadd.f32 %v3617_v61, %v928_v56  ;;  %v823_v32 = vmul.f32 %v3544_v43, %v809_v25 }
 0x2cd   :  { %v854_v42 = vsel %vm851_vm9, %v847_v16, %v848_v39  ;;  %v947_v29 = vmul.f32 0.5, %v939_v20  ;;  %v899_v17 = vsel %vm896_vm11, %v892_v9, %v893_v2  ;;  %v649_v35 = vrot.slane %v3867_v38, 5 }
 0x2ce   :  { %v775_v27 = vadd.f32 %v759_v13, %v730_v11  ;;  %v3876_v24 = vmul.f32 %v970_v5, %v946_v33  ;;  %v956_v47 = vmul.f32 0.70710677, %v940_v50  ;;  %v839_v15 = vadd.f32 %v823_v32, %v794_v59 }
 0x2cf   :  { %v868_v6 = vmul.f32 %v3551_v41, %v854_v42  ;;  %v913_v56 = vmul.f32 %v3579_v19, %v899_v17  ;;  %v653_v25 = vsel %vm651_vm0, %v648_v31, %v649_v35  ;;  %v694_v16 = vrot.slane %v3867_v38, 6 }
 0x2d0   :  { %v795_v34 = vadd.f32 %v787_v10, %v775_v27  ;;  %2856 = verf.f32 %v956_v47  ;;  %v670_v9 = vmul.f32 %v3554_v45, %v653_v25  ;;  %v739_v11 = vrot.slane %v3867_v38, 7 }
 0x2d1   :  { %v884_v20 = vadd.f32 %v868_v6, %v839_v15  ;;  %v2855_v33 = vpop.eup %2854  ;;  %v698_v59 = vsel %vm696_vm1, %v693_v8, %v694_v16  ;;  %v788_v10 = vmul.f32 %v3537_v37, %v3867_v38  ;;  %v804_v13 = vrot.slane %v3867_v38, 1 }
 0x2d2   :  { %v849_v5 = vrot.slane %v3867_v38, 2  ;;  %v971_v31 = vadd.f32 1.0, %v2855_v33  ;;  %v678_v42 = vmul.f32 %v3609_v55, %v670_v9  ;;  %v715_v27 = vmul.f32 %v3557_v22, %v698_v59 }
 0x2d3   :  { %v929_v32 = vadd.f32 %v913_v56, %v884_v20  ;;  %v743_v17 = vsel %vm741_vm7, %v738_v48, %v739_v11  ;;  %v808_v8 = vsel %vm806_vm8, %v803_v12, %v804_v13  ;;  %v4748_v15 = vrot.slane %v3867_v38, 3 }
 0x2d4   :  { %v853_v47 = vsel %vm851_vm9, %v848_v39, %v849_v5  ;;  %v948_v6 = vmul.f32 0.5, %v940_v50  ;;  %v723_v25 = vmul.f32 %v3589_v51, %v715_v27  ;;  %v760_v20 = vmul.f32 %v3534_v36, %v743_v17 }
 0x2d5   :  { %v941_v56 = vadd.f32 %v3617_v61, %v929_v32  ;;  %v824_v48 = vmul.f32 %v3544_v43, %v808_v8  ;;  %v869_v9 = vmul.f32 %v3551_v41, %v853_v47  ;;  %v898_v12 = vsel %vm896_vm11, %v893_v2, %v4748_v15 }
 0x2d6   :  { %v3915_v39 = vadd.f32 %v3548_v44, %v3796_v30  ;;  %v3917_v50 = vmul.f32 %v971_v31, %v947_v29  ;;  %v731_v59 = vadd.f32 %v723_v25, %v678_v42  ;;  %v768_v32 = vmul.f32 %v3584_v46, %v760_v20 }
 0x2d7   :  { %v957_v33 = vmul.f32 0.70710677, %v941_v56  ;;  %v3920_v27 = vmul.f32 0.5, %v941_v56  ;;  %v832_v17 = vmul.f32 %v3613_v60, %v824_v48  ;;  %v914_v8 = vmul.f32 %v3579_v19, %v898_v12 }
 0x2d8   :  { %v650_v47 = vrot.slane %v3915_v39, 5  ;;  %v776_v2 = vadd.f32 %v768_v32, %v731_v59  ;;  %v695_v15 = vrot.slane %v3915_v39, 6  ;;  %v740_v44 = vrot.slane %v3915_v39, 7 }
 0x2d9   :  { %2858 = verf.f32 %v957_v33  ;;  %v840_v30 = vadd.f32 %v832_v17, %v795_v34  ;;  %v877_v29 = vmul.f32 %v3604_v54, %v869_v9  ;;  %v4789_v42 = vrot.slane %v3592_v52, 5 }
 0x2da   :  { %v652_v31 = vsel %vm651_vm0, %v649_v35, %v650_v47  ;;  %v2857_v25 = vpop.eup %2856  ;;  %v796_v20 = vadd.f32 %v788_v10, %v776_v2  ;;  %v697_v33 = vsel %vm696_vm1, %v694_v16, %v695_v15  ;;  %v922_v9 = vmul.f32 %v3599_v53, %v914_v8 }
 0x2db   :  { %v659_v56 = vsel %vm651_vm0, %v650_v47, %v4789_v42  ;;  %v671_v12 = vmul.f32 %v3554_v45, %v652_v31  ;;  %v885_v34 = vadd.f32 %v877_v29, %v840_v30  ;;  %v4790_v59 = vrot.slane %v3592_v52, 6 }
 0x2dc   :  { %v664_v48 = vmul.f32 %v3554_v45, %v659_v56  ;;  %v716_v32 = vmul.f32 %v3557_v22, %v697_v33  ;;  %v742_v45 = vsel %vm741_vm7, %v739_v11, %v740_v44  ;;  %v4791_v47 = vrot.slane %v3592_v52, 7 }
 0x2dd   :  { %v704_v35 = vsel %vm696_vm1, %v695_v15, %v4790_v59  ;;  %v993_v8 = vpop.permute.xlu1 %992  ;;  %v972_v2 = vadd.f32 1.0, %v2857_v25  ;;  %v930_v30 = vadd.f32 %v922_v9, %v885_v34  ;;  %v761_v42 = vmul.f32 %v3534_v36, %v742_v45 }
 0x2de   :  { %v672_v17 = vmul.f32 %v3609_v55, %v664_v48  ;;  %v709_v10 = vmul.f32 %v3557_v22, %v704_v35  ;;  %v749_v16 = vsel %vm741_vm7, %v740_v44, %v4791_v47  ;;  %v732_v29 = vadd.f32 %v716_v32, %v671_v12 }
 0x2df   :  { %v754_v15 = vmul.f32 %v3534_v36, %v749_v16  ;;  %v789_v22 = vmul.f32 %v3537_v37, %v3915_v39  ;;  %v805_v11 = vrot.slane %v3915_v39, 1  ;;  %v942_v56 = vadd.f32 %v3617_v61, %v930_v30 }
 0x2e0   :  { %v717_v31 = vmul.f32 %v3589_v51, %v709_v10  ;;  %v850_v44 = vrot.slane %v3915_v39, 2  ;;  %v895_v25 = vrot.slane %v3915_v39, 3  ;;  %v777_v33 = vadd.f32 %v761_v42, %v732_v29 }
 0x2e1   :  { %v762_v48 = vmul.f32 %v3584_v46, %v754_v15  ;;  %v807_v36 = vsel %vm806_vm8, %v804_v13, %v805_v11  ;;  %v4792_v34 = vrot.slane %v3592_v52, 1  ;;  %v3971_v9 = vmul.f32 %v972_v2, %v948_v6 }
 0x2e2   :  { %v725_v12 = vadd.f32 %v717_v31, %v672_v17  ;;  %v958_v59 = vmul.f32 0.70710677, %v942_v56  ;;  %v825_v35 = vmul.f32 %v3544_v43, %v807_v36  ;;  %v3975_v32 = vpop.permute.xlu1 %1452  ;;  %v797_v45 = vadd.f32 %v789_v22, %v777_v33 }
 0x2e3   :  { %v814_v37 = vsel %vm806_vm8, %v805_v11, %v4792_v34  ;;  %v2859_v17 = vpop.eup %2858  ;;  %v852_v13 = vsel %vm851_vm9, %v849_v5, %v850_v44  ;;  %v4793_v47 = vrot.slane %v3592_v52, 2  ;;  %v4794_v31 = vrot.slane %v3867_v38, 3 }
 0x2e4   :  { %v826_v39 = vmul.f32 %v3544_v43, %v814_v37  ;;  %v770_v10 = vadd.f32 %v762_v48, %v725_v12  ;;  %v973_v16 = vadd.f32 1.0, %v2859_v17  ;;  %2860 = verf.f32 %v958_v59 }
 0x2e5   :  { %v859_v6 = vsel %vm851_vm9, %v850_v44, %v4793_v47  ;;  %v841_v43 = vadd.f32 %v825_v35, %v796_v20  ;;  %v870_v29 = vmul.f32 %v3551_v41, %v852_v13  ;;  %v897_v5 = vsel %vm896_vm11, %v4794_v31, %v895_v25 }
 0x2e6   :  { %v834_v2 = vmul.f32 %v3613_v60, %v826_v39  ;;  %v790_v30 = vadd.f32 %v3624_v63, %v770_v10  ;;  %v871_v15 = vmul.f32 %v3551_v41, %v859_v6  ;;  %v950_v42 = vmul.f32 0.5, %v942_v56  ;;  %v3998_v44 = vpop.permute.xlu1 %1457 }
 0x2e7   :  { %v4795_v11 = vrot.slane %v3592_v52, 3  ;;  %v915_v20 = vmul.f32 %v3579_v19, %v897_v5  ;;  %v886_v12 = vadd.f32 %v870_v29, %v841_v43  ;;  %v4004_v33 = vmul.f32 %v973_v16, %v3920_v27 }
 0x2e8   :  { %v842_v22 = vadd.f32 %v834_v2, %v797_v45  ;;  %v835_v63 = vadd.f32 %v3819_v21, %v790_v30  ;;  %v879_v41 = vmul.f32 %v3604_v54, %v871_v15  ;;  %v4007_v56 = vmul.f32 %v993_v8, %v3876_v24 }
 0x2e9   :  { %v904_v48 = vsel %vm896_vm11, %v895_v25, %v4795_v11  ;;  %v1042_v52 = vrot.slane %v3876_v24, 4  ;;  %v4758_v25 = vrot.slane %v3876_v24, 5  ;;  %v931_v37 = vadd.f32 %v915_v20, %v886_v12  ;;  %v2780_v20 = vld [vmem:[#allocation8] sm:$0xff]  }
 0x2ea   :  { %v916_v38 = vmul.f32 %v3579_v19, %v904_v48  ;;  %4796 = vst [vmem:[#allocation39_spill] sm:$0xff] %v4007_v56  ;;  %v880_v36 = vadd.f32 %v3827_v28, %v835_v63  ;;  %v887_v34 = vadd.f32 %v879_v41, %v842_v22  ;;  %v4755_v59 = vrot.slane %v3876_v24, 6  ;;  %2660 = vmatprep.subr.bf16.mxu1 %v2780_v20 }
 0x2eb   :  { %v4754_v19 = vrot.slane %v3876_v24, 1  ;;  %v4753_v27 = vrot.slane %v3876_v24, 2  ;;  %v1043_v35 = vrot.slane %v3917_v50, 4  ;;  %v943_v17 = vadd.f32 %v3617_v61, %v931_v37  ;;  %v998_v28 = vpop.permute.xlu1 %997  ;;  %2661 = vmatpush3.bf16.msra.mxu1 %v2780_v20 }
 0x2ec   :  { %v924_v21 = vmul.f32 %v3599_v53, %v916_v38  ;;  %v925_v8 = vadd.f32 %v3841_v58, %v880_v36  ;;  %v1088_v10 = vrot.slane %v3917_v50, 5  ;;  %v4752_v45 = vrot.slane %v3876_v24, 3 }
 0x2ed   :  { %v1055_v13 = vsel %vm1049_vm14, %v1042_v52, %v1043_v35  ;;  %v4027_v47 = vmul.f32 %v3541_v40, %v3876_v24  ;;  %v1240_v6 = vrot.slane %v3917_v50, 1  ;;  %v959_v2 = vmul.f32 0.70710677, %v943_v17 }
 0x2ee   :  { %v932_v39 = vadd.f32 %v924_v21, %v887_v34  ;;  %v937_v58 = vadd.f32 %v3617_v61, %v925_v8  ;;  %v4757_v43 = vrot.slane %v3876_v24, 7  ;;  %v2861_v30 = vpop.eup %2860  ;;  %v1064_v29 = vmul.f32 %v3620_v62, %v1055_v13 }
 0x2ef   :  { %v1099_v15 = vsel %vm651_vm0, %v4758_v25, %v1088_v10  ;;  %v1251_v31 = vsel %vm806_vm8, %v4754_v19, %v1240_v6  ;;  %v1284_v5 = vrot.slane %v3917_v50, 2  ;;  %v974_v22 = vadd.f32 1.0, %v2861_v30  ;;  %v1003_v21 = vpop.permute.xlu1 %1002  ;;  %v2781_v30 = vld [vmem:[#allocation8 + $0x8] sm:$0xff]  }
 0x2f0   :  { %v944_v16 = vadd.f32 %v3617_v61, %v932_v39  ;;  %v4043_v61 = vmul.f32 0.5, %v937_v58  ;;  %v4045_v11 = vmul.f32 0.5, %v943_v17  ;;  %v953_v48 = vmul.f32 0.70710677, %v937_v58  ;;  %2662 = vmatprep.subr.bf16.mxu1 %v2781_v30 }
 0x2f1   :  { %2862 = verf.f32 %v959_v2  ;;  %v1072_v41 = vmul.f32 %v3706_v18, %v1064_v29  ;;  %v1108_v12 = vmul.f32 %v3628_v0, %v1099_v15  ;;  %v1259_v36 = vmul.f32 %v3642_v3, %v1251_v31  ;;  %2663 = vmatpush3.bf16.msra.mxu1 %v2781_v30 }
 0x2f2   :  { %v960_v63 = vmul.f32 0.70710677, %v944_v16  ;;  %v4049_v38 = vmul.f32 0.5, %v944_v16  ;;  %2864 = verf.f32 %v953_v48  ;;  %v1295_v34 = vsel %vm851_vm9, %v4753_v27, %v1284_v5 }
 0x2f3   :  { %v1116_v37 = vmul.f32 %v3609_v55, %v1108_v12  ;;  %v1303_v8 = vmul.f32 %v3646_v4, %v1295_v34  ;;  %v1328_v39 = vrot.slane %v3917_v50, 3  ;;  %v4061_v17 = vmul.f32 %v974_v22, %v950_v42 }
 0x2f4   :  { %2866 = verf.f32 %v960_v63  ;;  %v4064_v58 = vmul.f32 %v3613_v60, %v1259_v36  ;;  %v1375_v16 = vmul.f32 %v3700_v26, %v1055_v13  ;;  %v4068_v2 = vmul.f32 %v998_v28, %v3917_v50 }
 0x2f5   :  { %v1124_v29 = vadd.f32 %v1116_v37, %v1072_v41  ;;  %v4071_v15 = vmul.f32 %v3604_v54, %v1303_v8  ;;  %v1339_v31 = vsel %vm896_vm11, %v4752_v45, %v1328_v39  ;;  %v4078_v42 = vmul.f32 %v1003_v21, %v3971_v9  ;;  %v2782_v8 = vld [vmem:[#allocation8 + $0x10] sm:$0xff]  }
 0x2f6   :  { %v1347_v22 = vmul.f32 %v3681_v49, %v1339_v31  ;;  %v4082_v13 = vmul.f32 %v3762_v57, %v1375_v16  ;;  %v4749_v28 = vrot.slane %v3971_v9, 4  ;;  %v4751_v48 = vrot.slane %v3971_v9, 5  ;;  %2664 = vmatprep.subr.bf16.mxu1 %v2782_v8 }
 0x2f7   :  { %4797 = vst [vmem:[#allocation40_spill] sm:$0xff] %v4078_v42  ;;  %v1132_v20 = vrot.slane %v3917_v50, 6  ;;  %v4750_v63 = vrot.slane %v3971_v9, 6  ;;  %v4756_v41 = vrot.slane %v3917_v50, 7  ;;  %v4091_v12 = vmul.f32 %v3541_v40, %v3917_v50  ;;  %2665 = vmatpush3.bf16.msra.mxu1 %v2782_v8  ;;  %v2789_v42 = vld [vmem:[#allocation10 + $0x8] sm:$0xff]  }
 0x2f8   :  { %v4094_v36 = vmul.f32 %v3599_v53, %v1347_v22  ;;  %v1054_v34 = vsel %vm1049_vm14, %v1043_v35, %v4749_v28  ;;  %v1098_v21 = vsel %vm651_vm0, %v1088_v10, %v4751_v48  ;;  %v4759_v37 = vrot.slane %v3971_v9, 1  ;;  %v4798_v22 = vld [vmem:[#allocation31_spill] sm:$0xff]  ;;  %2686 = vmatprep.subr.bf16.mxu0 %v2789_v42 }
 0x2f9   :  { %v1065_v16 = vmul.f32 %v3620_v62, %v1054_v34  ;;  %v1109_v30 = vmul.f32 %v3628_v0, %v1098_v21  ;;  %v1142_v31 = vsel %vm696_vm1, %v1132_v20, %v4750_v63  ;;  %v1143_v35 = vsel %vm696_vm1, %v4755_v59, %v1132_v20  ;;  %v4799_v20 = vld [vmem:[#allocation32_spill] sm:$0xff]  ;;  %2687 = vmatpush3.bf16.msra.mxu0 %v2789_v42 }
 0x2fa   :  { %v1152_v28 = vmul.f32 %v4798_v22, %v1143_v35  ;;  %v1153_v10 = vmul.f32 %v4798_v22, %v1142_v31  ;;  %v1187_v21 = vsel %vm741_vm7, %v4757_v43, %v4756_v41  ;;  %v1250_v63 = vsel %vm806_vm8, %v1240_v6, %v4759_v37  ;;  %v2783_v6 = vld [vmem:[#allocation8 + $0x18] sm:$0xff]  }
 0x2fb   :  { %v2863_v48 = vpop.eup %2862  ;;  %v1125_v45 = vadd.f32 %v1109_v30, %v1065_v16  ;;  %v1196_v27 = vmul.f32 %v4799_v20, %v1187_v21  ;;  %v4129_v35 = vmul.f32 %v3642_v3, %v1250_v63  ;;  %v4761_v31 = vrot.slane %v3971_v9, 2  ;;  %2666 = vmatprep.subr.bf16.mxu1 %v2783_v6 }
 0x2fc   :  { %v2865_v19 = vpop.eup %2864  ;;  %v975_v59 = vadd.f32 1.0, %v2863_v48  ;;  %v1160_v41 = vmul.f32 %v3589_v51, %v1152_v28  ;;  %v4760_v43 = vrot.slane %v3971_v9, 3  ;;  %v4135_v25 = vmul.f32 %v3700_v26, %v1054_v34  ;;  %2667 = vmatpush3.bf16.msra.mxu1 %v2783_v6 }
 0x2fd   :  { %v969_v16 = vadd.f32 1.0, %v2865_v19  ;;  %v4137_v30 = vadd.f32 %v1153_v10, %v1125_v45  ;;  %v1204_v63 = vmul.f32 %v3584_v46, %v1196_v27  ;;  %v1294_v48 = vsel %vm851_vm9, %v1284_v5, %v4761_v31 }
 0x2fe   :  { %v2867_v37 = vpop.eup %2866  ;;  %v4147_v8 = vmul.f32 %v975_v59, %v4045_v11  ;;  %v1168_v34 = vadd.f32 %v1160_v41, %v1124_v29  ;;  %v4150_v21 = vmul.f32 %v3646_v4, %v1294_v48  ;;  %v1338_v27 = vsel %vm896_vm11, %v1328_v39, %v4760_v43  ;;  %v988_v11 = vpop.permute.xlu0 %987 }
 0x2ff   :  { %v976_v28 = vadd.f32 1.0, %v2867_v37  ;;  %v4153_v19 = vmul.f32 %v969_v16, %v4043_v61  ;;  %v4167_v41 = vmul.f32 %v3681_v49, %v1338_v27  ;;  %v2784_v37 = vld [vmem:[#allocation8 + $0x20] sm:$0xff]   ;;  %v4804_v31 = vrot.slane %v3876_v24, 6 }
 0x300   :  { %v4164_v29 = vadd.f32 %v1204_v63, %v1168_v34  ;;  %2668 = vmatprep.subr.bf16.mxu1 %v2784_v37 }
 0x301   :  { %4800 = vst [vmem:[#allocation31_spill] sm:$0xff] %v4153_v19  ;;  %v4162_v59 = vmul.f32 %v976_v28, %v4049_v38  ;;  %v4171_v10 = vmul.f32 %v988_v11, %v4153_v19  ;;  %v1041_v39 = vrot.slane %v4153_v19, 4  ;;  %v1086_v16 = vrot.slane %v4153_v19, 5  ;;  %v2785_v38 = vld [vmem:[#allocation8 + $0x28] sm:$0xff]   ;;  %2669 = vmatpush3.bf16.msra.mxu1 %v2784_v37 }
 0x302   :  { %v1130_v6 = vrot.slane %v4153_v19, 6  ;;  %v1174_v34 = vrot.slane %v4153_v19, 7  ;;  %v4803_v11 = vrot.slane %v3876_v24, 5  ;;  %2670 = vmatprep.subr.bf16.mxu1 %v2785_v38 }
 0x303   :  { %4801 = vst [vmem:[#allocation32_spill] sm:$0xff] %v4162_v59  ;;  %4802 = vst [vmem:[#allocation41_spill] sm:$0xff] %v4171_v10  ;;  %v4762_v48 = vrot.slane %v4162_v59, 4  ;;  %v4763_v63 = vrot.slane %v4162_v59, 5  ;;  %v1056_v27 = vsel %vm1049_vm14, %v1041_v39, %v1042_v52  ;;  %v4806_v23 = vrot.slane %v4162_v59, 6 }
 0x304   :  { %v1100_v43 = vsel %vm651_vm0, %v1086_v16, %v4803_v11  ;;  %v1144_v61 = vsel %vm696_vm1, %v1130_v6, %v4804_v31  ;;  %v1063_v52 = vmul.f32 %v3620_v62, %v1056_v27  ;;  %v2786_v31 = vld [vmem:[#allocation8 + $0x30] sm:$0xff]  }
 0x305   :  { %v4197_v45 = vsel %vm1049_vm14, %v4762_v48, %v1041_v39  ;;  %v1101_v11 = vsel %vm651_vm0, %v4763_v63, %v1086_v16  ;;  %v1107_v28 = vmul.f32 %v3628_v0, %v1100_v43  ;;  %v1145_v39 = vsel %vm696_vm1, %v4806_v23, %v1130_v6  ;;  %2671 = vmatpush3.bf16.msra.mxu1 %v2785_v38 }
 0x306   :  { %4805 = vst [vmem:[#allocation42_spill] sm:$0xff] %v4197_v45  ;;  %v1062_v37 = vmul.f32 %v3620_v62, %v4197_v45  ;;  %v1106_v5 = vmul.f32 %v3628_v0, %v1101_v11  ;;  %v1151_v48 = vmul.f32 %v4798_v22, %v1144_v61  ;;  %v1150_v16 = vmul.f32 %v4798_v22, %v1145_v39 }
 0x307   :  { %v1123_v56 = vadd.f32 %v1107_v28, %v1063_v52  ;;  %v4807_v43 = vrot.slane %v4162_v59, 7  ;;  %v1222_v11 = vmul.f32 %v3541_v40, %v4153_v19  ;;  %v4767_v61 = vrot.slane %v4153_v19, 1  ;;  %2672 = vmatprep.subr.bf16.mxu1 %v2786_v31 }
 0x308   :  { %v1070_v45 = vmul.f32 %v3706_v18, %v1062_v37  ;;  %v1114_v10 = vmul.f32 %v3609_v55, %v1106_v5  ;;  %v1158_v6 = vmul.f32 %v3589_v51, %v1150_v16  ;;  %v4768_v52 = vrot.slane %v4153_v19, 2 }
 0x309   :  { %v1189_v63 = vsel %vm741_vm7, %v4807_v43, %v1174_v34  ;;  %v1167_v28 = vadd.f32 %v1151_v48, %v1123_v56  ;;  %v4771_v39 = vrot.slane %v4153_v19, 3  ;;  %v2787_v43 = vld [vmem:[#allocation8 + $0x38] sm:$0xff]   ;;  %v4808_v5 = vrot.slane %v3876_v24, 1  ;;  %2673 = vmatpush3.bf16.msra.mxu1 %v2786_v31 }
 0x30a   :  { %v1194_v23 = vmul.f32 %v4799_v20, %v1189_v63  ;;  %v1122_v59 = vadd.f32 %v1114_v10, %v1070_v45  ;;  %v4235_v63 = vmul.f32 %v3700_v26, %v1056_v27  ;;  %v4809_v48 = vrot.slane %v3876_v24, 2  ;;  %2674 = vmatprep.subr.bf16.mxu1 %v2787_v43 }
 0x30b   :  { %v1252_v38 = vsel %vm806_vm8, %v4767_v61, %v4808_v5  ;;  %v4810_v45 = vrot.slane %v3876_v24, 3  ;;  %v4811_v27 = vrot.slane %v3876_v24, 7  ;;  %v4812_v19 = vrot.slane %v4004_v33, 4 }
 0x30c   :  { %v1202_v37 = vmul.f32 %v3584_v46, %v1194_v23  ;;  %v1258_v56 = vmul.f32 %v3642_v3, %v1252_v38  ;;  %v1296_v7 = vsel %vm851_vm9, %v4768_v52, %v4809_v48  ;;  %v2790_v23 = vld [vmem:[#allocation10 + $0x10] sm:$0xff]   ;;  %v1166_v5 = vadd.f32 %v1158_v6, %v1122_v59 }
 0x30d   :  { %v1340_v10 = vsel %vm896_vm11, %v4771_v39, %v4810_v45  ;;  %v1188_v16 = vsel %vm741_vm7, %v1174_v34, %v4811_v27  ;;  %v1302_v38 = vmul.f32 %v3646_v4, %v1296_v7  ;;  %v1232_v52 = vadd.f32 %v4091_v12, %v4164_v29  ;;  %2688 = vmatprep.subr.bf16.mxu0 %v2790_v23  ;;  %v2791_v39 = vld [vmem:[#allocation10 + $0x18] sm:$0xff]  }
 0x30e   :  { %v1346_v61 = vmul.f32 %v3681_v49, %v1340_v10  ;;  %v1195_v48 = vmul.f32 %v4799_v20, %v1188_v16  ;;  %v4813_v45 = vrot.slane %v3971_v9, 4  ;;  %v4814_v34 = vrot.slane %v4004_v33, 5  ;;  %2675 = vmatpush3.bf16.msra.mxu1 %v2787_v43  ;;  %2689 = vmatpush3.bf16.msra.mxu0 %v2790_v23 }
 0x30f   :  { %v4815_v59 = vrot.slane %v3971_v9, 5  ;;  %v4816_v7 = vrot.slane %v4004_v33, 6  ;;  %v4817_v31 = vrot.slane %v3971_v9, 6  ;;  %v1210_v29 = vadd.f32 %v1202_v37, %v1166_v5  ;;  %2690 = vmatprep.subr.bf16.mxu0 %v2791_v39 }
 0x310   :  { %v1053_v24 = vsel %vm1049_vm14, %v4813_v45, %v4812_v19  ;;  %v1211_v10 = vadd.f32 %v1195_v48, %v1167_v28  ;;  %v1276_v16 = vadd.f32 %v4129_v35, %v1232_v52  ;;  %v4818_v52 = vrot.slane %v3917_v50, 7 }
 0x311   :  { %v1097_v6 = vsel %vm651_vm0, %v4815_v59, %v4814_v34  ;;  %v1141_v12 = vsel %vm696_vm1, %v4817_v31, %v4816_v7  ;;  %v1066_v27 = vmul.f32 %v3620_v62, %v1053_v24  ;;  %v1177_v34 = vrot.slane %v3971_v9, 7 }
 0x312   :  { %v1110_v19 = vmul.f32 %v3628_v0, %v1097_v6  ;;  %v1154_v45 = vmul.f32 %v4798_v22, %v1141_v12  ;;  %v1225_v59 = vmul.f32 %v3541_v40, %v3971_v9  ;;  %v1230_v7 = vadd.f32 %v1222_v11, %v1210_v29  ;;  %2691 = vmatpush3.bf16.msra.mxu0 %v2791_v39 }
 0x313   :  { %v1231_v37 = vadd.f32 %v4027_v47, %v1211_v10  ;;  %v1074_v28 = vmul.f32 %v3706_v18, %v1066_v27  ;;  %v1320_v42 = vadd.f32 %v4150_v21, %v1276_v16  ;;  %v1186_v48 = vsel %vm741_vm7, %v4818_v52, %v1177_v34 }
 0x314   :  { %v1118_v5 = vmul.f32 %v3609_v55, %v1110_v19  ;;  %v1162_v35 = vmul.f32 %v3589_v51, %v1154_v45  ;;  %v1242_v11 = vrot.slane %v4004_v33, 1  ;;  %v1274_v6 = vadd.f32 %v1258_v56, %v1230_v7  ;;  %v2792_v56 = vld [vmem:[#allocation10 + $0x20] sm:$0xff]  }
 0x315   :  { %v1275_v47 = vadd.f32 %v4064_v58, %v1231_v37  ;;  %v1197_v12 = vmul.f32 %v4799_v20, %v1186_v48  ;;  %v1364_v21 = vadd.f32 %v4167_v41, %v1320_v42  ;;  %v4819_v43 = vrot.slane %v3971_v9, 1  ;;  %2692 = vmatprep.subr.bf16.mxu0 %v2792_v56  ;;  %v2793_v48 = vld [vmem:[#allocation10 + $0x28] sm:$0xff]  }
 0x316   :  { %v1126_v31 = vadd.f32 %v1118_v5, %v1074_v28  ;;  %v1286_v29 = vrot.slane %v4004_v33, 2  ;;  %v1330_v10 = vrot.slane %v4004_v33, 3  ;;  %v1318_v58 = vadd.f32 %v1302_v38, %v1274_v6  ;;  %2693 = vmatpush3.bf16.msra.mxu0 %v2792_v56 }
 0x317   :  { %v1249_v50 = vsel %vm806_vm8, %v4819_v43, %v1242_v11  ;;  %v1319_v27 = vadd.f32 %v4071_v15, %v1275_v47  ;;  %v1213_v41 = vadd.f32 %v1197_v12, %v4137_v30  ;;  %v1392_v23 = vadd.f32 %v4135_v25, %v1364_v21  ;;  %2694 = vmatprep.subr.bf16.mxu0 %v2793_v48 }
 0x318   :  { %v4308_v19 = vadd.f32 %v1162_v35, %v1126_v31  ;;  %v1261_v16 = vmul.f32 %v3642_v3, %v1249_v50  ;;  %v4820_v45 = vrot.slane %v3971_v9, 2  ;;  %v4821_v38 = vrot.slane %v3971_v9, 3 }
 0x319   :  { %v1362_v37 = vadd.f32 %v1346_v61, %v1318_v58  ;;  %v1363_v30 = vadd.f32 %v4094_v36, %v1319_v27  ;;  %v1233_v25 = vadd.f32 %v1225_v59, %v1213_v41  ;;  %v1404_v5 = vadd.f32 %v3790_v14, %v1392_v23 }
 0x31a   :  { %v1293_v7 = vsel %vm851_vm9, %v4820_v45, %v1286_v29  ;;  %v1337_v15 = vsel %vm896_vm11, %v4821_v38, %v1330_v10  ;;  %v1269_v42 = vmul.f32 %v3613_v60, %v1261_v16  ;;  %v1377_v52 = vmul.f32 %v3700_v26, %v1053_v24  ;;  %2695 = vmatpush3.bf16.msra.mxu0 %v2793_v48 }
 0x31b   :  { %v1305_v28 = vmul.f32 %v3646_v4, %v1293_v7  ;;  %v1349_v35 = vmul.f32 %v3681_v49, %v1337_v15  ;;  %v1390_v6 = vadd.f32 %v4235_v63, %v1362_v37  ;;  %v1391_v61 = vadd.f32 %v4082_v13, %v1363_v30 }
 0x31c   :  { %v1046_v59 = vrot.slane %v4061_v17, 4  ;;  %v4335_v47 = vmul.f32 0.5, %v1404_v5  ;;  %v1420_v39 = vmul.f32 0.70710677, %v1404_v5  ;;  %v1277_v31 = vadd.f32 %v1269_v42, %v1233_v25 }
 0x31d   :  { %v1313_v36 = vmul.f32 %v3604_v54, %v1305_v28  ;;  %v1357_v12 = vmul.f32 %v3599_v53, %v1349_v35  ;;  %v1402_v21 = vadd.f32 %v3790_v14, %v1390_v6  ;;  %v1403_v24 = vadd.f32 %v3790_v14, %v1391_v61 }
 0x31e   :  { %v1385_v43 = vmul.f32 %v3762_v57, %v1377_v52  ;;  %v1047_v63 = vrot.slane %v4147_v8, 4  ;;  %2868 = verf.f32 %v1420_v39  ;;  %v4822_v50 = vrot.slane %v4004_v33, 4 }
 0x31f   :  { %v1321_v13 = vadd.f32 %v1313_v36, %v1277_v31  ;;  %v1091_v27 = vrot.slane %v4061_v17, 5  ;;  %v4349_v41 = vmul.f32 0.5, %v1402_v21  ;;  %v1418_v23 = vmul.f32 0.70710677, %v1402_v21 }
 0x320   :  { %v4346_v58 = vsel %vm1049_vm14, %v4822_v50, %v1046_v59  ;;  %v4351_v16 = vmul.f32 0.5, %v1403_v24  ;;  %v1419_v45 = vmul.f32 0.70710677, %v1403_v24  ;;  %v4357_v56 = vsel %vm1049_vm14, %v1046_v59, %v1047_v63  ;;  %v1463_v59 = vpop.permute.xlu1 %1462 }
 0x321   :  { %v1365_v7 = vadd.f32 %v1357_v12, %v1321_v13  ;;  %v1067_v38 = vmul.f32 %v3620_v62, %v4346_v58  ;;  %v1092_v15 = vrot.slane %v4147_v8, 5  ;;  %2870 = verf.f32 %v1418_v23 }
 0x322   :  { %v1068_v37 = vmul.f32 %v3620_v62, %v4357_v56  ;;  %v4823_v30 = vrot.slane %v4004_v33, 5  ;;  %v1135_v28 = vrot.slane %v4061_v17, 6  ;;  %2872 = verf.f32 %v1419_v45 }
 0x323   :  { %v1393_v5 = vadd.f32 %v1385_v43, %v1365_v7  ;;  %v1095_v42 = vsel %vm651_vm0, %v1091_v27, %v1092_v15  ;;  %v4824_v61 = vrot.slane %v4004_v33, 6  ;;  %v1178_v36 = vrot.slane %v4004_v33, 7 }
 0x324   :  { %v1096_v25 = vsel %vm651_vm0, %v4823_v30, %v1091_v27  ;;  %v1076_v52 = vmul.f32 %v3706_v18, %v1068_v37  ;;  %v1112_v6 = vmul.f32 %v3628_v0, %v1095_v42  ;;  %v1179_v21 = vrot.slane %v4061_v17, 7 }
 0x325   :  { %v1111_v35 = vmul.f32 %v3628_v0, %v1096_v25  ;;  %v1140_v48 = vsel %vm696_vm1, %v4824_v61, %v1135_v28  ;;  %v1405_v39 = vadd.f32 %v3790_v14, %v1393_v5  ;;  %v1185_v24 = vsel %vm741_vm7, %v1177_v34, %v1178_v36 }
 0x326   :  { %v1155_v12 = vmul.f32 %v4798_v22, %v1140_v48  ;;  %v1120_v18 = vmul.f32 %v3609_v55, %v1112_v6  ;;  %v1226_v43 = vmul.f32 %v3541_v40, %v4004_v33  ;;  %v1227_v13 = vmul.f32 %v3541_v40, %v4061_v17  ;;  %v1468_v6 = vpop.permute.xlu1 %1467 }
 0x327   :  { %v1127_v31 = vadd.f32 %v1111_v35, %v1067_v38  ;;  %v4395_v50 = vmul.f32 0.5, %v1405_v39  ;;  %v1421_v27 = vmul.f32 0.70710677, %v1405_v39  ;;  %v1184_v55 = vsel %vm741_vm7, %v1178_v36, %v1179_v21 }
 0x328   :  { %v4401_v45 = vadd.f32 %v1120_v18, %v1076_v52  ;;  %v1198_v9 = vmul.f32 %v4799_v20, %v1185_v24  ;;  %v1199_v34 = vmul.f32 %v4799_v20, %v1184_v55  ;;  %v1243_v7 = vrot.slane %v4061_v17, 1  ;;  %v2869_v38 = vpop.eup %2868 }
 0x329   :  { %v1171_v23 = vadd.f32 %v1155_v12, %v1127_v31  ;;  %2874 = verf.f32 %v1421_v27  ;;  %v1244_v37 = vrot.slane %v4147_v8, 1  ;;  %v1287_v30 = vrot.slane %v4061_v17, 2 }
 0x32a   :  { %v1288_v25 = vrot.slane %v4147_v8, 2  ;;  %v1436_v5 = vadd.f32 1.0, %v2869_v38  ;;  %v1206_v42 = vmul.f32 %v3584_v46, %v1198_v9  ;;  %v1248_v52 = vsel %vm806_vm8, %v1242_v11, %v1243_v7 }
 0x32b   :  { %v1215_v35 = vadd.f32 %v1199_v34, %v1171_v23  ;;  %v1247_v61 = vsel %vm806_vm8, %v1243_v7, %v1244_v37  ;;  %v1262_v48 = vmul.f32 %v3642_v3, %v1248_v52  ;;  %v1292_v39 = vsel %vm851_vm9, %v1286_v29, %v1287_v30  ;;  %v2871_v31 = vpop.eup %2870 }
 0x32c   :  { %v1291_v36 = vsel %vm851_vm9, %v1287_v30, %v1288_v25  ;;  %v1444_v11 = vmul.f32 %v1436_v5, %v4335_v47  ;;  %v1214_v12 = vadd.f32 %v1206_v42, %v4308_v19  ;;  %v1263_v24 = vmul.f32 %v3642_v3, %v1247_v61  ;;  %v2873_v27 = vpop.eup %2872 }
 0x32d   :  { %v1235_v18 = vadd.f32 %v1227_v13, %v1215_v35  ;;  %v1434_v23 = vadd.f32 1.0, %v2871_v31  ;;  %v1306_v55 = vmul.f32 %v3646_v4, %v1292_v39  ;;  %v1307_v9 = vmul.f32 %v3646_v4, %v1291_v36 }
 0x32e   :  { %v1331_v34 = vrot.slane %v4061_v17, 3  ;;  %v1435_v7 = vadd.f32 1.0, %v2873_v27  ;;  %v1492_v38 = vmul.f32 %v1463_v59, %v1444_v11  ;;  %v1234_v52 = vadd.f32 %v1226_v43, %v1214_v12  ;;  %v4825_v12 = vld [vmem:[#allocation41_spill] sm:$0xff]  ;;  %v4826_v27 = vld [vmem:[#allocation32_spill] sm:$0xff] }
 0x32f   :  { %v1271_v29 = vmul.f32 %v3613_v60, %v1263_v24  ;;  %v1442_v47 = vmul.f32 %v1434_v23, %v4349_v41  ;;  %v1315_v19 = vmul.f32 %v3604_v54, %v1307_v9  ;;  %v1332_v13 = vrot.slane %v4147_v8, 3 }
 0x330   :  { %v1336_v30 = vsel %vm896_vm11, %v1330_v10, %v1331_v34  ;;  %v1443_v5 = vmul.f32 %v1435_v7, %v4351_v16  ;;  %v4443_v42 = vadd.f32 %v1492_v38, %v4068_v2  ;;  %v1278_v59 = vadd.f32 %v1262_v48, %v1234_v52  ;;  %v4453_v10 = vpop.permute.xlu1 %1561 }
 0x331   :  { %v1279_v43 = vadd.f32 %v1271_v29, %v1235_v18  ;;  %v1490_v35 = vmul.f32 %v3975_v32, %v1442_v47  ;;  %v1335_v41 = vsel %vm896_vm11, %v1331_v34, %v1332_v13  ;;  %v1350_v61 = vmul.f32 %v3681_v49, %v1336_v30 }
 0x332   :  { %v1378_v36 = vmul.f32 %v3700_v26, %v4346_v58  ;;  %v1506_v16 = vadd.f32 %v1443_v5, %v1442_v47  ;;  %v1491_v2 = vmul.f32 %v3998_v44, %v1443_v5  ;;  %v1322_v39 = vadd.f32 %v1306_v55, %v1278_v59  ;;  %v4828_v55 = vld [vmem:[#allocation39_spill] sm:$0xff] }
 0x333   :  { %v1323_v48 = vadd.f32 %v1315_v19, %v1279_v43  ;;  %v2875_v31 = vpop.eup %2874  ;;  %v4457_v32 = vadd.f32 %v1490_v35, %v4825_v12  ;;  %v1351_v18 = vmul.f32 %v3681_v49, %v1335_v41  ;;  %v1379_v24 = vmul.f32 %v3700_v26, %v4357_v56  ;;  %v4831_v12 = vld [vmem:[#allocation40_spill] sm:$0xff] }
 0x334   :  { %v4827_v23 = vrot.slane %v4826_v27, 4  ;;  %v1507_v44 = vrot.slane %v1506_v16, 4  ;;  %v4471_v9 = vadd.f32 %v1491_v2, %v4828_v55  ;;  %v1437_v34 = vadd.f32 1.0, %v2875_v31  ;;  %v4489_v41 = vpop.permute.xlu1 %1571 }
 0x335   :  { %v1366_v7 = vadd.f32 %v1350_v61, %v1322_v39  ;;  %v1359_v38 = vmul.f32 %v3599_v53, %v1351_v18  ;;  %v1387_v52 = vmul.f32 %v3762_v57, %v1379_v24  ;;  %v4829_v29 = vrot.slane %v4826_v27, 5 }
 0x336   :  { %v4468_v58 = vsel %vm1049_vm14, %v1047_v63, %v4827_v23  ;;  %v1508_v47 = vadd.f32 %v1507_v44, %v1506_v16  ;;  %v1445_v19 = vmul.f32 %v1437_v34, %v4395_v50  ;;  %v1136_v43 = vrot.slane %v4147_v8, 6 }
 0x337   :  { %v1069_v56 = vmul.f32 %v3620_v62, %v4468_v58  ;;  %v1094_v63 = vsel %vm651_vm0, %v1092_v15, %v4829_v29  ;;  %v1394_v30 = vadd.f32 %v1378_v36, %v1366_v7  ;;  %v1367_v59 = vadd.f32 %v1359_v38, %v1323_v48 }
 0x338   :  { %v1113_v5 = vmul.f32 %v3628_v0, %v1094_v63  ;;  %v1180_v35 = vrot.slane %v4147_v8, 7  ;;  %v1228_v62 = vmul.f32 %v3541_v40, %v4147_v8  ;;  %v1509_v61 = vrot.slane %v1508_v47, 2  ;;  %v4515_v29 = vpop.permute.xlu1 %1576 }
 0x339   :  { %v1513_v2 = vadd.f32 %v1445_v19, %v1444_v11  ;;  %v1493_v39 = vmul.f32 %v1468_v6, %v1445_v19  ;;  %v1406_v15 = vadd.f32 %v3790_v14, %v1394_v30  ;;  %v1395_v16 = vadd.f32 %v1387_v52, %v1367_v59 }
 0x33a   :  { %v4830_v50 = vrot.slane %v4826_v27, 6  ;;  %v1139_v36 = vsel %vm696_vm1, %v1135_v28, %v1136_v43  ;;  %v1510_v48 = vadd.f32 %v1509_v61, %v1508_v47  ;;  %v1129_v11 = vadd.f32 %v1113_v5, %v1069_v56 }
 0x33b   :  { %v1514_v31 = vrot.slane %v1513_v2, 4  ;;  %v4501_v18 = vadd.f32 %v1493_v39, %v4831_v12  ;;  %v1407_v6 = vadd.f32 %v3790_v14, %v1395_v16  ;;  %v1422_v24 = vmul.f32 0.70710677, %v1406_v15  ;;  %v1567_v12 = vpop.permute.xlu0 %1566 }
 0x33c   :  { %v1138_v0 = vsel %vm696_vm1, %v1136_v43, %v4830_v50  ;;  %v1156_v23 = vmul.f32 %v4798_v22, %v1139_v36  ;;  %v1511_v55 = vrot.slane %v1510_v48, 1  ;;  %v4832_v7 = vrot.slane %v4826_v27, 7 }
 0x33d   :  { %v1157_v44 = vmul.f32 %v4798_v22, %v1138_v0  ;;  %v1515_v34 = vadd.f32 %v1514_v31, %v1513_v2  ;;  %v1183_v38 = vsel %vm741_vm7, %v1179_v21, %v1180_v35  ;;  %v1423_v52 = vmul.f32 0.70710677, %v1407_v6  ;;  %v1013_v31 = vpop.permute.xlu1 %1012 }
 0x33e   :  { %v1182_v28 = vsel %vm741_vm7, %v1180_v35, %v4832_v7  ;;  %2876 = verf.f32 %v1422_v24  ;;  %v1164_v56 = vmul.f32 %v3589_v51, %v1156_v23  ;;  %v1512_v63 = vadd.f32 %v1511_v55, %v1510_v48 }
 0x33f   :  { %v1516_v22 = vrot.slane %v1515_v34, 2  ;;  %v1173_v47 = vadd.f32 %v1157_v44, %v1129_v11  ;;  %v1200_v19 = vmul.f32 %v4799_v20, %v1183_v38  ;;  %2878 = verf.f32 %v1423_v52 }
 0x340   :  { %v1172_v30 = vadd.f32 %v1164_v56, %v4401_v45  ;;  %v1201_v5 = vmul.f32 %v4799_v20, %v1182_v28  ;;  %v1535_v59 = vmul.f32 0.0625, %v1512_v63  ;;  %v1245_v21 = vrot.slane %v4826_v27, 1  ;;  %v4837_v63 = vld [vmem:[#allocation42_spill] sm:$0xff] }
 0x341   :  { %v1208_v43 = vmul.f32 %v3584_v46, %v1200_v19  ;;  %v1229_v51 = vmul.f32 %v3541_v40, %v4826_v27  ;;  %v1289_v61 = vrot.slane %v4826_v27, 2  ;;  %v1333_v2 = vrot.slane %v4826_v27, 3  ;;  %v4833_v46 = vld [vmem:[#allocation31_spill] sm:$0xff] }
 0x342   :  { %v1217_v35 = vadd.f32 %v1201_v5, %v1173_v47  ;;  %v1543_v39 = vmul.f32 0.70710677, %v1535_v59  ;;  %v1517_v16 = vadd.f32 %v1516_v22, %v1515_v34  ;;  %v1246_v20 = vsel %vm806_vm8, %v1244_v37, %v1245_v21 }
 0x343   :  { %v1216_v50 = vadd.f32 %v1208_v43, %v1172_v30  ;;  %v4834_v0 = vrot.slane %v4833_v46, 1  ;;  %v1264_v40 = vmul.f32 %v3642_v3, %v1246_v20  ;;  %v1290_v48 = vsel %vm851_vm9, %v1288_v25, %v1289_v61 }
 0x344   :  { %v1237_v45 = vadd.f32 %v1229_v51, %v1217_v35  ;;  %2880 = verf.f32 %v1543_v39  ;;  %v4835_v37 = vrot.slane %v4833_v46, 2  ;;  %v1334_v55 = vsel %vm896_vm11, %v1332_v13, %v1333_v2  ;;  %v1008_v35 = vpop.permute.xlu0 %1007 }
 0x345   :  { %v1253_v36 = vsel %vm806_vm8, %v1245_v21, %v4834_v0  ;;  %v1236_v11 = vadd.f32 %v1228_v62, %v1216_v50  ;;  %v4836_v25 = vrot.slane %v4833_v46, 3  ;;  %v1308_v7 = vmul.f32 %v3646_v4, %v1290_v48 }
 0x346   :  { %v1265_v24 = vmul.f32 %v3642_v3, %v1253_v36  ;;  %v1297_v23 = vsel %vm851_vm9, %v1289_v61, %v4835_v37  ;;  %v1414_v52 = vmul.f32 0.5, %v1406_v15  ;;  %v1352_v56 = vmul.f32 %v3681_v49, %v1334_v55  ;;  %v1473_v15 = vpop.permute.xlu1 %1472 }
 0x347   :  { %v1309_v44 = vmul.f32 %v3646_v4, %v1297_v23  ;;  %v1341_v34 = vsel %vm896_vm11, %v1333_v2, %v4836_v25  ;;  %v1280_v3 = vadd.f32 %v1264_v40, %v1236_v11  ;;  %v1381_v22 = vmul.f32 %v3700_v26, %v4837_v63 }
 0x348   :  { %v1273_v62 = vmul.f32 %v3613_v60, %v1265_v24  ;;  %v1353_v28 = vmul.f32 %v3681_v49, %v1341_v34  ;;  %v2877_v38 = vpop.eup %2876  ;;  %v1518_v13 = vrot.slane %v1517_v16, 1  ;;  %v1415_v60 = vmul.f32 0.5, %v1407_v6  ;;  %v1478_v36 = vpop.permute.xlu0 %1477 }
 0x349   :  { %v1438_v47 = vadd.f32 1.0, %v2877_v38  ;;  %v1317_v1 = vmul.f32 %v3604_v54, %v1309_v44  ;;  %v1324_v30 = vadd.f32 %v1308_v7, %v1280_v3  ;;  %v2879_v5 = vpop.eup %2878  ;;  %v1380_v4 = vmul.f32 %v3700_v26, %v4468_v58 }
 0x34a   :  { %v1281_v19 = vadd.f32 %v1273_v62, %v1237_v45  ;;  %v1361_v43 = vmul.f32 %v3599_v53, %v1353_v28  ;;  %v1519_v21 = vadd.f32 %v1518_v13, %v1517_v16  ;;  %v1439_v49 = vadd.f32 1.0, %v2879_v5 }
 0x34b   :  { %v1446_v51 = vmul.f32 %v1438_v47, %v1414_v52  ;;  %v1368_v2 = vadd.f32 %v1352_v56, %v1324_v30  ;;  %v1389_v39 = vmul.f32 %v3762_v57, %v1381_v22  ;;  %v1029_v6 = vmul.f32 %v1008_v35, %v4004_v33 }
 0x34c   :  { %v1325_v61 = vadd.f32 %v1317_v1, %v1281_v19  ;;  %v1536_v50 = vmul.f32 0.0625, %v1519_v21  ;;  %v1447_v20 = vmul.f32 %v1439_v49, %v1415_v60  ;;  %v1030_v0 = vmul.f32 %v1013_v31, %v4061_v17  ;;  %v1483_v21 = vpop.permute.xlu0 %1482 }
 0x34d   :  { %v1396_v45 = vadd.f32 %v1380_v4, %v1368_v2  ;;  %v1494_v46 = vmul.f32 %v1473_v15, %v1446_v51  ;;  %v1539_v58 = vmul.f32 0.5, %v1535_v59 }
 0x34e   :  { %v1369_v54 = vadd.f32 %v1361_v43, %v1325_v61  ;;  %v1544_v53 = vmul.f32 0.70710677, %v1536_v50  ;;  %v2881_v26 = vpop.eup %2880  ;;  %v1520_v16 = vadd.f32 %v1447_v20, %v1446_v51  ;;  %v1495_v24 = vmul.f32 %v1478_v36, %v1447_v20 }
 0x34f   :  { %v1408_v48 = vadd.f32 %v3790_v14, %v1396_v45  ;;  %v1551_v11 = vadd.f32 1.0, %v2881_v26  ;;  %v4567_v57 = vadd.f32 %v1494_v46, %v1029_v6 }
 0x350   :  { %v1397_v40 = vadd.f32 %v1389_v39, %v1369_v54  ;;  %2882 = verf.f32 %v1544_v53  ;;  %v1521_v37 = vrot.slane %v1520_v16, 4  ;;  %v1503_v55 = vadd.f32 %v1495_v24, %v1030_v0  ;;  %v1582_v0 = vpop.permute.xlu0 %1581 }
 0x351   :  { %v1424_v44 = vmul.f32 0.70710677, %v1408_v48  ;;  %v1555_v33 = vmul.f32 %v1551_v11, %v1539_v58  ;;  %v1416_v19 = vmul.f32 0.5, %v1408_v48 }
 0x352   :  { %v1409_v23 = vadd.f32 %v3790_v14, %v1397_v40  ;;  %v1522_v25 = vadd.f32 %v1521_v37, %v1520_v16  ;;  %v1540_v14 = vmul.f32 0.5, %v1536_v50 }
 0x353   :  { %2884 = verf.f32 %v1424_v44  ;;  %v1600_v59 = vmul.f32 %v1567_v12, %v1555_v33  ;;  %v1599_v31 = vmul.f32 %v4453_v10, %v1555_v33  ;;  %v1018_v12 = vpop.permute.xlu1 %1017 }
 0x354   :  { %v1425_v17 = vmul.f32 0.70710677, %v1409_v23  ;;  %v1523_v34 = vrot.slane %v1522_v25, 2  ;;  %v1417_v5 = vmul.f32 0.5, %v1409_v23  ;;  %v1031_v4 = vmul.f32 %v1018_v12, %v4147_v8 }
 0x355   :  { %v1607_v62 = vadd.f32 %v1599_v31, %v4457_v32  ;;  %v1608_v3 = vadd.f32 %v1600_v59, %v4471_v9  ;;  %v1597_v59 = vpop.permute.xlu0 %1596 }
 0x356   :  { %2886 = verf.f32 %v1425_v17  ;;  %v1524_v7 = vadd.f32 %v1523_v34, %v1522_v25 }
 0x357   :  { %v1615_v28 = vpack.c.bf16 %v1608_v3, %v1607_v62  ;;  %v1023_v61 = vpop.permute.xlu1 %1022 }
 0x358   :  { %v1525_v38 = vrot.slane %v1524_v7, 1  ;;  %v1032_v17 = vmul.f32 %v1023_v61, %v4826_v27 }
 0x359   :  { %2676 = vmatprep.mubr.bf16.mxu1 %v1615_v28 }
 0x35a   :  { %v2883_v52 = vpop.eup %2882  ;;  %v1526_v63 = vadd.f32 %v1525_v38, %v1524_v7  ;;  %v2794_v38 = vld [vmem:[#allocation10 + $0x30] sm:$0xff]  }
 0x35b   :  { %v1552_v56 = vadd.f32 1.0, %v2883_v52  ;;  %v1488_v20 = vpop.permute.xlu1 %1487  ;;  %v2795_v52 = vld [vmem:[#allocation10 + $0x38] sm:$0xff]   ;;  %2696 = vmatprep.subr.bf16.mxu0 %v2794_v38 }
 0x35c   :  { %v1537_v47 = vmul.f32 0.0625, %v1526_v63  ;;  %2697 = vmatpush3.bf16.msra.mxu0 %v2794_v38  ;;  %v4840_v63 = vld [vmem:[#allocation24_spill] sm:$0xff] }
 0x35d   :  { %v2885_v22 = vpop.eup %2884  ;;  %v1556_v13 = vmul.f32 %v1552_v56, %v1540_v14  ;;  %2698 = vmatprep.subr.bf16.mxu0 %v2795_v52  ;;  %v2940_v14 = vld [vmem:[#allocation5 + $0x10] sm:$0xff]  ;;  %v2942_v38 = vld [vmem:[#allocation2 + $0x8] sm:$0xff] }
 0x35e   :  { %v1440_v10 = vadd.f32 1.0, %v2885_v22  ;;  %v1545_v32 = vmul.f32 0.70710677, %v1537_v47  ;;  %v1541_v8 = vmul.f32 0.5, %v1537_v47  ;;  %v4839_v56 = vld [vmem:[#allocation25_spill] sm:$0xff]  ;;  %v439_v22 = vrot.slane %v2940_v14, %v4840_v63 }
 0x35f   :  { %v1601_v30 = vmul.f32 %v4489_v41, %v1556_v13  ;;  %v1602_v9 = vmul.f32 %v4515_v29, %v1556_v13  ;;  %v1587_v26 = vpop.permute.xlu1 %1586  ;;  %v1638_v27 = vrot.slane %v2940_v14, %v4839_v56  ;;  %v4841_v47 = vld [vmem:[#allocation33_spill] sm:$0xff] }
 0x360   :  { %v2887_v1 = vpop.eup %2886  ;;  %v1448_v43 = vmul.f32 %v1440_v10, %v1416_v19  ;;  %2888 = verf.f32 %v1545_v32  ;;  %2699 = vmatpush3.bf16.msra.mxu0 %v2795_v52  ;;  %v442_v12 = vadd.f32 %v439_v22, %v4841_v47  ;;  %v2943_v56 = vld [vmem:[#allocation2 + $0x18] sm:$0xff] }
 0x361   :  { %v1441_v60 = vadd.f32 1.0, %v2887_v1  ;;  %v1609_v15 = vadd.f32 %v1601_v30, %v4443_v42  ;;  %v1610_v35 = vadd.f32 %v1602_v9, %v4501_v18  ;;  %v4842_v1 = vld [vmem:[#allocation29_spill] sm:$0xff] }
 0x362   :  { %v1496_v51 = vmul.f32 %v1483_v21, %v1448_v43  ;;  %v440_v30 = vadd.f32 %v439_v22, %v4842_v1  ;;  %v2945_v1 = vld [vmem:[#allocation2 + $0x20] sm:$0xff] }
 0x363   :  { %v1449_v49 = vmul.f32 %v1441_v60, %v1417_v5  ;;  %v1616_v2 = vpack.c.bf16 %v1610_v35, %v1609_v15  ;;  %v1592_v31 = vpop.permute.xlu1 %1591  ;;  %v4843_v5 = vld [vmem:[#allocation34_spill] sm:$0xff] }
 0x364   :  { %v1504_v41 = vadd.f32 %v1496_v51, %v1031_v4  ;;  %v443_v60 = vadd.f32 %v439_v22, %v4843_v5  ;;  %v4844_v15 = vld [vmem:[#allocation30_spill] sm:$0xff]  ;;  %v2946_v5 = vld [vmem:[#allocation2 + $0x28] sm:$0xff] }
 0x365   :  { %v1527_v39 = vadd.f32 %v1449_v49, %v1448_v43  ;;  %2677 = vmatmul.mubr.bf16.vlgmr.msra.gmra.mrb[0].mxu1 %v1616_v2  ;;  %v1497_v33 = vmul.f32 %v1488_v20, %v1449_v49  ;;  %v441_v35 = vadd.f32 %v439_v22, %v4844_v15 }
 0x367   :  { %v1528_v50 = vrot.slane %v1527_v39, 4  ;;  %v1505_v62 = vadd.f32 %v1497_v33, %v1032_v17 }
 0x369   :  { %v1529_v29 = vadd.f32 %v1528_v50, %v1527_v39 }
 0x36a   :  { %v2889_v45 = vpop.eup %2888 }
 0x36b   :  { %v1530_v54 = vrot.slane %v1529_v29, 2  ;;  %v1553_v6 = vadd.f32 1.0, %v2889_v45 }
 0x36d   :  { %v1531_v46 = vadd.f32 %v1530_v54, %v1529_v29  ;;  %v1557_v53 = vmul.f32 %v1553_v6, %v1541_v8  ;;  %v4845_v29 = vld [vmem:[#allocation37_spill] sm:$0xff] }
 0x36e   :  { %v446_v20 = vadd.f32 %v439_v22, %v4845_v29 }
 0x36f   :  { %v1532_v42 = vrot.slane %v1531_v46, 1  ;;  %v1603_v18 = vmul.f32 %v1582_v0, %v1557_v53  ;;  %v1604_v16 = vmul.f32 %v1587_v26, %v1557_v53 }
 0x371   :  { %v1533_v58 = vadd.f32 %v1532_v42, %v1531_v46  ;;  %v1611_v40 = vadd.f32 %v1603_v18, %v4567_v57  ;;  %v1612_v48 = vadd.f32 %v1604_v16, %v1503_v55  ;;  %v4838_v55 = vmov 0   ;;  %v4846_v46 = vld [vmem:[#allocation35_spill] sm:$0xff]  ;;  %v4847_v42 = vld [vmem:[#allocation38_spill] sm:$0xff]  ;;  %v4848_v16 = vld [vmem:[#allocation36_spill] sm:$0xff] }
 0x372   :  { %v444_v8 = vadd.f32 %v439_v22, %v4846_v46  ;;  %v447_v0 = vadd.f32 %v439_v22, %v4847_v42 }
 0x373   :  { %v1538_v36 = vmul.f32 0.0625, %v1533_v58  ;;  %v1617_v24 = vpack.c.bf16 %v1612_v48, %v1611_v40 }
 0x375   :  { %v1546_v11 = vmul.f32 0.70710677, %v1538_v36  ;;  %2680 = vmatprep.mubr.bf16.mxu1 %v1617_v24  ;;  %v1542_v23 = vmul.f32 0.5, %v1538_v36  ;;  %v445_v36 = vadd.f32 %v439_v22, %v4848_v16  ;;  %v2802_v16 = vld [vmem:[#allocation11 + $0x20] ss:$8 sps:$4 sm:$0xff]  }
 0x377   :  { %2890 = verf.f32 %v1546_v11 }
 0x381   :  { %v2891_v37 = vpop.eup %2890 }
 0x382   :  { %v1554_v44 = vadd.f32 1.0, %v2891_v37 }
 0x384   :  { %v1558_v25 = vmul.f32 %v1554_v44, %v1542_v23  ;;  %v4849_v44 = vld [vmem:[#allocation28_spill] sm:$0xff] }
 0x385   :  { %v1783_v33 = vrot.slane %v2940_v14, %v4849_v44  ;;  %v2944_v14 = vld [vmem:[#allocation2 + $0x10] sm:$0xff] }
 0x386   :  { %v1606_v34 = vmul.f32 %v1597_v59, %v1558_v25  ;;  %v1605_v3 = vmul.f32 %v1592_v31, %v1558_v25 }
 0x388   :  { %v1614_v7 = vadd.f32 %v1606_v34, %v1505_v62  ;;  %v1613_v28 = vadd.f32 %v1605_v3, %v1504_v41  ;;  %v2941_v62 = vld [vmem:[#allocation2] sm:$0xff] }
 0x38a   :  { %v1618_v57 = vpack.c.bf16 %v1614_v7, %v1613_v28 }
 0x38c   :  { %2681 = vmatmul.mubr.bf16.gmra.mrb[4].mxu1 %v1618_v57 }
 0x38d   :  { %2161 = vmatprep.mubr.bf16.mxu1 %v4838_v55 }
 0x438   :  { %v2678_v13 = vpop.f32.mrb[0].mxu1 }
 0x439   :  { %v1730_v19 = vadd.f32 %v2678_v13, %v1638_v27  ;;  %v1721_v10 = vpop.f32.mrb[1].mxu1 }
 0x43a   :  { %v1722_v32 = vadd.f32 %v1721_v10, %v1638_v27  ;;  %v2679_v9 = vpop.f32.mrb[2].mxu1 }
 0x43b   :  { %v1754_v43 = vmul.f32 %v1730_v19, %v442_v12  ;;  %v1733_v4 = vadd.f32 %v2679_v9, %v1638_v27  ;;  %v1724_v21 = vpop.f32.mrb[3].mxu1 }
 0x43c   :  { %v1752_v49 = vmul.f32 %v1722_v32, %v440_v30  ;;  %v1725_v51 = vadd.f32 %v1724_v21, %v1638_v27  ;;  %v2948_v21 = vld [vmem:[#allocation2 + $0x38] sm:$0xff] }
 0x43d   :  { %v1755_v61 = vmul.f32 %v1733_v4, %v443_v60 }
 0x43e   :  { %v1753_v2 = vmul.f32 %v1725_v51, %v441_v35  ;;  %v2796_v35 = vld [vmem:[#allocation11] ss:$8 sps:$4 sm:$0xff]   ;;  %v2801_v51 = vld [vmem:[#allocation11 + $0x14] ss:$8 sps:$4 sm:$0xff]  }
 0x43f   :  { %v1761_v39 = vpack.c.bf16 %v1755_v61, %v1754_v43  ;;  %v2947_v43 = vld [vmem:[#allocation2 + $0x30] sm:$0xff] }
 0x440   :  { %v1760_v41 = vpack.c.bf16 %v1753_v2, %v1752_v49  ;;  %v2798_v49 = vld [vmem:[#allocation11 + $0x4] ss:$8 sps:$4 sm:$0xff]   ;;  %v2799_v61 = vld [vmem:[#allocation11 + $0x10] ss:$8 sps:$4 sm:$0xff]  }
 0x441   :  { %2129 = vmatprep.subr.bf16.mxu1 %v2798_v49 }
 0x442   :  { %2700 = vmatprep.mubr.bf16.mxu0 %v1760_v41  ;;  %2130 = vmatpush1.bf16.msra.mxu1 %v2796_v35 }
 0x443   :  { %2701 = vmatmul.mubr.bf16.vlgmr.msra.gmra.mrb[16].mxu0 %v1761_v39  ;;  %2131 = vmatprep.subr.bf16.mxu1 %v2801_v51 }
 0x446   :  { %2132 = vmatpush1.bf16.msra.mxu1 %v2799_v61 }
 0x45f   :  { %v2682_v50 = vpop.f32.mrb[4].mxu1 }
 0x460   :  { %v1746_v54 = vadd.f32 %v2682_v50, %v1638_v27  ;;  %v1737_v45 = vpop.f32.mrb[5].mxu1 }
 0x461   :  { %v1738_v6 = vadd.f32 %v1737_v45, %v1638_v27  ;;  %v2683_v53 = vpop.f32.mrb[6].mxu1 }
 0x462   :  { %v1758_v26 = vmul.f32 %v1746_v54, %v446_v20  ;;  %v1749_v18 = vadd.f32 %v2683_v53, %v1638_v27  ;;  %v1740_v58 = vpop.f32.mrb[7].mxu1 }
 0x463   :  { %v1756_v40 = vmul.f32 %v1738_v6, %v444_v8  ;;  %v1741_v48 = vadd.f32 %v1740_v58, %v1638_v27 }
 0x464   :  { %v1759_v11 = vmul.f32 %v1749_v18, %v447_v0 }
 0x465   :  { %v1757_v24 = vmul.f32 %v1741_v48, %v445_v36  ;;  %v2804_v36 = vld [vmem:[#allocation11 + $0x24] ss:$8 sps:$4 sm:$0xff]  }
 0x466   :  { %v1763_v37 = vpack.c.bf16 %v1759_v11, %v1758_v26  ;;  %2133 = vmatprep.subr.bf16.mxu1 %v2804_v36  ;;  %v2807_v11 = vld [vmem:[#allocation11 + $0x34] ss:$8 sps:$4 sm:$0xff]  }
 0x467   :  { %v1762_v23 = vpack.c.bf16 %v1757_v24, %v1756_v40  ;;  %2134 = vmatpush1.bf16.msra.mxu1 %v2802_v16  ;;  %v4851_v16 = vld [vmem:[#allocation27_spill] sm:$0xff] }
 0x468   :  { %2135 = vmatprep.subr.bf16.mxu1 %v2807_v11 }
 0x469   :  { %2704 = vmatprep.mubr.bf16.mxu0 %v1762_v23  ;;  %v2805_v23 = vld [vmem:[#allocation11 + $0x30] ss:$8 sps:$4 sm:$0xff]  }
 0x46a   :  { %2705 = vmatmul.mubr.bf16.gmra.mrb[20].mxu0 %v1763_v37 }
 0x46b   :  { %2136 = vmatpush1.bf16.msra.mxu1 %v2805_v23 }
 0x516   :  { %v2702_v25 = vpop.f32.mrb[16].mxu0 }
 0x517   :  { %v1866_v17 = vpop.f32.mrb[17].mxu0  ;;  %v1875_v57 = vadd.f32 %v2702_v25, %v1783_v33 }
 0x518   :  { %v1867_v59 = vadd.f32 %v1866_v17, %v1783_v33  ;;  %v2703_v31 = vpop.f32.mrb[18].mxu0 }
 0x519   :  { %v1869_v34 = vpop.f32.mrb[19].mxu0  ;;  %v1878_v7 = vadd.f32 %v2703_v31, %v1783_v33  ;;  %v4600_v63 = vadd.f32 %v2944_v14, %v1875_v57  ;;  %v2811_v14 = vld [vmem:[#allocation11 + $0x50] ss:$8 sps:$4 sm:$0xff]  }
 0x51a   :  { %v4592_v3 = vadd.f32 %v2941_v62, %v1867_v59  ;;  %v1870_v28 = vadd.f32 %v1869_v34, %v1783_v33 }
 0x51b   :  { %v4597_v27 = vadd.f32 %v2943_v56, %v1878_v7 }
 0x51c   :  { %v4594_v52 = vadd.f32 %v2942_v38, %v1870_v28  ;;  %1905 = vadd.xlane.f32.xlu1 %v4592_v3  ;;  %v2808_v28 = vld [vmem:[#allocation11 + $0x40] ss:$8 sps:$4 sm:$0xff]  }
 0x51e   :  { %1907 = vadd.xlane.f32.xlu0 %v4594_v52 }
 0x520   :  { %1911 = vadd.xlane.f32.xlu1 %v4597_v27 }
 0x522   :  { %1909 = vadd.xlane.f32.xlu0 %v4600_v63 }
 0x53d   :  { %v2706_v22 = vpop.f32.mrb[20].mxu0 }
 0x53e   :  { %v1882_v13 = vpop.f32.mrb[21].mxu0  ;;  %v1891_v10 = vadd.f32 %v2706_v22, %v1783_v33  ;;  %v2813_v22 = vld [vmem:[#allocation11 + $0x54] ss:$8 sps:$4 sm:$0xff]  }
 0x53f   :  { %v1883_v47 = vadd.f32 %v1882_v13, %v1783_v33  ;;  %v2707_v12 = vpop.f32.mrb[22].mxu0  ;;  %v2814_v13 = vld [vmem:[#allocation11 + $0x60] ss:$8 sps:$4 sm:$0xff]  }
 0x540   :  { %v1885_v19 = vpop.f32.mrb[23].mxu0  ;;  %v1894_v9 = vadd.f32 %v2707_v12, %v1783_v33  ;;  %v4609_v4 = vadd.f32 %v2947_v43, %v1891_v10  ;;  %v2819_v12 = vld [vmem:[#allocation11 + $0x74] ss:$8 sps:$4 sm:$0xff]   ;;  %v2820_v10 = vld [vmem:[#allocation14 + $0x40] sm:$0xff]  }
 0x541   :  { %v4604_v30 = vadd.f32 %v2945_v1, %v1883_v47  ;;  %v1886_v32 = vadd.f32 %v1885_v19, %v1783_v33  ;;  %v2810_v33 = vld [vmem:[#allocation11 + $0x44] ss:$8 sps:$4 sm:$0xff]   ;;  %v2817_v19 = vld [vmem:[#allocation11 + $0x70] ss:$8 sps:$4 sm:$0xff]   ;;  %2620 = vmatprep.subr.bf16.mxu0 %v2820_v10 }
 0x542   :  { %v4612_v15 = vadd.f32 %v2948_v21, %v1894_v9  ;;  %2137 = vmatprep.subr.bf16.mxu1 %v2810_v33  ;;  %v2816_v47 = vld [vmem:[#allocation11 + $0x64] ss:$8 sps:$4 sm:$0xff]  }
 0x543   :  { %v4606_v60 = vadd.f32 %v2946_v5, %v1886_v32  ;;  %1913 = vadd.xlane.f32.xlu0 %v4604_v30  ;;  %2138 = vmatpush1.bf16.msra.mxu1 %v2808_v28  ;;  %v2821_v1 = vld [vmem:[#allocation14] sm:$0xff]   ;;  %v2822_v32 = vld [vmem:[#allocation14 + $0x48] sm:$0xff]  }
 0x544   :  { %2139 = vmatprep.subr.bf16.mxu1 %v2813_v22  ;;  %2621 = vmatpush3.bf16.msra.mxu0 %v2821_v1  ;;  %v2823_v9 = vld [vmem:[#allocation14 + $0x8] sm:$0xff]  }
 0x545   :  { %1915 = vadd.xlane.f32.xlu1 %v4606_v60  ;;  %2622 = vmatprep.subr.bf16.mxu0 %v2822_v32 }
 0x547   :  { %1917 = vadd.xlane.f32.xlu0 %v4609_v4  ;;  %2140 = vmatpush1.bf16.msra.mxu1 %v2811_v14 }
 0x548   :  { %2141 = vmatprep.subr.bf16.mxu1 %v2816_v47  ;;  %2623 = vmatpush3.bf16.msra.mxu0 %v2823_v9 }
 0x549   :  { %1919 = vadd.xlane.f32.xlu1 %v4612_v15 }
 0x54b   :  { %2142 = vmatpush1.bf16.msra.mxu1 %v2814_v13 }
 0x54c   :  { %2143 = vmatprep.subr.bf16.mxu1 %v2819_v12 }
 0x54f   :  { %2144 = vmatpush1.bf16.msra.mxu1 %v2817_v19 }
 0x550   :  { %2708 = vmatprep.subr.bf16.mxu1 %v2820_v10 }
 0x5a9   :  { %v1906_v2 = vpop.xlane.xlu1 %1905 }
 0x5aa   :  { %v1921_v39 = vmul.f32 0.0078125, %v1906_v2 }
 0x5ab   :  { %v1908_v41 = vpop.xlane.xlu0 %1907 }
 0x5ac   :  { %v4617_v50 = vsub.f32 %v4592_v3, %v1921_v39  ;;  %v1922_v29 = vmul.f32 0.0078125, %v1908_v41 }
 0x5ad   :  { %v1912_v20 = vpop.xlane.xlu1 %1911 }
 0x5ae   :  { %v4620_v54 = vsub.f32 %v4594_v52, %v1922_v29  ;;  %v1924_v45 = vmul.f32 0.0078125, %v1912_v20  ;;  %v1937_v46 = vmul.f32 %v4617_v50, %v4617_v50 }
 0x5af   :  { %v1910_v8 = vpop.xlane.xlu0 %1909 }
 0x5b0   :  { %v4625_v6 = vsub.f32 %v4597_v27, %v1924_v45  ;;  %v1923_v53 = vmul.f32 0.0078125, %v1910_v8  ;;  %1945 = vadd.xlane.f32.xlu0 %v1937_v46  ;;  %v1938_v42 = vmul.f32 %v4620_v54, %v4620_v54  ;;  %v4656_v45 = vld [vmem:[#allocation5 + $0x18] sm:$0xff] }
 0x5b1   :  { %v4850_v46 = vld [vmem:[#allocation26_spill] sm:$0xff]  ;;  %v2008_v36 = vrot.slane %v4656_v45, %v4851_v16 }
 0x5b2   :  { %v4630_v0 = vsub.f32 %v4600_v63, %v1923_v53  ;;  %1947 = vadd.xlane.f32.xlu1 %v1938_v42  ;;  %v1940_v26 = vmul.f32 %v4625_v6, %v4625_v6  ;;  %v1996_v8 = vrot.slane %v4656_v45, %v4850_v46 }
 0x5b4   :  { %v1939_v18 = vmul.f32 %v4630_v0, %v4630_v0 }
 0x5b6   :  { %1951 = vadd.xlane.f32.xlu1 %v1940_v26  ;;  %1949 = vadd.xlane.f32.xlu0 %v1939_v18 }
 0x5d0   :  { %v1914_v58 = vpop.xlane.xlu0 %1913 }
 0x5d1   :  { %v1925_v40 = vmul.f32 0.0078125, %v1914_v58 }
 0x5d2   :  { %v1916_v48 = vpop.xlane.xlu1 %1915 }
 0x5d3   :  { %v1926_v24 = vmul.f32 0.0078125, %v1916_v48  ;;  %v4637_v37 = vsub.f32 %v4604_v30, %v1925_v40 }
 0x5d4   :  { %v1918_v44 = vpop.xlane.xlu0 %1917 }
 0x5d5   :  { %v4640_v25 = vsub.f32 %v4606_v60, %v1926_v24  ;;  %v1927_v17 = vmul.f32 0.0078125, %v1918_v44  ;;  %v1941_v59 = vmul.f32 %v4637_v37, %v4637_v37 }
 0x5d6   :  { %v1920_v31 = vpop.xlane.xlu1 %1919 }
 0x5d7   :  { %v1928_v34 = vmul.f32 0.0078125, %v1920_v31  ;;  %v4645_v62 = vsub.f32 %v4609_v4, %v1927_v17  ;;  %v1942_v7 = vmul.f32 %v4640_v25, %v4640_v25  ;;  %1953 = vadd.xlane.f32.xlu0 %v1941_v59 }
 0x5d9   :  { %v4650_v57 = vsub.f32 %v4612_v15, %v1928_v34  ;;  %1955 = vadd.xlane.f32.xlu1 %v1942_v7  ;;  %v1943_v38 = vmul.f32 %v4645_v62, %v4645_v62 }
 0x5db   :  { %v1944_v56 = vmul.f32 %v4650_v57, %v4650_v57  ;;  %1957 = vadd.xlane.f32.xlu0 %v1943_v38 }
 0x5dd   :  { %1959 = vadd.xlane.f32.xlu1 %v1944_v56 }
 0x63d   :  { %v1946_v5 = vpop.xlane.xlu0 %1945 }
 0x63e   :  { %v1961_v43 = vmul.f32 0.0078125, %v1946_v5 }
 0x63f   :  { %v1948_v21 = vpop.xlane.xlu1 %1947 }
 0x640   :  { %v1969_v35 = vadd.f32 1e-05, %v1961_v43  ;;  %v1962_v49 = vmul.f32 0.0078125, %v1948_v21 }
 0x642   :  { %2892 = vrsqrt.f32 %v1969_v35  ;;  %v1970_v51 = vadd.f32 1e-05, %v1962_v49 }
 0x643   :  { %v1952_v61 = vpop.xlane.xlu1 %1951  ;;  %v1950_v2 = vpop.xlane.xlu0 %1949 }
 0x644   :  { %2894 = vrsqrt.f32 %v1970_v51  ;;  %v1964_v39 = vmul.f32 0.0078125, %v1952_v61  ;;  %v1963_v41 = vmul.f32 0.0078125, %v1950_v2 }
 0x646   :  { %v1972_v29 = vadd.f32 1e-05, %v1964_v39  ;;  %v1971_v20 = vadd.f32 1e-05, %v1963_v41 }
 0x648   :  { %2896 = vrsqrt.f32 %v1972_v29 }
 0x649   :  { %2898 = vrsqrt.f32 %v1971_v20 }
 0x64c   :  { %v2893_v53 = vpop.eup %2892 }
 0x64d   :  { %v1985_v42 = vmul.f32 %v2893_v53, %v4617_v50 }
 0x64e   :  { %v2895_v26 = vpop.eup %2894 }
 0x64f   :  { %v1997_v18 = vmul.f32 %v1996_v8, %v1985_v42  ;;  %v1986_v58 = vmul.f32 %v2895_v26, %v4620_v54  ;;  %v2825_v42 = vld [vmem:[#allocation14 + $0x10] sm:$0xff]   ;;  %v2826_v26 = vld [vmem:[#allocation14 + $0x58] sm:$0xff]  }
 0x651   :  { %v1998_v40 = vmul.f32 %v1996_v8, %v1986_v58  ;;  %v2009_v24 = vadd.f32 %v2008_v36, %v1997_v18  ;;  %v2831_v18 = vld [vmem:[#allocation14 + $0x28] sm:$0xff]   ;;  %v2832_v58 = vld [vmem:[#allocation14 + $0x70] sm:$0xff]  }
 0x652   :  { %v2897_v48 = vpop.eup %2896 }
 0x653   :  { %v2899_v11 = vpop.eup %2898  ;;  %v2010_v23 = vadd.f32 %v2008_v36, %v1998_v40  ;;  %v1988_v44 = vmul.f32 %v2897_v48, %v4625_v6  ;;  %v2834_v40 = vld [vmem:[#allocation14 + $0x78] sm:$0xff]  }
 0x654   :  { %v1987_v33 = vmul.f32 %v2899_v11, %v4630_v0  ;;  %v2835_v48 = vld [vmem:[#allocation14 + $0x38] sm:$0xff]  }
 0x655   :  { %v2017_v17 = vpack.c.bf16 %v2010_v23, %v2009_v24  ;;  %v2000_v59 = vmul.f32 %v1996_v8, %v1988_v44  ;;  %v2037_v11 = vld [vmem:[#allocation13] sm:$0x3] }
 0x656   :  { %v1999_v31 = vmul.f32 %v1996_v8, %v1987_v33  ;;  %v4674_v24 = vrot.slane %v2037_v11, %v4850_v46  ;;  %v4677_v23 = vrot.slane %v2037_v11, %v4851_v16 }
 0x657   :  { %2162 = vmatmul.mubr.bf16.vlgmr.msra.gmra.mrb[8].mxu1 %v2017_v17  ;;  %v2012_v54 = vadd.f32 %v2008_v36, %v2000_v59 }
 0x658   :  { %2171 = vmatprep.mubr.bf16.mxu1 %v4838_v55  ;;  %2716 = vmatpush3.bf16.msra.mxu1 %v2821_v1  ;;  %v2011_v50 = vadd.f32 %v2008_v36, %v1999_v31 }
 0x659   :  { %2709 = vmatprep.subr.bf16.mxu1 %v2822_v32 }
 0x65a   :  { %v2018_v34 = vpack.c.bf16 %v2012_v54, %v2011_v50 }
 0x65c   :  { %2717 = vmatpush3.bf16.msra.mxu1 %v2823_v9 }
 0x65f   :  { %2172 = vmatmul.mubr.bf16.gmra.mrb[12].mxu1 %v2018_v34 }
 0x660   :  { %2181 = vmatprep.mubr.bf16.mxu1 %v4838_v55 }
 0x664   :  { %v1954_v7 = vpop.xlane.xlu0 %1953 }
 0x665   :  { %v1965_v28 = vmul.f32 0.0078125, %v1954_v7 }
 0x666   :  { %v1956_v6 = vpop.xlane.xlu1 %1955 }
 0x667   :  { %v1966_v38 = vmul.f32 0.0078125, %v1956_v6  ;;  %v1973_v0 = vadd.f32 1e-05, %v1965_v28 }
 0x668   :  { %v1958_v56 = vpop.xlane.xlu0 %1957 }
 0x669   :  { %v1974_v14 = vadd.f32 1e-05, %v1966_v38  ;;  %2900 = vrsqrt.f32 %v1973_v0  ;;  %v1967_v22 = vmul.f32 0.0078125, %v1958_v56 }
 0x66a   :  { %v1960_v13 = vpop.xlane.xlu1 %1959 }
 0x66b   :  { %2902 = vrsqrt.f32 %v1974_v14  ;;  %v1968_v47 = vmul.f32 0.0078125, %v1960_v13  ;;  %v1975_v12 = vadd.f32 1e-05, %v1967_v22 }
 0x66d   :  { %v1976_v19 = vadd.f32 1e-05, %v1968_v47  ;;  %2904 = vrsqrt.f32 %v1975_v12 }
 0x66f   :  { %2906 = vrsqrt.f32 %v1976_v19 }
 0x673   :  { %v2901_v10 = vpop.eup %2900 }
 0x674   :  { %v1989_v1 = vmul.f32 %v2901_v10, %v4637_v37 }
 0x675   :  { %v2903_v32 = vpop.eup %2902 }
 0x676   :  { %v1990_v9 = vmul.f32 %v2903_v32, %v4640_v25  ;;  %v2001_v5 = vmul.f32 %v1996_v8, %v1989_v1  ;;  %v2824_v25 = vld [vmem:[#allocation14 + $0x50] sm:$0xff]  }
 0x677   :  { %v2905_v43 = vpop.eup %2904  ;;  %2624 = vmatprep.subr.bf16.mxu0 %v2824_v25  ;;  %2710 = vmatprep.subr.bf16.mxu1 %v2824_v25 }
 0x678   :  { %v2002_v21 = vmul.f32 %v1996_v8, %v1990_v9  ;;  %v2013_v35 = vadd.f32 %v2008_v36, %v2001_v5  ;;  %v1991_v49 = vmul.f32 %v2905_v43, %v4645_v62  ;;  %2625 = vmatpush3.bf16.msra.mxu0 %v2825_v42  ;;  %v2827_v62 = vld [vmem:[#allocation14 + $0x18] sm:$0xff]   ;;  %2718 = vmatpush3.bf16.msra.mxu1 %v2825_v42 }
 0x679   :  { %v2907_v51 = vpop.eup %2906  ;;  %2626 = vmatprep.subr.bf16.mxu0 %v2826_v26  ;;  %2711 = vmatprep.subr.bf16.mxu1 %v2826_v26 }
 0x67a   :  { %v2014_v61 = vadd.f32 %v2008_v36, %v2002_v21  ;;  %v1992_v2 = vmul.f32 %v2907_v51, %v4650_v57  ;;  %v2003_v41 = vmul.f32 %v1996_v8, %v1991_v49  ;;  %v2828_v57 = vld [vmem:[#allocation14 + $0x60] sm:$0xff]  }
 0x67c   :  { %v2019_v39 = vpack.c.bf16 %v2014_v61, %v2013_v35  ;;  %v2004_v29 = vmul.f32 %v1996_v8, %v1992_v2  ;;  %v2015_v37 = vadd.f32 %v2008_v36, %v2003_v41  ;;  %2627 = vmatpush3.bf16.msra.mxu0 %v2827_v62  ;;  %v2829_v8 = vld [vmem:[#allocation14 + $0x20] sm:$0xff]   ;;  %2719 = vmatpush3.bf16.msra.mxu1 %v2827_v62 }
 0x67d   :  { %2628 = vmatprep.subr.bf16.mxu0 %v2828_v57  ;;  %2712 = vmatprep.subr.bf16.mxu1 %v2828_v57 }
 0x67e   :  { %2182 = vmatmul.mubr.bf16.gmra.mrb[16].mxu1 %v2019_v39  ;;  %v2016_v20 = vadd.f32 %v2008_v36, %v2004_v29  ;;  %v2833_v36 = vld [vmem:[#allocation14 + $0x30] sm:$0xff]  }
 0x67f   :  { %2191 = vmatprep.mubr.bf16.mxu1 %v4838_v55  ;;  %v2830_v55 = vld [vmem:[#allocation14 + $0x68] sm:$0xff]  }
 0x680   :  { %v2020_v53 = vpack.c.bf16 %v2016_v20, %v2015_v37  ;;  %2629 = vmatpush3.bf16.msra.mxu0 %v2829_v8  ;;  %2720 = vmatpush3.bf16.msra.mxu1 %v2829_v8 }
 0x681   :  { %2630 = vmatprep.subr.bf16.mxu0 %v2830_v55  ;;  %2713 = vmatprep.subr.bf16.mxu1 %v2830_v55 }
 0x684   :  { %2631 = vmatpush3.bf16.msra.mxu0 %v2831_v18  ;;  %2721 = vmatpush3.bf16.msra.mxu1 %v2831_v18 }
 0x685   :  { %2632 = vmatprep.subr.bf16.mxu0 %v2832_v58  ;;  %2714 = vmatprep.subr.bf16.mxu1 %v2832_v58 }
 0x686   :  { %2192 = vmatmul.mubr.bf16.gmra.mrb[20].mxu1 %v2020_v53 }
 0x688   :  { %2633 = vmatpush3.bf16.msra.mxu0 %v2833_v36  ;;  %2722 = vmatpush3.bf16.msra.mxu1 %v2833_v36 }
 0x689   :  { %2634 = vmatprep.subr.bf16.mxu0 %v2834_v40  ;;  %2715 = vmatprep.subr.bf16.mxu1 %v2834_v40 }
 0x68c   :  { %2635 = vmatpush3.bf16.msra.mxu0 %v2835_v48  ;;  %2723 = vmatpush3.bf16.msra.mxu1 %v2835_v48 }
 0x72a   :  { %v2163_v44 = vpop.f32.mrb[8].mxu1 }
 0x72b   :  { %v2164_v33 = vadd.f32 %v2163_v44, %v4674_v24  ;;  %v2165_v17 = vpop.f32.mrb[9].mxu1 }
 0x72c   :  { %v2166_v59 = vadd.f32 %v2165_v17, %v4677_v23  ;;  %v2167_v31 = vpop.f32.mrb[10].mxu1 }
 0x72d   :  { %v2218_v50 = vmul.f32 0.70710677, %v2164_v33  ;;  %v2168_v54 = vadd.f32 %v2167_v31, %v4674_v24  ;;  %v2169_v34 = vpop.f32.mrb[11].mxu1  ;;  %v2202_v49 = vmul.f32 0.5, %v2164_v33 }
 0x72e   :  { %v2219_v7 = vmul.f32 0.70710677, %v2166_v59  ;;  %v2170_v28 = vadd.f32 %v2169_v34, %v4677_v23  ;;  %v2203_v2 = vmul.f32 0.5, %v2166_v59 }
 0x72f   :  { %2908 = verf.f32 %v2218_v50  ;;  %v2220_v46 = vmul.f32 0.70710677, %v2168_v54  ;;  %v2204_v51 = vmul.f32 0.5, %v2168_v54 }
 0x730   :  { %2910 = verf.f32 %v2219_v7  ;;  %v2221_v6 = vmul.f32 0.70710677, %v2170_v28  ;;  %v2205_v39 = vmul.f32 0.5, %v2170_v28 }
 0x731   :  { %2912 = verf.f32 %v2220_v46 }
 0x732   :  { %2914 = verf.f32 %v2221_v6  ;;  %v2173_v16 = vpop.f32.mrb[12].mxu1 }
 0x733   :  { %v2174_v38 = vadd.f32 %v2173_v16, %v4674_v24  ;;  %v2175_v0 = vpop.f32.mrb[13].mxu1 }
 0x734   :  { %v2176_v56 = vadd.f32 %v2175_v0, %v4677_v23  ;;  %v2177_v14 = vpop.f32.mrb[14].mxu1 }
 0x735   :  { %v2222_v22 = vmul.f32 0.70710677, %v2174_v38  ;;  %v2178_v13 = vadd.f32 %v2177_v14, %v4674_v24  ;;  %v2179_v47 = vpop.f32.mrb[15].mxu1  ;;  %v2206_v58 = vmul.f32 0.5, %v2174_v38 }
 0x736   :  { %v2223_v12 = vmul.f32 0.70710677, %v2176_v56  ;;  %v2180_v19 = vadd.f32 %v2179_v47, %v4677_v23  ;;  %v2207_v48 = vmul.f32 0.5, %v2176_v56 }
 0x737   :  { %2916 = verf.f32 %v2222_v22  ;;  %v2224_v10 = vmul.f32 0.70710677, %v2178_v13  ;;  %v2208_v36 = vmul.f32 0.5, %v2178_v13 }
 0x738   :  { %2918 = verf.f32 %v2223_v12  ;;  %v2225_v1 = vmul.f32 0.70710677, %v2180_v19  ;;  %v2209_v11 = vmul.f32 0.5, %v2180_v19 }
 0x739   :  { %v2909_v32 = vpop.eup %2908  ;;  %2920 = verf.f32 %v2224_v10 }
 0x73a   :  { %v2911_v9 = vpop.eup %2910  ;;  %v2250_v5 = vadd.f32 1.0, %v2909_v32  ;;  %2922 = verf.f32 %v2225_v1 }
 0x73b   :  { %v2913_v43 = vpop.eup %2912  ;;  %v2251_v21 = vadd.f32 1.0, %v2911_v9 }
 0x73c   :  { %v2915_v35 = vpop.eup %2914  ;;  %v2252_v61 = vadd.f32 1.0, %v2913_v43  ;;  %v2266_v29 = vmul.f32 %v2250_v5, %v2202_v49 }
 0x73d   :  { %v2253_v41 = vadd.f32 1.0, %v2915_v35  ;;  %v2267_v20 = vmul.f32 %v2251_v21, %v2203_v2 }
 0x73e   :  { %v2268_v37 = vmul.f32 %v2252_v61, %v2204_v51 }
 0x73f   :  { %v2269_v53 = vmul.f32 %v2253_v41, %v2205_v39 }
 0x740   :  { %v2282_v25 = vpack.c.bf16 %v2268_v37, %v2266_v29 }
 0x741   :  { %v2917_v42 = vpop.eup %2916  ;;  %v2283_v26 = vpack.c.bf16 %v2269_v53, %v2267_v20 }
 0x742   :  { %v2919_v62 = vpop.eup %2918  ;;  %v2254_v57 = vadd.f32 1.0, %v2917_v42 }
 0x743   :  { %v2921_v8 = vpop.eup %2920  ;;  %v2255_v55 = vadd.f32 1.0, %v2919_v62  ;;  %2454 = vmatprep.mubr.bf16.mxu0 %v2283_v26 }
 0x744   :  { %v2923_v18 = vpop.eup %2922  ;;  %v2256_v40 = vadd.f32 1.0, %v2921_v8  ;;  %2455 = vmatmul.mubr.bf16.vlgmr.msra.gmra.mrb[24].mxu0 %v2282_v25  ;;  %v2270_v33 = vmul.f32 %v2254_v57, %v2206_v58 }
 0x745   :  { %v2257_v44 = vadd.f32 1.0, %v2923_v18  ;;  %v2271_v59 = vmul.f32 %v2255_v55, %v2207_v48 }
 0x746   :  { %v2272_v17 = vmul.f32 %v2256_v40, %v2208_v36 }
 0x747   :  { %v2273_v31 = vmul.f32 %v2257_v44, %v2209_v11 }
 0x748   :  { %v2284_v50 = vpack.c.bf16 %v2272_v17, %v2270_v33 }
 0x749   :  { %v2285_v54 = vpack.c.bf16 %v2273_v31, %v2271_v59 }
 0x74b   :  { %2462 = vmatprep.mubr.bf16.mxu0 %v2285_v54 }
 0x74c   :  { %2463 = vmatmul.mubr.bf16.gmra.mrb[28].mxu0 %v2284_v50 }
 0x751   :  { %v2183_v34 = vpop.f32.mrb[16].mxu1 }
 0x752   :  { %v2184_v7 = vadd.f32 %v2183_v34, %v4674_v24  ;;  %v2185_v28 = vpop.f32.mrb[17].mxu1 }
 0x753   :  { %v2186_v46 = vadd.f32 %v2185_v28, %v4677_v23  ;;  %v2187_v6 = vpop.f32.mrb[18].mxu1 }
 0x754   :  { %v2226_v16 = vmul.f32 0.70710677, %v2184_v7  ;;  %v2188_v38 = vadd.f32 %v2187_v6, %v4674_v24  ;;  %v2189_v0 = vpop.f32.mrb[19].mxu1  ;;  %v2210_v37 = vmul.f32 0.5, %v2184_v7 }
 0x755   :  { %v2227_v56 = vmul.f32 0.70710677, %v2186_v46  ;;  %v2190_v14 = vadd.f32 %v2189_v0, %v4677_v23 }
 0x756   :  { %2924 = verf.f32 %v2226_v16  ;;  %v2228_v22 = vmul.f32 0.70710677, %v2188_v38  ;;  %v2212_v20 = vmul.f32 0.5, %v2188_v38  ;;  %v4852_v38 = vld [vmem:[#allocation23_spill] sm:$0xff] }
 0x757   :  { %2926 = verf.f32 %v2227_v56  ;;  %v2229_v13 = vmul.f32 0.70710677, %v2190_v14  ;;  %v2213_v25 = vmul.f32 0.5, %v2190_v14  ;;  %v2325_v0 = vrot.slane %v4656_v45, %v4852_v38 }
 0x758   :  { %2928 = verf.f32 %v2228_v22 }
 0x759   :  { %2930 = verf.f32 %v2229_v13  ;;  %v2193_v47 = vpop.f32.mrb[20].mxu1 }
 0x75a   :  { %v2194_v12 = vadd.f32 %v2193_v47, %v4674_v24  ;;  %v2195_v19 = vpop.f32.mrb[21].mxu1 }
 0x75b   :  { %v2196_v10 = vadd.f32 %v2195_v19, %v4677_v23  ;;  %v2197_v1 = vpop.f32.mrb[22].mxu1 }
 0x75c   :  { %v2230_v32 = vmul.f32 0.70710677, %v2194_v12  ;;  %v2198_v9 = vadd.f32 %v2197_v1, %v4674_v24  ;;  %v2199_v5 = vpop.f32.mrb[23].mxu1  ;;  %v2211_v24 = vmul.f32 0.5, %v2186_v46  ;;  %v2214_v44 = vmul.f32 0.5, %v2194_v12 }
 0x75d   :  { %v2231_v43 = vmul.f32 0.70710677, %v2196_v10  ;;  %v2200_v21 = vadd.f32 %v2199_v5, %v4677_v23  ;;  %v2215_v59 = vmul.f32 0.5, %v2196_v10 }
 0x75e   :  { %2932 = verf.f32 %v2230_v32  ;;  %v2232_v35 = vmul.f32 0.70710677, %v2198_v9  ;;  %v2216_v33 = vmul.f32 0.5, %v2198_v9 }
 0x75f   :  { %2934 = verf.f32 %v2231_v43  ;;  %v2233_v49 = vmul.f32 0.70710677, %v2200_v21  ;;  %v2217_v31 = vmul.f32 0.5, %v2200_v21 }
 0x760   :  { %v2925_v51 = vpop.eup %2924  ;;  %2936 = verf.f32 %v2232_v35 }
 0x761   :  { %v2927_v61 = vpop.eup %2926  ;;  %v2258_v2 = vadd.f32 1.0, %v2925_v51  ;;  %2938 = verf.f32 %v2233_v49 }
 0x762   :  { %v2929_v39 = vpop.eup %2928  ;;  %v2259_v41 = vadd.f32 1.0, %v2927_v61 }
 0x763   :  { %v2931_v29 = vpop.eup %2930  ;;  %v2260_v53 = vadd.f32 1.0, %v2929_v39  ;;  %v2274_v26 = vmul.f32 %v2258_v2, %v2210_v37 }
 0x764   :  { %v2261_v42 = vadd.f32 1.0, %v2931_v29  ;;  %v2275_v62 = vmul.f32 %v2259_v41, %v2211_v24 }
 0x765   :  { %v2276_v23 = vmul.f32 %v2260_v53, %v2212_v20 }
 0x766   :  { %v2277_v57 = vmul.f32 %v2261_v42, %v2213_v25 }
 0x767   :  { %v2286_v8 = vpack.c.bf16 %v2276_v23, %v2274_v26 }
 0x768   :  { %v2933_v55 = vpop.eup %2932  ;;  %v2287_v18 = vpack.c.bf16 %v2277_v57, %v2275_v62 }
 0x769   :  { %v2935_v58 = vpop.eup %2934  ;;  %v2262_v36 = vadd.f32 1.0, %v2933_v55 }
 0x76a   :  { %v2937_v40 = vpop.eup %2936  ;;  %v2263_v48 = vadd.f32 1.0, %v2935_v58  ;;  %2470 = vmatprep.mubr.bf16.mxu1 %v2287_v18 }
 0x76b   :  { %v2939_v11 = vpop.eup %2938  ;;  %v2264_v17 = vadd.f32 1.0, %v2937_v40  ;;  %2471 = vmatmul.mubr.bf16.vlgmr.msra.gmra.mrb[24].mxu1 %v2286_v8  ;;  %v2278_v54 = vmul.f32 %v2262_v36, %v2214_v44 }
 0x76c   :  { %v2265_v50 = vadd.f32 1.0, %v2939_v11  ;;  %v2279_v7 = vmul.f32 %v2263_v48, %v2215_v59 }
 0x76d   :  { %v2280_v34 = vmul.f32 %v2264_v17, %v2216_v33 }
 0x76e   :  { %v2281_v28 = vmul.f32 %v2265_v50, %v2217_v31 }
 0x76f   :  { %v2288_v46 = vpack.c.bf16 %v2280_v34, %v2278_v54 }
 0x770   :  { %v2289_v6 = vpack.c.bf16 %v2281_v28, %v2279_v7 }
 0x772   :  { %2478 = vmatprep.mubr.bf16.mxu1 %v2289_v6 }
 0x773   :  { %2479 = vmatmul.mubr.bf16.gmra.mrb[28].mxu1 %v2288_v46 }
 0x817   :  { %v2636_v16 = vpop.f32.mrb[24].mxu0 }
 0x818   :  { %v2637_v56 = vpop.f32.mrb[25].mxu0 }
 0x819   :  { %v2638_v14 = vadd.f32 %v2637_v56, %v2636_v16  ;;  %v2639_v22 = vpop.f32.mrb[26].mxu0 }
 0x81a   :  { %v2640_v13 = vpop.f32.mrb[27].mxu0 }
 0x81b   :  { %v2457_v47 = vadd.f32 %v2638_v14, %v2325_v0  ;;  %v2641_v12 = vadd.f32 %v2640_v13, %v2639_v22 }
 0x81d   :  { %v2487_v19 = vadd.f32 %v2457_v47, %v4592_v3  ;;  %v2460_v10 = vadd.f32 %v2641_v12, %v2325_v0 }
 0x81f   :  { %2495 = vst [vmem:[#allocation16] sm:$0xff] %v2487_v19  ;;  %v2488_v1 = vadd.f32 %v2460_v10, %v4594_v52  ;;  %v2642_v32 = vpop.f32.mrb[28].mxu0 }
 0x820   :  { %v2643_v9 = vpop.f32.mrb[29].mxu0 }
 0x821   :  { %2496 = vst [vmem:[#allocation16 + $0x8] sm:$0xff] %v2488_v1  ;;  %v2644_v5 = vadd.f32 %v2643_v9, %v2642_v32  ;;  %v2645_v43 = vpop.f32.mrb[30].mxu0 }
 0x822   :  { %v2646_v21 = vpop.f32.mrb[31].mxu0 }
 0x823   :  { %v2465_v35 = vadd.f32 %v2644_v5, %v2325_v0  ;;  %v2647_v45 = vadd.f32 %v2646_v21, %v2645_v43 }
 0x825   :  { %v2489_v49 = vadd.f32 %v2465_v35, %v4600_v63  ;;  %v2468_v51 = vadd.f32 %v2647_v45, %v2325_v0 }
 0x827   :  { %2497 = vst [vmem:[#allocation16 + $0x10] sm:$0xff] %v2489_v49  ;;  %v2490_v61 = vadd.f32 %v2468_v51, %v4597_v27 }
 0x829   :  { %2498 = vst [vmem:[#allocation16 + $0x18] sm:$0xff] %v2490_v61 }
 0x83e   :  { %v2648_v3 = vpop.f32.mrb[24].mxu1 }
 0x83f   :  { %v2649_v2 = vpop.f32.mrb[25].mxu1 }
 0x840   :  { %v2650_v39 = vadd.f32 %v2649_v2, %v2648_v3  ;;  %v2651_v41 = vpop.f32.mrb[26].mxu1 }
 0x841   :  { %v2652_v52 = vpop.f32.mrb[27].mxu1 }
 0x842   :  { %v2473_v29 = vadd.f32 %v2650_v39, %v2325_v0  ;;  %v2653_v37 = vadd.f32 %v2652_v52, %v2651_v41 }
 0x844   :  { %v2491_v20 = vadd.f32 %v2473_v29, %v4604_v30  ;;  %v2476_v53 = vadd.f32 %v2653_v37, %v2325_v0 }
 0x846   :  { %2499 = vst [vmem:[#allocation16 + $0x20] sm:$0xff] %v2491_v20  ;;  %v2492_v24 = vadd.f32 %v2476_v53, %v4606_v60  ;;  %v2654_v25 = vpop.f32.mrb[28].mxu1 }
 0x847   :  { %v2655_v63 = vpop.f32.mrb[29].mxu1 }
 0x848   :  { %2500 = vst [vmem:[#allocation16 + $0x28] sm:$0xff] %v2492_v24  ;;  %v2656_v42 = vadd.f32 %v2655_v63, %v2654_v25  ;;  %v2657_v26 = vpop.f32.mrb[30].mxu1 }
 0x849   :  { %v2658_v27 = vpop.f32.mrb[31].mxu1 }
 0x84a   :  { %v2481_v23 = vadd.f32 %v2656_v42, %v2325_v0  ;;  %v2659_v62 = vadd.f32 %v2658_v27, %v2657_v26 }
 0x84c   :  { %v2493_v57 = vadd.f32 %v2481_v23, %v4609_v4  ;;  %v2484_v8 = vadd.f32 %v2659_v62, %v2325_v0 }
 0x84e   :  { %2501 = vst [vmem:[#allocation16 + $0x30] sm:$0xff] %v2493_v57  ;;  %v2494_v30 = vadd.f32 %v2484_v8, %v4612_v15 }
 0x850   :  { %2502 = vst [vmem:[#allocation16 + $0x38] sm:$0xff] %v2494_v30 }
 0x851   :  { %3137 = shalt.err (!%p3134_p12)
}
 0x852   :  { %s3138_s19 = scalar_lea.hbm %s4728_s8, 1024 }
 0x853   :  { %p3139_p13 = scmp.ne.s32.totalorder %s4728_s8, %s3138_s19  ;;  %p3142_p0 = scmp.lt.u32.totalorder %s3138_s19, %s4728_s8 }
 0x855   :  { %p3144_p1 = pnand %p3142_p0, %p3139_p13 }
 0x857   :  { %3147 = shalt.err (!%p3144_p1)
}
 0x858   :  { %2514 = dma.vmem_to_hbm [thread:$0]  %s2509_s1, 1024, %s4728_s8, [#allocation4], %s3162_s17, %s3162_s17, %s3163_s18  }
 0x859   :  { %3158 = dma.done.wait [#allocation4], 1024  }
 0x85a   :  { %3159 = vsyncadd [#allocation4], 4294966272 }
 0x85b   :  { %2518 = vsyncpa [#allocation3], 1 }
 0x85c   :  { %2519 = vsyncpa [#allocation6], 1 }
 0x85d   :  { %2520 = vsyncpa [#allocation9], 1 }
 0x85e   :  { %2521 = vsyncpa [#allocation12], 1 }
 0x85f   :  { %2522 = vsyncpa [#allocation15], 1 }
 0x860   :  { %2523 = vsyncpa [#allocation4], 1 }

</bundles_post_ra>
